<compile_context>
chip_gen: v6e
topology: v6e:2x2x1
jax: 0.10.0
libtpu: 0.0.40
codegen_flags: <defaults>
</compile_context>

<pallas_src>
import functools

import jax
import jax.numpy as jnp
from jax.experimental import pallas as pl
from jax.experimental.pallas import tpu as pltpu


_COMPILER_PARAMS = pltpu.CompilerParams(
    dimension_semantics=("parallel",),
    vmem_limit_bytes=32 * 1024 * 1024,
)


# ---------------------------------------------------------------------------
# Fused Conv2d(5x5, pad=2) + bias + ReLU + MaxPool2d(2, 2)  (one image / step)
# ---------------------------------------------------------------------------
def _conv_relu_pool_kernel(x_ref, w_ref, b_ref, s_ref, o_ref, p_ref, a_ref,
                           *, H, Wp):
    """One grid step = one image.

    x_ref : [1, Cin, Hp*Wp] f32  zero-padded image, rows flattened (width Wp)
    w_ref : [Cout, Cin*25]  bf16 conv weights, K index = (di*5+dj)*Cin + ci
    b_ref : [Cout, 1]       f32  bias
    s_ref : [LH, P]         f32  one-hot pool-selection matrix
    o_ref : [1, Cout, P]    f32  pooled output, P = (H//2)*(W//2)
    p_ref : [Cin*25, NW]    f32  VMEM scratch: im2col tile
    a_ref : [Cout, NW]      f32  VMEM scratch: pre-pool activation
    """
    Cin = x_ref.shape[1]
    NW = H * Wp                  # conv columns computed (all w in [0, Wp))
    LH = (H - 1) * Wp - 1        # columns where a full 2x2 window exists

    # --- im2col built in VMEM (never round-trips through HBM) -------------
    for di in range(5):
        for dj in range(5):
            t = di * 5 + dj
            off = di * Wp + dj
            p_ref[pl.ds(t * Cin, Cin), :] = x_ref[0, :, pl.ds(off, NW)]

    # --- conv as one lane-dense GEMM: bf16 operands, f32 accumulation -----
    patches = p_ref[...].astype(jnp.bfloat16)            # [Cin*25, NW]
    acc = jnp.dot(w_ref[...], patches,
                  preferred_element_type=jnp.float32)     # [Cout, NW]

    # --- bias + ReLU epilogue (f32 VPU; broadcast hoisted, added once) ----
    a_ref[...] = jnp.maximum(acc + b_ref[...], 0.0)

    # --- fused 2x2 max-pool: window max anchored at every flat position ---
    m0 = jnp.maximum(a_ref[:, pl.ds(0, LH)],  a_ref[:, pl.ds(1, LH)])
    m1 = jnp.maximum(a_ref[:, pl.ds(Wp, LH)], a_ref[:, pl.ds(Wp + 1, LH)])
    hm = jnp.maximum(m0, m1)                              # [Cout, LH]

    # --- compact to pooled columns via one-hot selection matmul (exact) ---
    o_ref[0] = jnp.dot(hm, s_ref[...], preferred_element_type=jnp.float32)


def conv_relu_pool(x, w, b):
    """x: [B, Cin, H, W] f32 NCHW, w: [Cout, Cin, 5, 5], b: [Cout].

    Returns pooled activations [B, Cout, (H//2)*(W//2)] in f32.
    """
    B, Cin, H, W = x.shape
    Cout = w.shape[0]
    ho, wo = H // 2, W // 2
    Hp, Wp = H + 5, W + 4        # pad: top 2 / bottom 3, left 2 / right 2
    NW = H * Wp
    LH = (H - 1) * Wp - 1
    P = ho * wo

    # Glue on 1x-sized data only: pad, flatten rows, reorder weights.
    xp = jnp.pad(x, ((0, 0), (0, 0), (2, 3), (2, 2)))
    xp = xp.reshape(B, Cin, Hp * Wp).astype(jnp.float32)
    wm = jnp.transpose(w, (0, 2, 3, 1)).reshape(Cout, 25 * Cin)
    wm = wm.astype(jnp.bfloat16)
    bc = b.reshape(Cout, 1).astype(jnp.float32)

    # One-hot selection: flat column 2*i*Wp + 2*j  ->  pooled column i*wo + j.
    n_idx = jnp.arange(LH, dtype=jnp.int32)[:, None]
    p_idx = jnp.arange(P, dtype=jnp.int32)[None, :]
    tgt = 2 * Wp * (p_idx // wo) + 2 * (p_idx % wo)
    sel = (n_idx == tgt).astype(jnp.float32)

    kernel = functools.partial(_conv_relu_pool_kernel, H=H, Wp=Wp)
    return pl.pallas_call(
        kernel,
        out_shape=jax.ShapeDtypeStruct((B, Cout, P), jnp.float32),
        grid=(B,),
        in_specs=[
            pl.BlockSpec((1, Cin, Hp * Wp), lambda i: (i, 0, 0)),
            pl.BlockSpec((Cout, 25 * Cin), lambda i: (0, 0)),
            pl.BlockSpec((Cout, 1), lambda i: (0, 0)),
            pl.BlockSpec((LH, P), lambda i: (0, 0)),
        ],
        out_specs=pl.BlockSpec((1, Cout, P), lambda i: (i, 0, 0)),
        scratch_shapes=[
            pltpu.VMEM((25 * Cin, NW), jnp.float32),
            pltpu.VMEM((Cout, NW), jnp.float32),
        ],
        compiler_params=_COMPILER_PARAMS,
    )(xp, wm, bc, sel)


# ---------------------------------------------------------------------------
# Fused fc1(+ReLU) -> fc2(+ReLU) -> fc3, batch-tiled
# ---------------------------------------------------------------------------
def _fc_stack_kernel(x_ref, w1_ref, b1_ref, w2_ref, b2_ref, w3_ref, b3_ref,
                     o_ref):
    h = jnp.dot(x_ref[...], w1_ref[...], preferred_element_type=jnp.float32)
    h = jnp.maximum(h + b1_ref[...], 0.0)
    h = jnp.dot(h.astype(jnp.bfloat16), w2_ref[...],
                preferred_element_type=jnp.float32)
    h = jnp.maximum(h + b2_ref[...], 0.0)
    h = jnp.dot(h.astype(jnp.bfloat16), w3_ref[...],
                preferred_element_type=jnp.float32)
    o_ref[...] = h + b3_ref[...]


def fc_stack(x, w1, b1, w2, b2, w3, b3):
    B, D = x.shape
    N1, N2, N3 = w1.shape[1], w2.shape[1], w3.shape[1]
    BM = B if B <= 128 else 128          # batch tile (scales beyond tiny B)
    return pl.pallas_call(
        _fc_stack_kernel,
        out_shape=jax.ShapeDtypeStruct((B, N3), jnp.float32),
        grid=(pl.cdiv(B, BM),),
        in_specs=[
            pl.BlockSpec((BM, D), lambda i: (i, 0)),
            pl.BlockSpec((D, N1), lambda i: (0, 0)),
            pl.BlockSpec((1, N1), lambda i: (0, 0)),
            pl.BlockSpec((N1, N2), lambda i: (0, 0)),
            pl.BlockSpec((1, N2), lambda i: (0, 0)),
            pl.BlockSpec((N2, N3), lambda i: (0, 0)),
            pl.BlockSpec((1, N3), lambda i: (0, 0)),
        ],
        out_specs=pl.BlockSpec((BM, N3), lambda i: (i, 0)),
        compiler_params=_COMPILER_PARAMS,
    )(x.astype(jnp.bfloat16),
      w1.astype(jnp.bfloat16), b1.reshape(1, N1).astype(jnp.float32),
      w2.astype(jnp.bfloat16), b2.reshape(1, N2).astype(jnp.float32),
      w3.astype(jnp.bfloat16), b3.reshape(1, N3).astype(jnp.float32))


# ---------------------------------------------------------------------------
# Parameters (deterministic, PyTorch-default-style uniform init)
# ---------------------------------------------------------------------------
def init_params(key, num_conv_layers=3):
    convs = []
    in_c, out_c = 1, 6
    for _ in range(num_conv_layers):
        key, k1, k2 = jax.random.split(key, 3)
        bound = float(1.0 / (in_c * 25) ** 0.5)
        w = jax.random.uniform(k1, (out_c, in_c, 5, 5), jnp.float32,
                               -bound, bound)
        b = jax.random.uniform(k2, (out_c,), jnp.float32, -bound, bound)
        convs.append((w, b))
        in_c, out_c = out_c, out_c * 2

    fc_in = (out_c // 2) * 3 * 3
    fcs = []
    for din, dout in [(fc_in, 120), (120, 84), (84, 10)]:
        key, k1, k2 = jax.random.split(key, 3)
        bound = float(1.0 / din ** 0.5)
        w = jax.random.uniform(k1, (din, dout), jnp.float32, -bound, bound)
        b = jax.random.uniform(k2, (dout,), jnp.float32, -bound, bound)
        fcs.append((w, b))
    return convs, fcs


def lenet_forward(x, convs, fcs):
    for (w, b) in convs:
        B, _, H, W = x.shape
        y = conv_relu_pool(x, w, b)                       # [B, Cout, ho*wo]
        x = y.reshape(B, w.shape[0], H // 2, W // 2)      # NCHW for next layer
    x = x.reshape(x.shape[0], -1)   # NCHW contiguous flatten == torch .view
    (w1, b1), (w2, b2), (w3, b3) = fcs
    return fc_stack(x, w1, b1, w2, b2, w3, b3)


if __name__ == "__main__":
    key = jax.random.PRNGKey(0)
    kx, kp = jax.random.split(key)

    # MNIST-like input: 28 -> 14 -> 7 -> 3, so fc1.in_features = 24*3*3 = 216.
    x = jax.random.normal(kx, (2, 1, 28, 28), jnp.float32)
    convs, fcs = init_params(kp, num_conv_layers=3)

    fwd = jax.jit(lenet_forward)
    out = fwd(x, convs, fcs)
    out = jax.block_until_ready(out)
    assert out.shape == (2, 10), out.shape
    print("KERNEL_OK")
</pallas_src>

<mosaic_0001>
module attributes {stable_mosaic.version = 11 : i64} {
  func.func @_conv_relu_pool_kernel(%arg0: i32, %arg1: memref<1x1x1056xf32, #tpu.memory_space<vmem>>, %arg2: memref<6x25xbf16, #tpu.memory_space<vmem>>, %arg3: memref<6x1xf32, #tpu.memory_space<vmem>>, %arg4: memref<863x196xf32, #tpu.memory_space<vmem>>, %arg5: memref<1x6x196xf32, #tpu.memory_space<vmem>>, %arg6: memref<25x896xf32, #tpu.memory_space<vmem>>, %arg7: memref<6x896xf32, #tpu.memory_space<vmem>>) attributes {dimension_semantics = [#tpu.dimension_semantics<parallel>], iteration_bounds = array<i64: 2>, scalar_prefetch = 0 : i64, scratch_operands = 2 : i64, tpu.core_type = #tpu.core_type<tc>, window_params = [{transform_indices = @transform_0, window_bounds = array<i64: 1, 1, 1056>}, {pipeline_mode = #tpu.pipeline_mode<synchronous>, transform_indices = @transform_1, window_bounds = array<i64: 6, 25>}, {pipeline_mode = #tpu.pipeline_mode<synchronous>, transform_indices = @transform_2, window_bounds = array<i64: 6, 1>}, {pipeline_mode = #tpu.pipeline_mode<synchronous>, transform_indices = @transform_3, window_bounds = array<i64: 863, 196>}, {transform_indices = @transform_4, window_bounds = array<i64: 1, 6, 196>}]} {
    %c0 = arith.constant 0 : index
    %c0_0 = arith.constant 0 : index
    %c0_1 = arith.constant 0 : index
    %0 = vector.load %arg1[%c0, %c0_0, %c0_1] : memref<1x1x1056xf32, #tpu.memory_space<vmem>>, vector<1x1x896xf32>
    %1 = vector.shape_cast %0 : vector<1x1x896xf32> to vector<1x896xf32>
    %c0_2 = arith.constant 0 : index
    %c0_3 = arith.constant 0 : index
    %2 = vector.load %arg6[%c0_2, %c0_3] : memref<25x896xf32, #tpu.memory_space<vmem>>, vector<1x896xf32>
    tpu.vector_store %arg6[%c0_2, %c0_3], %1 {strides = array<i32>} : memref<25x896xf32, #tpu.memory_space<vmem>>, vector<1x896xf32>,
    %c0_4 = arith.constant 0 : index
    %c0_5 = arith.constant 0 : index
    %c1 = arith.constant 1 : index
    %3 = vector.load %arg1[%c0_4, %c0_5, %c1] : memref<1x1x1056xf32, #tpu.memory_space<vmem>>, vector<1x1x896xf32>
    %4 = vector.shape_cast %3 : vector<1x1x896xf32> to vector<1x896xf32>
    %c1_6 = arith.constant 1 : index
    %c0_7 = arith.constant 0 : index
    %5 = vector.load %arg6[%c1_6, %c0_7] : memref<25x896xf32, #tpu.memory_space<vmem>>, vector<1x896xf32>
    tpu.vector_store %arg6[%c1_6, %c0_7], %4 {strides = array<i32>} : memref<25x896xf32, #tpu.memory_space<vmem>>, vector<1x896xf32>,
    %c0_8 = arith.constant 0 : index
    %c0_9 = arith.constant 0 : index
    %c2 = arith.constant 2 : index
    %6 = vector.load %arg1[%c0_8, %c0_9, %c2] : memref<1x1x1056xf32, #tpu.memory_space<vmem>>, vector<1x1x896xf32>
    %7 = vector.shape_cast %6 : vector<1x1x896xf32> to vector<1x896xf32>
    %c2_10 = arith.constant 2 : index
    %c0_11 = arith.constant 0 : index
    %8 = vector.load %arg6[%c2_10, %c0_11] : memref<25x896xf32, #tpu.memory_space<vmem>>, vector<1x896xf32>
    tpu.vector_store %arg6[%c2_10, %c0_11], %7 {strides = array<i32>} : memref<25x896xf32, #tpu.memory_space<vmem>>, vector<1x896xf32>,
    %c0_12 = arith.constant 0 : index
    %c0_13 = arith.constant 0 : index
    %c3 = arith.constant 3 : index
    %9 = vector.load %arg1[%c0_12, %c0_13, %c3] : memref<1x1x1056xf32, #tpu.memory_space<vmem>>, vector<1x1x896xf32>
    %10 = vector.shape_cast %9 : vector<1x1x896xf32> to vector<1x896xf32>
    %c3_14 = arith.constant 3 : index
    %c0_15 = arith.constant 0 : index
    %11 = vector.load %arg6[%c3_14, %c0_15] : memref<25x896xf32, #tpu.memory_space<vmem>>, vector<1x896xf32>
    tpu.vector_store %arg6[%c3_14, %c0_15], %10 {strides = array<i32>} : memref<25x896xf32, #tpu.memory_space<vmem>>, vector<1x896xf32>,
    %c0_16 = arith.constant 0 : index
    %c0_17 = arith.constant 0 : index
    %c4 = arith.constant 4 : index
    %12 = vector.load %arg1[%c0_16, %c0_17, %c4] : memref<1x1x1056xf32, #tpu.memory_space<vmem>>, vector<1x1x896xf32>
    %13 = vector.shape_cast %12 : vector<1x1x896xf32> to vector<1x896xf32>
    %c4_18 = arith.constant 4 : index
    %c0_19 = arith.constant 0 : index
    %14 = vector.load %arg6[%c4_18, %c0_19] : memref<25x896xf32, #tpu.memory_space<vmem>>, vector<1x896xf32>
    tpu.vector_store %arg6[%c4_18, %c0_19], %13 {strides = array<i32>} : memref<25x896xf32, #tpu.memory_space<vmem>>, vector<1x896xf32>,
    %c0_20 = arith.constant 0 : index
    %c0_21 = arith.constant 0 : index
    %c32 = arith.constant 32 : index
    %15 = vector.load %arg1[%c0_20, %c0_21, %c32] : memref<1x1x1056xf32, #tpu.memory_space<vmem>>, vector<1x1x896xf32>
    %16 = vector.shape_cast %15 : vector<1x1x896xf32> to vector<1x896xf32>
    %c5 = arith.constant 5 : index
    %c0_22 = arith.constant 0 : index
    %17 = vector.load %arg6[%c5, %c0_22] : memref<25x896xf32, #tpu.memory_space<vmem>>, vector<1x896xf32>
    tpu.vector_store %arg6[%c5, %c0_22], %16 {strides = array<i32>} : memref<25x896xf32, #tpu.memory_space<vmem>>, vector<1x896xf32>,
    %c0_23 = arith.constant 0 : index
    %c0_24 = arith.constant 0 : index
    %c33 = arith.constant 33 : index
    %18 = vector.load %arg1[%c0_23, %c0_24, %c33] : memref<1x1x1056xf32, #tpu.memory_space<vmem>>, vector<1x1x896xf32>
    %19 = vector.shape_cast %18 : vector<1x1x896xf32> to vector<1x896xf32>
    %c6 = arith.constant 6 : index
    %c0_25 = arith.constant 0 : index
    %20 = vector.load %arg6[%c6, %c0_25] : memref<25x896xf32, #tpu.memory_space<vmem>>, vector<1x896xf32>
    tpu.vector_store %arg6[%c6, %c0_25], %19 {strides = array<i32>} : memref<25x896xf32, #tpu.memory_space<vmem>>, vector<1x896xf32>,
    %c0_26 = arith.constant 0 : index
    %c0_27 = arith.constant 0 : index
    %c34 = arith.constant 34 : index
    %21 = vector.load %arg1[%c0_26, %c0_27, %c34] : memref<1x1x1056xf32, #tpu.memory_space<vmem>>, vector<1x1x896xf32>
    %22 = vector.shape_cast %21 : vector<1x1x896xf32> to vector<1x896xf32>
    %c7 = arith.constant 7 : index
    %c0_28 = arith.constant 0 : index
    %23 = vector.load %arg6[%c7, %c0_28] : memref<25x896xf32, #tpu.memory_space<vmem>>, vector<1x896xf32>
    tpu.vector_store %arg6[%c7, %c0_28], %22 {strides = array<i32>} : memref<25x896xf32, #tpu.memory_space<vmem>>, vector<1x896xf32>,
    %c0_29 = arith.constant 0 : index
    %c0_30 = arith.constant 0 : index
    %c35 = arith.constant 35 : index
    %24 = vector.load %arg1[%c0_29, %c0_30, %c35] : memref<1x1x1056xf32, #tpu.memory_space<vmem>>, vector<1x1x896xf32>
    %25 = vector.shape_cast %24 : vector<1x1x896xf32> to vector<1x896xf32>
    %c8 = arith.constant 8 : index
    %c0_31 = arith.constant 0 : index
    %26 = vector.load %arg6[%c8, %c0_31] : memref<25x896xf32, #tpu.memory_space<vmem>>, vector<1x896xf32>
    tpu.vector_store %arg6[%c8, %c0_31], %25 {strides = array<i32>} : memref<25x896xf32, #tpu.memory_space<vmem>>, vector<1x896xf32>,
    %c0_32 = arith.constant 0 : index
    %c0_33 = arith.constant 0 : index
    %c36 = arith.constant 36 : index
    %27 = vector.load %arg1[%c0_32, %c0_33, %c36] : memref<1x1x1056xf32, #tpu.memory_space<vmem>>, vector<1x1x896xf32>
    %28 = vector.shape_cast %27 : vector<1x1x896xf32> to vector<1x896xf32>
    %c9 = arith.constant 9 : index
    %c0_34 = arith.constant 0 : index
    %29 = vector.load %arg6[%c9, %c0_34] : memref<25x896xf32, #tpu.memory_space<vmem>>, vector<1x896xf32>
    tpu.vector_store %arg6[%c9, %c0_34], %28 {strides = array<i32>} : memref<25x896xf32, #tpu.memory_space<vmem>>, vector<1x896xf32>,
    %c0_35 = arith.constant 0 : index
    %c0_36 = arith.constant 0 : index
    %c64 = arith.constant 64 : index
    %30 = vector.load %arg1[%c0_35, %c0_36, %c64] : memref<1x1x1056xf32, #tpu.memory_space<vmem>>, vector<1x1x896xf32>
    %31 = vector.shape_cast %30 : vector<1x1x896xf32> to vector<1x896xf32>
    %c10 = arith.constant 10 : index
    %c0_37 = arith.constant 0 : index
    %32 = vector.load %arg6[%c10, %c0_37] : memref<25x896xf32, #tpu.memory_space<vmem>>, vector<1x896xf32>
    tpu.vector_store %arg6[%c10, %c0_37], %31 {strides = array<i32>} : memref<25x896xf32, #tpu.memory_space<vmem>>, vector<1x896xf32>,
    %c0_38 = arith.constant 0 : index
    %c0_39 = arith.constant 0 : index
    %c65 = arith.constant 65 : index
    %33 = vector.load %arg1[%c0_38, %c0_39, %c65] : memref<1x1x1056xf32, #tpu.memory_space<vmem>>, vector<1x1x896xf32>
    %34 = vector.shape_cast %33 : vector<1x1x896xf32> to vector<1x896xf32>
    %c11 = arith.constant 11 : index
    %c0_40 = arith.constant 0 : index
    %35 = vector.load %arg6[%c11, %c0_40] : memref<25x896xf32, #tpu.memory_space<vmem>>, vector<1x896xf32>
    tpu.vector_store %arg6[%c11, %c0_40], %34 {strides = array<i32>} : memref<25x896xf32, #tpu.memory_space<vmem>>, vector<1x896xf32>,
    %c0_41 = arith.constant 0 : index
    %c0_42 = arith.constant 0 : index
    %c66 = arith.constant 66 : index
    %36 = vector.load %arg1[%c0_41, %c0_42, %c66] : memref<1x1x1056xf32, #tpu.memory_space<vmem>>, vector<1x1x896xf32>
    %37 = vector.shape_cast %36 : vector<1x1x896xf32> to vector<1x896xf32>
    %c12 = arith.constant 12 : index
    %c0_43 = arith.constant 0 : index
    %38 = vector.load %arg6[%c12, %c0_43] : memref<25x896xf32, #tpu.memory_space<vmem>>, vector<1x896xf32>
    tpu.vector_store %arg6[%c12, %c0_43], %37 {strides = array<i32>} : memref<25x896xf32, #tpu.memory_space<vmem>>, vector<1x896xf32>,
    %c0_44 = arith.constant 0 : index
    %c0_45 = arith.constant 0 : index
    %c67 = arith.constant 67 : index
    %39 = vector.load %arg1[%c0_44, %c0_45, %c67] : memref<1x1x1056xf32, #tpu.memory_space<vmem>>, vector<1x1x896xf32>
    %40 = vector.shape_cast %39 : vector<1x1x896xf32> to vector<1x896xf32>
    %c13 = arith.constant 13 : index
    %c0_46 = arith.constant 0 : index
    %41 = vector.load %arg6[%c13, %c0_46] : memref<25x896xf32, #tpu.memory_space<vmem>>, vector<1x896xf32>
    tpu.vector_store %arg6[%c13, %c0_46], %40 {strides = array<i32>} : memref<25x896xf32, #tpu.memory_space<vmem>>, vector<1x896xf32>,
    %c0_47 = arith.constant 0 : index
    %c0_48 = arith.constant 0 : index
    %c68 = arith.constant 68 : index
    %42 = vector.load %arg1[%c0_47, %c0_48, %c68] : memref<1x1x1056xf32, #tpu.memory_space<vmem>>, vector<1x1x896xf32>
    %43 = vector.shape_cast %42 : vector<1x1x896xf32> to vector<1x896xf32>
    %c14 = arith.constant 14 : index
    %c0_49 = arith.constant 0 : index
    %44 = vector.load %arg6[%c14, %c0_49] : memref<25x896xf32, #tpu.memory_space<vmem>>, vector<1x896xf32>
    tpu.vector_store %arg6[%c14, %c0_49], %43 {strides = array<i32>} : memref<25x896xf32, #tpu.memory_space<vmem>>, vector<1x896xf32>,
    %c0_50 = arith.constant 0 : index
    %c0_51 = arith.constant 0 : index
    %c96 = arith.constant 96 : index
    %45 = vector.load %arg1[%c0_50, %c0_51, %c96] : memref<1x1x1056xf32, #tpu.memory_space<vmem>>, vector<1x1x896xf32>
    %46 = vector.shape_cast %45 : vector<1x1x896xf32> to vector<1x896xf32>
    %c15 = arith.constant 15 : index
    %c0_52 = arith.constant 0 : index
    %47 = vector.load %arg6[%c15, %c0_52] : memref<25x896xf32, #tpu.memory_space<vmem>>, vector<1x896xf32>
    tpu.vector_store %arg6[%c15, %c0_52], %46 {strides = array<i32>} : memref<25x896xf32, #tpu.memory_space<vmem>>, vector<1x896xf32>,
    %c0_53 = arith.constant 0 : index
    %c0_54 = arith.constant 0 : index
    %c97 = arith.constant 97 : index
    %48 = vector.load %arg1[%c0_53, %c0_54, %c97] : memref<1x1x1056xf32, #tpu.memory_space<vmem>>, vector<1x1x896xf32>
    %49 = vector.shape_cast %48 : vector<1x1x896xf32> to vector<1x896xf32>
    %c16 = arith.constant 16 : index
    %c0_55 = arith.constant 0 : index
    %50 = vector.load %arg6[%c16, %c0_55] : memref<25x896xf32, #tpu.memory_space<vmem>>, vector<1x896xf32>
    tpu.vector_store %arg6[%c16, %c0_55], %49 {strides = array<i32>} : memref<25x896xf32, #tpu.memory_space<vmem>>, vector<1x896xf32>,
    %c0_56 = arith.constant 0 : index
    %c0_57 = arith.constant 0 : index
    %c98 = arith.constant 98 : index
    %51 = vector.load %arg1[%c0_56, %c0_57, %c98] : memref<1x1x1056xf32, #tpu.memory_space<vmem>>, vector<1x1x896xf32>
    %52 = vector.shape_cast %51 : vector<1x1x896xf32> to vector<1x896xf32>
    %c17 = arith.constant 17 : index
    %c0_58 = arith.constant 0 : index
    %53 = vector.load %arg6[%c17, %c0_58] : memref<25x896xf32, #tpu.memory_space<vmem>>, vector<1x896xf32>
    tpu.vector_store %arg6[%c17, %c0_58], %52 {strides = array<i32>} : memref<25x896xf32, #tpu.memory_space<vmem>>, vector<1x896xf32>,
    %c0_59 = arith.constant 0 : index
    %c0_60 = arith.constant 0 : index
    %c99 = arith.constant 99 : index
    %54 = vector.load %arg1[%c0_59, %c0_60, %c99] : memref<1x1x1056xf32, #tpu.memory_space<vmem>>, vector<1x1x896xf32>
    %55 = vector.shape_cast %54 : vector<1x1x896xf32> to vector<1x896xf32>
    %c18 = arith.constant 18 : index
    %c0_61 = arith.constant 0 : index
    %56 = vector.load %arg6[%c18, %c0_61] : memref<25x896xf32, #tpu.memory_space<vmem>>, vector<1x896xf32>
    tpu.vector_store %arg6[%c18, %c0_61], %55 {strides = array<i32>} : memref<25x896xf32, #tpu.memory_space<vmem>>, vector<1x896xf32>,
    %c0_62 = arith.constant 0 : index
    %c0_63 = arith.constant 0 : index
    %c100 = arith.constant 100 : index
    %57 = vector.load %arg1[%c0_62, %c0_63, %c100] : memref<1x1x1056xf32, #tpu.memory_space<vmem>>, vector<1x1x896xf32>
    %58 = vector.shape_cast %57 : vector<1x1x896xf32> to vector<1x896xf32>
    %c19 = arith.constant 19 : index
    %c0_64 = arith.constant 0 : index
    %59 = vector.load %arg6[%c19, %c0_64] : memref<25x896xf32, #tpu.memory_space<vmem>>, vector<1x896xf32>
    tpu.vector_store %arg6[%c19, %c0_64], %58 {strides = array<i32>} : memref<25x896xf32, #tpu.memory_space<vmem>>, vector<1x896xf32>,
    %c0_65 = arith.constant 0 : index
    %c0_66 = arith.constant 0 : index
    %c128 = arith.constant 128 : index
    %60 = vector.load %arg1[%c0_65, %c0_66, %c128] : memref<1x1x1056xf32, #tpu.memory_space<vmem>>, vector<1x1x896xf32>
    %61 = vector.shape_cast %60 : vector<1x1x896xf32> to vector<1x896xf32>
    %c20 = arith.constant 20 : index
    %c0_67 = arith.constant 0 : index
    %62 = vector.load %arg6[%c20, %c0_67] : memref<25x896xf32, #tpu.memory_space<vmem>>, vector<1x896xf32>
    tpu.vector_store %arg6[%c20, %c0_67], %61 {strides = array<i32>} : memref<25x896xf32, #tpu.memory_space<vmem>>, vector<1x896xf32>,
    %c0_68 = arith.constant 0 : index
    %c0_69 = arith.constant 0 : index
    %c129 = arith.constant 129 : index
    %63 = vector.load %arg1[%c0_68, %c0_69, %c129] : memref<1x1x1056xf32, #tpu.memory_space<vmem>>, vector<1x1x896xf32>
    %64 = vector.shape_cast %63 : vector<1x1x896xf32> to vector<1x896xf32>
    %c21 = arith.constant 21 : index
    %c0_70 = arith.constant 0 : index
    %65 = vector.load %arg6[%c21, %c0_70] : memref<25x896xf32, #tpu.memory_space<vmem>>, vector<1x896xf32>
    tpu.vector_store %arg6[%c21, %c0_70], %64 {strides = array<i32>} : memref<25x896xf32, #tpu.memory_space<vmem>>, vector<1x896xf32>,
    %c0_71 = arith.constant 0 : index
    %c0_72 = arith.constant 0 : index
    %c130 = arith.constant 130 : index
    %66 = vector.load %arg1[%c0_71, %c0_72, %c130] : memref<1x1x1056xf32, #tpu.memory_space<vmem>>, vector<1x1x896xf32>
    %67 = vector.shape_cast %66 : vector<1x1x896xf32> to vector<1x896xf32>
    %c22 = arith.constant 22 : index
    %c0_73 = arith.constant 0 : index
    %68 = vector.load %arg6[%c22, %c0_73] : memref<25x896xf32, #tpu.memory_space<vmem>>, vector<1x896xf32>
    tpu.vector_store %arg6[%c22, %c0_73], %67 {strides = array<i32>} : memref<25x896xf32, #tpu.memory_space<vmem>>, vector<1x896xf32>,
    %c0_74 = arith.constant 0 : index
    %c0_75 = arith.constant 0 : index
    %c131 = arith.constant 131 : index
    %69 = vector.load %arg1[%c0_74, %c0_75, %c131] : memref<1x1x1056xf32, #tpu.memory_space<vmem>>, vector<1x1x896xf32>
    %70 = vector.shape_cast %69 : vector<1x1x896xf32> to vector<1x896xf32>
    %c23 = arith.constant 23 : index
    %c0_76 = arith.constant 0 : index
    %71 = vector.load %arg6[%c23, %c0_76] : memref<25x896xf32, #tpu.memory_space<vmem>>, vector<1x896xf32>
    tpu.vector_store %arg6[%c23, %c0_76], %70 {strides = array<i32>} : memref<25x896xf32, #tpu.memory_space<vmem>>, vector<1x896xf32>,
    %c0_77 = arith.constant 0 : index
    %c0_78 = arith.constant 0 : index
    %c132 = arith.constant 132 : index
    %72 = vector.load %arg1[%c0_77, %c0_78, %c132] : memref<1x1x1056xf32, #tpu.memory_space<vmem>>, vector<1x1x896xf32>
    %73 = vector.shape_cast %72 : vector<1x1x896xf32> to vector<1x896xf32>
    %c24 = arith.constant 24 : index
    %c0_79 = arith.constant 0 : index
    %74 = vector.load %arg6[%c24, %c0_79] : memref<25x896xf32, #tpu.memory_space<vmem>>, vector<1x896xf32>
    tpu.vector_store %arg6[%c24, %c0_79], %73 {strides = array<i32>} : memref<25x896xf32, #tpu.memory_space<vmem>>, vector<1x896xf32>,
    %c0_80 = arith.constant 0 : index
    %c0_81 = arith.constant 0 : index
    %75 = vector.load %arg6[%c0_80, %c0_81] : memref<25x896xf32, #tpu.memory_space<vmem>>, vector<25x896xf32>
    %76 = arith.truncf %75 : vector<25x896xf32> to vector<25x896xbf16>
    %c0_82 = arith.constant 0 : index
    %c0_83 = arith.constant 0 : index
    %77 = vector.load %arg2[%c0_82, %c0_83] : memref<6x25xbf16, #tpu.memory_space<vmem>>, vector<6x25xbf16>
    %cst = arith.constant dense<0.000000e+00> : vector<6x896xf32>
    %78 = tpu.matmul %77, %76, %cst {dimension_numbers = #tpu.dot_dimension_numbers<[1], [0], [0], [1], [0, 0, 1, 1], [], []>} : vector<6x25xbf16>, vector<25x896xbf16>, vector<6x896xf32> -> vector<6x896xf32>
    %c0_84 = arith.constant 0 : index
    %c0_85 = arith.constant 0 : index
    %79 = vector.load %arg3[%c0_84, %c0_85] : memref<6x1xf32, #tpu.memory_space<vmem>>, vector<6x1xf32>
    %80 = vector.broadcast %79 : vector<6x1xf32> to vector<6x896xf32>
    %81 = arith.addf %78, %80 : vector<6x896xf32>
    %cst_86 = arith.constant 0.000000e+00 : f32
    %82 = vector.broadcast %cst_86 : f32 to vector<6x896xf32>
    %83 = arith.maximumf %81, %82 : vector<6x896xf32>
    %c0_87 = arith.constant 0 : index
    %c0_88 = arith.constant 0 : index
    %84 = vector.load %arg7[%c0_87, %c0_88] : memref<6x896xf32, #tpu.memory_space<vmem>>, vector<6x896xf32>
    tpu.vector_store %arg7[%c0_87, %c0_88], %83 {strides = array<i32>} : memref<6x896xf32, #tpu.memory_space<vmem>>, vector<6x896xf32>,
    %c0_89 = arith.constant 0 : index
    %c0_90 = arith.constant 0 : index
    %85 = vector.load %arg7[%c0_89, %c0_90] : memref<6x896xf32, #tpu.memory_space<vmem>>, vector<6x863xf32>
    %c0_91 = arith.constant 0 : index
    %c1_92 = arith.constant 1 : index
    %86 = vector.load %arg7[%c0_91, %c1_92] : memref<6x896xf32, #tpu.memory_space<vmem>>, vector<6x863xf32>
    %87 = arith.maximumf %85, %86 : vector<6x863xf32>
    %c0_93 = arith.constant 0 : index
    %c32_94 = arith.constant 32 : index
    %88 = vector.load %arg7[%c0_93, %c32_94] : memref<6x896xf32, #tpu.memory_space<vmem>>, vector<6x863xf32>
    %c0_95 = arith.constant 0 : index
    %c33_96 = arith.constant 33 : index
    %89 = vector.load %arg7[%c0_95, %c33_96] : memref<6x896xf32, #tpu.memory_space<vmem>>, vector<6x863xf32>
    %90 = arith.maximumf %88, %89 : vector<6x863xf32>
    %91 = arith.maximumf %87, %90 : vector<6x863xf32>
    %c0_97 = arith.constant 0 : index
    %c0_98 = arith.constant 0 : index
    %92 = vector.load %arg4[%c0_97, %c0_98] : memref<863x196xf32, #tpu.memory_space<vmem>>, vector<863x196xf32>
    %cst_99 = arith.constant dense<0.000000e+00> : vector<6x196xf32>
    %93 = tpu.matmul %91, %92, %cst_99 {dimension_numbers = #tpu.dot_dimension_numbers<[1], [0], [0], [1], [0, 0, 1, 1], [], []>} : vector<6x863xf32>, vector<863x196xf32>, vector<6x196xf32> -> vector<6x196xf32>
    %c0_100 = arith.constant 0 : index
    %c0_101 = arith.constant 0 : index
    %c0_102 = arith.constant 0 : index
    %94 = vector.load %arg5[%c0_100, %c0_101, %c0_102] : memref<1x6x196xf32, #tpu.memory_space<vmem>>, vector<1x6x196xf32>
    %95 = vector.shape_cast %94 : vector<1x6x196xf32> to vector<6x196xf32>
    %96 = vector.shape_cast %93 : vector<6x196xf32> to vector<1x6x196xf32>
    tpu.vector_store %arg5[%c0_100, %c0_101, %c0_102], %96 {strides = array<i32>} : memref<1x6x196xf32, #tpu.memory_space<vmem>>, vector<1x6x196xf32>,
    return
  }
  func.func @transform_0(%arg0: i32) -> (i32, i32, i32) {
    %c0_i32 = arith.constant 0 : i32
    %c0_i32_0 = arith.constant 0 : i32
    %c0_i32_1 = arith.constant 0 : i32
    return %arg0, %c0_i32, %c0_i32_0 : i32, i32, i32
  }
  func.func @transform_1(%arg0: i32) -> (i32, i32) {
    %c0_i32 = arith.constant 0 : i32
    %c0_i32_0 = arith.constant 0 : i32
    %c0_i32_1 = arith.constant 0 : i32
    return %c0_i32, %c0_i32_0 : i32, i32
  }
  func.func @transform_2(%arg0: i32) -> (i32, i32) {
    %c0_i32 = arith.constant 0 : i32
    %c0_i32_0 = arith.constant 0 : i32
    %c0_i32_1 = arith.constant 0 : i32
    return %c0_i32, %c0_i32_0 : i32, i32
  }
  func.func @transform_3(%arg0: i32) -> (i32, i32) {
    %c0_i32 = arith.constant 0 : i32
    %c0_i32_0 = arith.constant 0 : i32
    %c0_i32_1 = arith.constant 0 : i32
    return %c0_i32, %c0_i32_0 : i32, i32
  }
  func.func @transform_4(%arg0: i32) -> (i32, i32, i32) {
    %c0_i32 = arith.constant 0 : i32
    %c0_i32_0 = arith.constant 0 : i32
    %c0_i32_1 = arith.constant 0 : i32
    return %arg0, %c0_i32, %c0_i32_0 : i32, i32, i32
  }
}

module attributes {stable_mosaic.version = 11 : i64} {
  func.func @_conv_relu_pool_kernel(%arg0: i32, %arg1: memref<1x6x342xf32, #tpu.memory_space<vmem>>, %arg2: memref<12x150xbf16, #tpu.memory_space<vmem>>, %arg3: memref<12x1xf32, #tpu.memory_space<vmem>>, %arg4: memref<233x49xf32, #tpu.memory_space<vmem>>, %arg5: memref<1x12x49xf32, #tpu.memory_space<vmem>>, %arg6: memref<150x252xf32, #tpu.memory_space<vmem>>, %arg7: memref<12x252xf32, #tpu.memory_space<vmem>>) attributes {dimension_semantics = [#tpu.dimension_semantics<parallel>], iteration_bounds = array<i64: 2>, scalar_prefetch = 0 : i64, scratch_operands = 2 : i64, tpu.core_type = #tpu.core_type<tc>, window_params = [{transform_indices = @transform_0, window_bounds = array<i64: 1, 6, 342>}, {pipeline_mode = #tpu.pipeline_mode<synchronous>, transform_indices = @transform_1, window_bounds = array<i64: 12, 150>}, {pipeline_mode = #tpu.pipeline_mode<synchronous>, transform_indices = @transform_2, window_bounds = array<i64: 12, 1>}, {pipeline_mode = #tpu.pipeline_mode<synchronous>, transform_indices = @transform_3, window_bounds = array<i64: 233, 49>}, {transform_indices = @transform_4, window_bounds = array<i64: 1, 12, 49>}]} {
    %c0 = arith.constant 0 : index
    %c0_0 = arith.constant 0 : index
    %c0_1 = arith.constant 0 : index
    %0 = vector.load %arg1[%c0, %c0_0, %c0_1] : memref<1x6x342xf32, #tpu.memory_space<vmem>>, vector<1x6x252xf32>
    %1 = vector.shape_cast %0 : vector<1x6x252xf32> to vector<6x252xf32>
    %c0_2 = arith.constant 0 : index
    %c0_3 = arith.constant 0 : index
    %2 = vector.load %arg6[%c0_2, %c0_3] : memref<150x252xf32, #tpu.memory_space<vmem>>, vector<6x252xf32>
    tpu.vector_store %arg6[%c0_2, %c0_3], %1 {strides = array<i32>} : memref<150x252xf32, #tpu.memory_space<vmem>>, vector<6x252xf32>,
    %c0_4 = arith.constant 0 : index
    %c0_5 = arith.constant 0 : index
    %c1 = arith.constant 1 : index
    %3 = vector.load %arg1[%c0_4, %c0_5, %c1] : memref<1x6x342xf32, #tpu.memory_space<vmem>>, vector<1x6x252xf32>
    %4 = vector.shape_cast %3 : vector<1x6x252xf32> to vector<6x252xf32>
    %c6 = arith.constant 6 : index
    %c0_6 = arith.constant 0 : index
    %5 = vector.load %arg6[%c6, %c0_6] : memref<150x252xf32, #tpu.memory_space<vmem>>, vector<6x252xf32>
    tpu.vector_store %arg6[%c6, %c0_6], %4 {strides = array<i32>} : memref<150x252xf32, #tpu.memory_space<vmem>>, vector<6x252xf32>,
    %c0_7 = arith.constant 0 : index
    %c0_8 = arith.constant 0 : index
    %c2 = arith.constant 2 : index
    %6 = vector.load %arg1[%c0_7, %c0_8, %c2] : memref<1x6x342xf32, #tpu.memory_space<vmem>>, vector<1x6x252xf32>
    %7 = vector.shape_cast %6 : vector<1x6x252xf32> to vector<6x252xf32>
    %c12 = arith.constant 12 : index
    %c0_9 = arith.constant 0 : index
    %8 = vector.load %arg6[%c12, %c0_9] : memref<150x252xf32, #tpu.memory_space<vmem>>, vector<6x252xf32>
    tpu.vector_store %arg6[%c12, %c0_9], %7 {strides = array<i32>} : memref<150x252xf32, #tpu.memory_space<vmem>>, vector<6x252xf32>,
    %c0_10 = arith.constant 0 : index
    %c0_11 = arith.constant 0 : index
    %c3 = arith.constant 3 : index
    %9 = vector.load %arg1[%c0_10, %c0_11, %c3] : memref<1x6x342xf32, #tpu.memory_space<vmem>>, vector<1x6x252xf32>
    %10 = vector.shape_cast %9 : vector<1x6x252xf32> to vector<6x252xf32>
    %c18 = arith.constant 18 : index
    %c0_12 = arith.constant 0 : index
    %11 = vector.load %arg6[%c18, %c0_12] : memref<150x252xf32, #tpu.memory_space<vmem>>, vector<6x252xf32>
    tpu.vector_store %arg6[%c18, %c0_12], %10 {strides = array<i32>} : memref<150x252xf32, #tpu.memory_space<vmem>>, vector<6x252xf32>,
    %c0_13 = arith.constant 0 : index
    %c0_14 = arith.constant 0 : index
    %c4 = arith.constant 4 : index
    %12 = vector.load %arg1[%c0_13, %c0_14, %c4] : memref<1x6x342xf32, #tpu.memory_space<vmem>>, vector<1x6x252xf32>
    %13 = vector.shape_cast %12 : vector<1x6x252xf32> to vector<6x252xf32>
    %c24 = arith.constant 24 : index
    %c0_15 = arith.constant 0 : index
    %14 = vector.load %arg6[%c24, %c0_15] : memref<150x252xf32, #tpu.memory_space<vmem>>, vector<6x252xf32>
    tpu.vector_store %arg6[%c24, %c0_15], %13 {strides = array<i32>} : memref<150x252xf32, #tpu.memory_space<vmem>>, vector<6x252xf32>,
    %c0_16 = arith.constant 0 : index
    %c0_17 = arith.constant 0 : index
    %c18_18 = arith.constant 18 : index
    %15 = vector.load %arg1[%c0_16, %c0_17, %c18_18] : memref<1x6x342xf32, #tpu.memory_space<vmem>>, vector<1x6x252xf32>
    %16 = vector.shape_cast %15 : vector<1x6x252xf32> to vector<6x252xf32>
    %c30 = arith.constant 30 : index
    %c0_19 = arith.constant 0 : index
    %17 = vector.load %arg6[%c30, %c0_19] : memref<150x252xf32, #tpu.memory_space<vmem>>, vector<6x252xf32>
    tpu.vector_store %arg6[%c30, %c0_19], %16 {strides = array<i32>} : memref<150x252xf32, #tpu.memory_space<vmem>>, vector<6x252xf32>,
    %c0_20 = arith.constant 0 : index
    %c0_21 = arith.constant 0 : index
    %c19 = arith.constant 19 : index
    %18 = vector.load %arg1[%c0_20, %c0_21, %c19] : memref<1x6x342xf32, #tpu.memory_space<vmem>>, vector<1x6x252xf32>
    %19 = vector.shape_cast %18 : vector<1x6x252xf32> to vector<6x252xf32>
    %c36 = arith.constant 36 : index
    %c0_22 = arith.constant 0 : index
    %20 = vector.load %arg6[%c36, %c0_22] : memref<150x252xf32, #tpu.memory_space<vmem>>, vector<6x252xf32>
    tpu.vector_store %arg6[%c36, %c0_22], %19 {strides = array<i32>} : memref<150x252xf32, #tpu.memory_space<vmem>>, vector<6x252xf32>,
    %c0_23 = arith.constant 0 : index
    %c0_24 = arith.constant 0 : index
    %c20 = arith.constant 20 : index
    %21 = vector.load %arg1[%c0_23, %c0_24, %c20] : memref<1x6x342xf32, #tpu.memory_space<vmem>>, vector<1x6x252xf32>
    %22 = vector.shape_cast %21 : vector<1x6x252xf32> to vector<6x252xf32>
    %c42 = arith.constant 42 : index
    %c0_25 = arith.constant 0 : index
    %23 = vector.load %arg6[%c42, %c0_25] : memref<150x252xf32, #tpu.memory_space<vmem>>, vector<6x252xf32>
    tpu.vector_store %arg6[%c42, %c0_25], %22 {strides = array<i32>} : memref<150x252xf32, #tpu.memory_space<vmem>>, vector<6x252xf32>,
    %c0_26 = arith.constant 0 : index
    %c0_27 = arith.constant 0 : index
    %c21 = arith.constant 21 : index
    %24 = vector.load %arg1[%c0_26, %c0_27, %c21] : memref<1x6x342xf32, #tpu.memory_space<vmem>>, vector<1x6x252xf32>
    %25 = vector.shape_cast %24 : vector<1x6x252xf32> to vector<6x252xf32>
    %c48 = arith.constant 48 : index
    %c0_28 = arith.constant 0 : index
    %26 = vector.load %arg6[%c48, %c0_28] : memref<150x252xf32, #tpu.memory_space<vmem>>, vector<6x252xf32>
    tpu.vector_store %arg6[%c48, %c0_28], %25 {strides = array<i32>} : memref<150x252xf32, #tpu.memory_space<vmem>>, vector<6x252xf32>,
    %c0_29 = arith.constant 0 : index
    %c0_30 = arith.constant 0 : index
    %c22 = arith.constant 22 : index
    %27 = vector.load %arg1[%c0_29, %c0_30, %c22] : memref<1x6x342xf32, #tpu.memory_space<vmem>>, vector<1x6x252xf32>
    %28 = vector.shape_cast %27 : vector<1x6x252xf32> to vector<6x252xf32>
    %c54 = arith.constant 54 : index
    %c0_31 = arith.constant 0 : index
    %29 = vector.load %arg6[%c54, %c0_31] : memref<150x252xf32, #tpu.memory_space<vmem>>, vector<6x252xf32>
    tpu.vector_store %arg6[%c54, %c0_31], %28 {strides = array<i32>} : memref<150x252xf32, #tpu.memory_space<vmem>>, vector<6x252xf32>,
    %c0_32 = arith.constant 0 : index
    %c0_33 = arith.constant 0 : index
    %c36_34 = arith.constant 36 : index
    %30 = vector.load %arg1[%c0_32, %c0_33, %c36_34] : memref<1x6x342xf32, #tpu.memory_space<vmem>>, vector<1x6x252xf32>
    %31 = vector.shape_cast %30 : vector<1x6x252xf32> to vector<6x252xf32>
    %c60 = arith.constant 60 : index
    %c0_35 = arith.constant 0 : index
    %32 = vector.load %arg6[%c60, %c0_35] : memref<150x252xf32, #tpu.memory_space<vmem>>, vector<6x252xf32>
    tpu.vector_store %arg6[%c60, %c0_35], %31 {strides = array<i32>} : memref<150x252xf32, #tpu.memory_space<vmem>>, vector<6x252xf32>,
    %c0_36 = arith.constant 0 : index
    %c0_37 = arith.constant 0 : index
    %c37 = arith.constant 37 : index
    %33 = vector.load %arg1[%c0_36, %c0_37, %c37] : memref<1x6x342xf32, #tpu.memory_space<vmem>>, vector<1x6x252xf32>
    %34 = vector.shape_cast %33 : vector<1x6x252xf32> to vector<6x252xf32>
    %c66 = arith.constant 66 : index
    %c0_38 = arith.constant 0 : index
    %35 = vector.load %arg6[%c66, %c0_38] : memref<150x252xf32, #tpu.memory_space<vmem>>, vector<6x252xf32>
    tpu.vector_store %arg6[%c66, %c0_38], %34 {strides = array<i32>} : memref<150x252xf32, #tpu.memory_space<vmem>>, vector<6x252xf32>,
    %c0_39 = arith.constant 0 : index
    %c0_40 = arith.constant 0 : index
    %c38 = arith.constant 38 : index
    %36 = vector.load %arg1[%c0_39, %c0_40, %c38] : memref<1x6x342xf32, #tpu.memory_space<vmem>>, vector<1x6x252xf32>
    %37 = vector.shape_cast %36 : vector<1x6x252xf32> to vector<6x252xf32>
    %c72 = arith.constant 72 : index
    %c0_41 = arith.constant 0 : index
    %38 = vector.load %arg6[%c72, %c0_41] : memref<150x252xf32, #tpu.memory_space<vmem>>, vector<6x252xf32>
    tpu.vector_store %arg6[%c72, %c0_41], %37 {strides = array<i32>} : memref<150x252xf32, #tpu.memory_space<vmem>>, vector<6x252xf32>,
    %c0_42 = arith.constant 0 : index
    %c0_43 = arith.constant 0 : index
    %c39 = arith.constant 39 : index
    %39 = vector.load %arg1[%c0_42, %c0_43, %c39] : memref<1x6x342xf32, #tpu.memory_space<vmem>>, vector<1x6x252xf32>
    %40 = vector.shape_cast %39 : vector<1x6x252xf32> to vector<6x252xf32>
    %c78 = arith.constant 78 : index
    %c0_44 = arith.constant 0 : index
    %41 = vector.load %arg6[%c78, %c0_44] : memref<150x252xf32, #tpu.memory_space<vmem>>, vector<6x252xf32>
    tpu.vector_store %arg6[%c78, %c0_44], %40 {strides = array<i32>} : memref<150x252xf32, #tpu.memory_space<vmem>>, vector<6x252xf32>,
    %c0_45 = arith.constant 0 : index
    %c0_46 = arith.constant 0 : index
    %c40 = arith.constant 40 : index
    %42 = vector.load %arg1[%c0_45, %c0_46, %c40] : memref<1x6x342xf32, #tpu.memory_space<vmem>>, vector<1x6x252xf32>
    %43 = vector.shape_cast %42 : vector<1x6x252xf32> to vector<6x252xf32>
    %c84 = arith.constant 84 : index
    %c0_47 = arith.constant 0 : index
    %44 = vector.load %arg6[%c84, %c0_47] : memref<150x252xf32, #tpu.memory_space<vmem>>, vector<6x252xf32>
    tpu.vector_store %arg6[%c84, %c0_47], %43 {strides = array<i32>} : memref<150x252xf32, #tpu.memory_space<vmem>>, vector<6x252xf32>,
    %c0_48 = arith.constant 0 : index
    %c0_49 = arith.constant 0 : index
    %c54_50 = arith.constant 54 : index
    %45 = vector.load %arg1[%c0_48, %c0_49, %c54_50] : memref<1x6x342xf32, #tpu.memory_space<vmem>>, vector<1x6x252xf32>
    %46 = vector.shape_cast %45 : vector<1x6x252xf32> to vector<6x252xf32>
    %c90 = arith.constant 90 : index
    %c0_51 = arith.constant 0 : index
    %47 = vector.load %arg6[%c90, %c0_51] : memref<150x252xf32, #tpu.memory_space<vmem>>, vector<6x252xf32>
    tpu.vector_store %arg6[%c90, %c0_51], %46 {strides = array<i32>} : memref<150x252xf32, #tpu.memory_space<vmem>>, vector<6x252xf32>,
    %c0_52 = arith.constant 0 : index
    %c0_53 = arith.constant 0 : index
    %c55 = arith.constant 55 : index
    %48 = vector.load %arg1[%c0_52, %c0_53, %c55] : memref<1x6x342xf32, #tpu.memory_space<vmem>>, vector<1x6x252xf32>
    %49 = vector.shape_cast %48 : vector<1x6x252xf32> to vector<6x252xf32>
    %c96 = arith.constant 96 : index
    %c0_54 = arith.constant 0 : index
    %50 = vector.load %arg6[%c96, %c0_54] : memref<150x252xf32, #tpu.memory_space<vmem>>, vector<6x252xf32>
    tpu.vector_store %arg6[%c96, %c0_54], %49 {strides = array<i32>} : memref<150x252xf32, #tpu.memory_space<vmem>>, vector<6x252xf32>,
    %c0_55 = arith.constant 0 : index
    %c0_56 = arith.constant 0 : index
    %c56 = arith.constant 56 : index
    %51 = vector.load %arg1[%c0_55, %c0_56, %c56] : memref<1x6x342xf32, #tpu.memory_space<vmem>>, vector<1x6x252xf32>
    %52 = vector.shape_cast %51 : vector<1x6x252xf32> to vector<6x252xf32>
    %c102 = arith.constant 102 : index
    %c0_57 = arith.constant 0 : index
    %53 = vector.load %arg6[%c102, %c0_57] : memref<150x252xf32, #tpu.memory_space<vmem>>, vector<6x252xf32>
    tpu.vector_store %arg6[%c102, %c0_57], %52 {strides = array<i32>} : memref<150x252xf32, #tpu.memory_space<vmem>>, vector<6x252xf32>,
    %c0_58 = arith.constant 0 : index
    %c0_59 = arith.constant 0 : index
    %c57 = arith.constant 57 : index
    %54 = vector.load %arg1[%c0_58, %c0_59, %c57] : memref<1x6x342xf32, #tpu.memory_space<vmem>>, vector<1x6x252xf32>
    %55 = vector.shape_cast %54 : vector<1x6x252xf32> to vector<6x252xf32>
    %c108 = arith.constant 108 : index
    %c0_60 = arith.constant 0 : index
    %56 = vector.load %arg6[%c108, %c0_60] : memref<150x252xf32, #tpu.memory_space<vmem>>, vector<6x252xf32>
    tpu.vector_store %arg6[%c108, %c0_60], %55 {strides = array<i32>} : memref<150x252xf32, #tpu.memory_space<vmem>>, vector<6x252xf32>,
    %c0_61 = arith.constant 0 : index
    %c0_62 = arith.constant 0 : index
    %c58 = arith.constant 58 : index
    %57 = vector.load %arg1[%c0_61, %c0_62, %c58] : memref<1x6x342xf32, #tpu.memory_space<vmem>>, vector<1x6x252xf32>
    %58 = vector.shape_cast %57 : vector<1x6x252xf32> to vector<6x252xf32>
    %c114 = arith.constant 114 : index
    %c0_63 = arith.constant 0 : index
    %59 = vector.load %arg6[%c114, %c0_63] : memref<150x252xf32, #tpu.memory_space<vmem>>, vector<6x252xf32>
    tpu.vector_store %arg6[%c114, %c0_63], %58 {strides = array<i32>} : memref<150x252xf32, #tpu.memory_space<vmem>>, vector<6x252xf32>,
    %c0_64 = arith.constant 0 : index
    %c0_65 = arith.constant 0 : index
    %c72_66 = arith.constant 72 : index
    %60 = vector.load %arg1[%c0_64, %c0_65, %c72_66] : memref<1x6x342xf32, #tpu.memory_space<vmem>>, vector<1x6x252xf32>
    %61 = vector.shape_cast %60 : vector<1x6x252xf32> to vector<6x252xf32>
    %c120 = arith.constant 120 : index
    %c0_67 = arith.constant 0 : index
    %62 = vector.load %arg6[%c120, %c0_67] : memref<150x252xf32, #tpu.memory_space<vmem>>, vector<6x252xf32>
    tpu.vector_store %arg6[%c120, %c0_67], %61 {strides = array<i32>} : memref<150x252xf32, #tpu.memory_space<vmem>>, vector<6x252xf32>,
    %c0_68 = arith.constant 0 : index
    %c0_69 = arith.constant 0 : index
    %c73 = arith.constant 73 : index
    %63 = vector.load %arg1[%c0_68, %c0_69, %c73] : memref<1x6x342xf32, #tpu.memory_space<vmem>>, vector<1x6x252xf32>
    %64 = vector.shape_cast %63 : vector<1x6x252xf32> to vector<6x252xf32>
    %c126 = arith.constant 126 : index
    %c0_70 = arith.constant 0 : index
    %65 = vector.load %arg6[%c126, %c0_70] : memref<150x252xf32, #tpu.memory_space<vmem>>, vector<6x252xf32>
    tpu.vector_store %arg6[%c126, %c0_70], %64 {strides = array<i32>} : memref<150x252xf32, #tpu.memory_space<vmem>>, vector<6x252xf32>,
    %c0_71 = arith.constant 0 : index
    %c0_72 = arith.constant 0 : index
    %c74 = arith.constant 74 : index
    %66 = vector.load %arg1[%c0_71, %c0_72, %c74] : memref<1x6x342xf32, #tpu.memory_space<vmem>>, vector<1x6x252xf32>
    %67 = vector.shape_cast %66 : vector<1x6x252xf32> to vector<6x252xf32>
    %c132 = arith.constant 132 : index
    %c0_73 = arith.constant 0 : index
    %68 = vector.load %arg6[%c132, %c0_73] : memref<150x252xf32, #tpu.memory_space<vmem>>, vector<6x252xf32>
    tpu.vector_store %arg6[%c132, %c0_73], %67 {strides = array<i32>} : memref<150x252xf32, #tpu.memory_space<vmem>>, vector<6x252xf32>,
    %c0_74 = arith.constant 0 : index
    %c0_75 = arith.constant 0 : index
    %c75 = arith.constant 75 : index
    %69 = vector.load %arg1[%c0_74, %c0_75, %c75] : memref<1x6x342xf32, #tpu.memory_space<vmem>>, vector<1x6x252xf32>
    %70 = vector.shape_cast %69 : vector<1x6x252xf32> to vector<6x252xf32>
    %c138 = arith.constant 138 : index
    %c0_76 = arith.constant 0 : index
    %71 = vector.load %arg6[%c138, %c0_76] : memref<150x252xf32, #tpu.memory_space<vmem>>, vector<6x252xf32>
    tpu.vector_store %arg6[%c138, %c0_76], %70 {strides = array<i32>} : memref<150x252xf32, #tpu.memory_space<vmem>>, vector<6x252xf32>,
    %c0_77 = arith.constant 0 : index
    %c0_78 = arith.constant 0 : index
    %c76 = arith.constant 76 : index
    %72 = vector.load %arg1[%c0_77, %c0_78, %c76] : memref<1x6x342xf32, #tpu.memory_space<vmem>>, vector<1x6x252xf32>
    %73 = vector.shape_cast %72 : vector<1x6x252xf32> to vector<6x252xf32>
    %c144 = arith.constant 144 : index
    %c0_79 = arith.constant 0 : index
    %74 = vector.load %arg6[%c144, %c0_79] : memref<150x252xf32, #tpu.memory_space<vmem>>, vector<6x252xf32>
    tpu.vector_store %arg6[%c144, %c0_79], %73 {strides = array<i32>} : memref<150x252xf32, #tpu.memory_space<vmem>>, vector<6x252xf32>,
    %c0_80 = arith.constant 0 : index
    %c0_81 = arith.constant 0 : index
    %75 = vector.load %arg6[%c0_80, %c0_81] : memref<150x252xf32, #tpu.memory_space<vmem>>, vector<150x252xf32>
    %76 = arith.truncf %75 : vector<150x252xf32> to vector<150x252xbf16>
    %c0_82 = arith.constant 0 : index
    %c0_83 = arith.constant 0 : index
    %77 = vector.load %arg2[%c0_82, %c0_83] : memref<12x150xbf16, #tpu.memory_space<vmem>>, vector<12x150xbf16>
    %cst = arith.constant dense<0.000000e+00> : vector<12x252xf32>
    %78 = tpu.matmul %77, %76, %cst {dimension_numbers = #tpu.dot_dimension_numbers<[1], [0], [0], [1], [0, 0, 1, 1], [], []>} : vector<12x150xbf16>, vector<150x252xbf16>, vector<12x252xf32> -> vector<12x252xf32>
    %c0_84 = arith.constant 0 : index
    %c0_85 = arith.constant 0 : index
    %79 = vector.load %arg3[%c0_84, %c0_85] : memref<12x1xf32, #tpu.memory_space<vmem>>, vector<12x1xf32>
    %80 = vector.broadcast %79 : vector<12x1xf32> to vector<12x252xf32>
    %81 = arith.addf %78, %80 : vector<12x252xf32>
    %cst_86 = arith.constant 0.000000e+00 : f32
    %82 = vector.broadcast %cst_86 : f32 to vector<12x252xf32>
    %83 = arith.maximumf %81, %82 : vector<12x252xf32>
    %c0_87 = arith.constant 0 : index
    %c0_88 = arith.constant 0 : index
    %84 = vector.load %arg7[%c0_87, %c0_88] : memref<12x252xf32, #tpu.memory_space<vmem>>, vector<12x252xf32>
    tpu.vector_store %arg7[%c0_87, %c0_88], %83 {strides = array<i32>} : memref<12x252xf32, #tpu.memory_space<vmem>>, vector<12x252xf32>,
    %c0_89 = arith.constant 0 : index
    %c0_90 = arith.constant 0 : index
    %85 = vector.load %arg7[%c0_89, %c0_90] : memref<12x252xf32, #tpu.memory_space<vmem>>, vector<12x233xf32>
    %c0_91 = arith.constant 0 : index
    %c1_92 = arith.constant 1 : index
    %86 = vector.load %arg7[%c0_91, %c1_92] : memref<12x252xf32, #tpu.memory_space<vmem>>, vector<12x233xf32>
    %87 = arith.maximumf %85, %86 : vector<12x233xf32>
    %c0_93 = arith.constant 0 : index
    %c18_94 = arith.constant 18 : index
    %88 = vector.load %arg7[%c0_93, %c18_94] : memref<12x252xf32, #tpu.memory_space<vmem>>, vector<12x233xf32>
    %c0_95 = arith.constant 0 : index
    %c19_96 = arith.constant 19 : index
    %89 = vector.load %arg7[%c0_95, %c19_96] : memref<12x252xf32, #tpu.memory_space<vmem>>, vector<12x233xf32>
    %90 = arith.maximumf %88, %89 : vector<12x233xf32>
    %91 = arith.maximumf %87, %90 : vector<12x233xf32>
    %c0_97 = arith.constant 0 : index
    %c0_98 = arith.constant 0 : index
    %92 = vector.load %arg4[%c0_97, %c0_98] : memref<233x49xf32, #tpu.memory_space<vmem>>, vector<233x49xf32>
    %cst_99 = arith.constant dense<0.000000e+00> : vector<12x49xf32>
    %93 = tpu.matmul %91, %92, %cst_99 {dimension_numbers = #tpu.dot_dimension_numbers<[1], [0], [0], [1], [0, 0, 1, 1], [], []>} : vector<12x233xf32>, vector<233x49xf32>, vector<12x49xf32> -> vector<12x49xf32>
    %c0_100 = arith.constant 0 : index
    %c0_101 = arith.constant 0 : index
    %c0_102 = arith.constant 0 : index
    %94 = vector.load %arg5[%c0_100, %c0_101, %c0_102] : memref<1x12x49xf32, #tpu.memory_space<vmem>>, vector<1x12x49xf32>
    %95 = vector.shape_cast %94 : vector<1x12x49xf32> to vector<12x49xf32>
    %96 = vector.shape_cast %93 : vector<12x49xf32> to vector<1x12x49xf32>
    tpu.vector_store %arg5[%c0_100, %c0_101, %c0_102], %96 {strides = array<i32>} : memref<1x12x49xf32, #tpu.memory_space<vmem>>, vector<1x12x49xf32>,
    return
  }
  func.func @transform_0(%arg0: i32) -> (i32, i32, i32) {
    %c0_i32 = arith.constant 0 : i32
    %c0_i32_0 = arith.constant 0 : i32
    %c0_i32_1 = arith.constant 0 : i32
    return %arg0, %c0_i32, %c0_i32_0 : i32, i32, i32
  }
  func.func @transform_1(%arg0: i32) -> (i32, i32) {
    %c0_i32 = arith.constant 0 : i32
    %c0_i32_0 = arith.constant 0 : i32
    %c0_i32_1 = arith.constant 0 : i32
    return %c0_i32, %c0_i32_0 : i32, i32
  }
  func.func @transform_2(%arg0: i32) -> (i32, i32) {
    %c0_i32 = arith.constant 0 : i32
    %c0_i32_0 = arith.constant 0 : i32
    %c0_i32_1 = arith.constant 0 : i32
    return %c0_i32, %c0_i32_0 : i32, i32
  }
  func.func @transform_3(%arg0: i32) -> (i32, i32) {
    %c0_i32 = arith.constant 0 : i32
    %c0_i32_0 = arith.constant 0 : i32
    %c0_i32_1 = arith.constant 0 : i32
    return %c0_i32, %c0_i32_0 : i32, i32
  }
  func.func @transform_4(%arg0: i32) -> (i32, i32, i32) {
    %c0_i32 = arith.constant 0 : i32
    %c0_i32_0 = arith.constant 0 : i32
    %c0_i32_1 = arith.constant 0 : i32
    return %arg0, %c0_i32, %c0_i32_0 : i32, i32, i32
  }
}

module attributes {stable_mosaic.version = 11 : i64} {
  func.func @_conv_relu_pool_kernel(%arg0: i32, %arg1: memref<1x12x132xf32, #tpu.memory_space<vmem>>, %arg2: memref<24x300xbf16, #tpu.memory_space<vmem>>, %arg3: memref<24x1xf32, #tpu.memory_space<vmem>>, %arg4: memref<65x9xf32, #tpu.memory_space<vmem>>, %arg5: memref<1x24x9xf32, #tpu.memory_space<vmem>>, %arg6: memref<300x77xf32, #tpu.memory_space<vmem>>, %arg7: memref<24x77xf32, #tpu.memory_space<vmem>>) attributes {dimension_semantics = [#tpu.dimension_semantics<parallel>], iteration_bounds = array<i64: 2>, scalar_prefetch = 0 : i64, scratch_operands = 2 : i64, tpu.core_type = #tpu.core_type<tc>, window_params = [{transform_indices = @transform_0, window_bounds = array<i64: 1, 12, 132>}, {pipeline_mode = #tpu.pipeline_mode<synchronous>, transform_indices = @transform_1, window_bounds = array<i64: 24, 300>}, {pipeline_mode = #tpu.pipeline_mode<synchronous>, transform_indices = @transform_2, window_bounds = array<i64: 24, 1>}, {pipeline_mode = #tpu.pipeline_mode<synchronous>, transform_indices = @transform_3, window_bounds = array<i64: 65, 9>}, {transform_indices = @transform_4, window_bounds = array<i64: 1, 24, 9>}]} {
    %c0 = arith.constant 0 : index
    %c0_0 = arith.constant 0 : index
    %c0_1 = arith.constant 0 : index
    %0 = vector.load %arg1[%c0, %c0_0, %c0_1] : memref<1x12x132xf32, #tpu.memory_space<vmem>>, vector<1x12x77xf32>
    %1 = vector.shape_cast %0 : vector<1x12x77xf32> to vector<12x77xf32>
    %c0_2 = arith.constant 0 : index
    %c0_3 = arith.constant 0 : index
    %2 = vector.load %arg6[%c0_2, %c0_3] : memref<300x77xf32, #tpu.memory_space<vmem>>, vector<12x77xf32>
    tpu.vector_store %arg6[%c0_2, %c0_3], %1 {strides = array<i32>} : memref<300x77xf32, #tpu.memory_space<vmem>>, vector<12x77xf32>,
    %c0_4 = arith.constant 0 : index
    %c0_5 = arith.constant 0 : index
    %c1 = arith.constant 1 : index
    %3 = vector.load %arg1[%c0_4, %c0_5, %c1] : memref<1x12x132xf32, #tpu.memory_space<vmem>>, vector<1x12x77xf32>
    %4 = vector.shape_cast %3 : vector<1x12x77xf32> to vector<12x77xf32>
    %c12 = arith.constant 12 : index
    %c0_6 = arith.constant 0 : index
    %5 = vector.load %arg6[%c12, %c0_6] : memref<300x77xf32, #tpu.memory_space<vmem>>, vector<12x77xf32>
    tpu.vector_store %arg6[%c12, %c0_6], %4 {strides = array<i32>} : memref<300x77xf32, #tpu.memory_space<vmem>>, vector<12x77xf32>,
    %c0_7 = arith.constant 0 : index
    %c0_8 = arith.constant 0 : index
    %c2 = arith.constant 2 : index
    %6 = vector.load %arg1[%c0_7, %c0_8, %c2] : memref<1x12x132xf32, #tpu.memory_space<vmem>>, vector<1x12x77xf32>
    %7 = vector.shape_cast %6 : vector<1x12x77xf32> to vector<12x77xf32>
    %c24 = arith.constant 24 : index
    %c0_9 = arith.constant 0 : index
    %8 = vector.load %arg6[%c24, %c0_9] : memref<300x77xf32, #tpu.memory_space<vmem>>, vector<12x77xf32>
    tpu.vector_store %arg6[%c24, %c0_9], %7 {strides = array<i32>} : memref<300x77xf32, #tpu.memory_space<vmem>>, vector<12x77xf32>,
    %c0_10 = arith.constant 0 : index
    %c0_11 = arith.constant 0 : index
    %c3 = arith.constant 3 : index
    %9 = vector.load %arg1[%c0_10, %c0_11, %c3] : memref<1x12x132xf32, #tpu.memory_space<vmem>>, vector<1x12x77xf32>
    %10 = vector.shape_cast %9 : vector<1x12x77xf32> to vector<12x77xf32>
    %c36 = arith.constant 36 : index
    %c0_12 = arith.constant 0 : index
    %11 = vector.load %arg6[%c36, %c0_12] : memref<300x77xf32, #tpu.memory_space<vmem>>, vector<12x77xf32>
    tpu.vector_store %arg6[%c36, %c0_12], %10 {strides = array<i32>} : memref<300x77xf32, #tpu.memory_space<vmem>>, vector<12x77xf32>,
    %c0_13 = arith.constant 0 : index
    %c0_14 = arith.constant 0 : index
    %c4 = arith.constant 4 : index
    %12 = vector.load %arg1[%c0_13, %c0_14, %c4] : memref<1x12x132xf32, #tpu.memory_space<vmem>>, vector<1x12x77xf32>
    %13 = vector.shape_cast %12 : vector<1x12x77xf32> to vector<12x77xf32>
    %c48 = arith.constant 48 : index
    %c0_15 = arith.constant 0 : index
    %14 = vector.load %arg6[%c48, %c0_15] : memref<300x77xf32, #tpu.memory_space<vmem>>, vector<12x77xf32>
    tpu.vector_store %arg6[%c48, %c0_15], %13 {strides = array<i32>} : memref<300x77xf32, #tpu.memory_space<vmem>>, vector<12x77xf32>,
    %c0_16 = arith.constant 0 : index
    %c0_17 = arith.constant 0 : index
    %c11 = arith.constant 11 : index
    %15 = vector.load %arg1[%c0_16, %c0_17, %c11] : memref<1x12x132xf32, #tpu.memory_space<vmem>>, vector<1x12x77xf32>
    %16 = vector.shape_cast %15 : vector<1x12x77xf32> to vector<12x77xf32>
    %c60 = arith.constant 60 : index
    %c0_18 = arith.constant 0 : index
    %17 = vector.load %arg6[%c60, %c0_18] : memref<300x77xf32, #tpu.memory_space<vmem>>, vector<12x77xf32>
    tpu.vector_store %arg6[%c60, %c0_18], %16 {strides = array<i32>} : memref<300x77xf32, #tpu.memory_space<vmem>>, vector<12x77xf32>,
    %c0_19 = arith.constant 0 : index
    %c0_20 = arith.constant 0 : index
    %c12_21 = arith.constant 12 : index
    %18 = vector.load %arg1[%c0_19, %c0_20, %c12_21] : memref<1x12x132xf32, #tpu.memory_space<vmem>>, vector<1x12x77xf32>
    %19 = vector.shape_cast %18 : vector<1x12x77xf32> to vector<12x77xf32>
    %c72 = arith.constant 72 : index
    %c0_22 = arith.constant 0 : index
    %20 = vector.load %arg6[%c72, %c0_22] : memref<300x77xf32, #tpu.memory_space<vmem>>, vector<12x77xf32>
    tpu.vector_store %arg6[%c72, %c0_22], %19 {strides = array<i32>} : memref<300x77xf32, #tpu.memory_space<vmem>>, vector<12x77xf32>,
    %c0_23 = arith.constant 0 : index
    %c0_24 = arith.constant 0 : index
    %c13 = arith.constant 13 : index
    %21 = vector.load %arg1[%c0_23, %c0_24, %c13] : memref<1x12x132xf32, #tpu.memory_space<vmem>>, vector<1x12x77xf32>
    %22 = vector.shape_cast %21 : vector<1x12x77xf32> to vector<12x77xf32>
    %c84 = arith.constant 84 : index
    %c0_25 = arith.constant 0 : index
    %23 = vector.load %arg6[%c84, %c0_25] : memref<300x77xf32, #tpu.memory_space<vmem>>, vector<12x77xf32>
    tpu.vector_store %arg6[%c84, %c0_25], %22 {strides = array<i32>} : memref<300x77xf32, #tpu.memory_space<vmem>>, vector<12x77xf32>,
    %c0_26 = arith.constant 0 : index
    %c0_27 = arith.constant 0 : index
    %c14 = arith.constant 14 : index
    %24 = vector.load %arg1[%c0_26, %c0_27, %c14] : memref<1x12x132xf32, #tpu.memory_space<vmem>>, vector<1x12x77xf32>
    %25 = vector.shape_cast %24 : vector<1x12x77xf32> to vector<12x77xf32>
    %c96 = arith.constant 96 : index
    %c0_28 = arith.constant 0 : index
    %26 = vector.load %arg6[%c96, %c0_28] : memref<300x77xf32, #tpu.memory_space<vmem>>, vector<12x77xf32>
    tpu.vector_store %arg6[%c96, %c0_28], %25 {strides = array<i32>} : memref<300x77xf32, #tpu.memory_space<vmem>>, vector<12x77xf32>,
    %c0_29 = arith.constant 0 : index
    %c0_30 = arith.constant 0 : index
    %c15 = arith.constant 15 : index
    %27 = vector.load %arg1[%c0_29, %c0_30, %c15] : memref<1x12x132xf32, #tpu.memory_space<vmem>>, vector<1x12x77xf32>
    %28 = vector.shape_cast %27 : vector<1x12x77xf32> to vector<12x77xf32>
    %c108 = arith.constant 108 : index
    %c0_31 = arith.constant 0 : index
    %29 = vector.load %arg6[%c108, %c0_31] : memref<300x77xf32, #tpu.memory_space<vmem>>, vector<12x77xf32>
    tpu.vector_store %arg6[%c108, %c0_31], %28 {strides = array<i32>} : memref<300x77xf32, #tpu.memory_space<vmem>>, vector<12x77xf32>,
    %c0_32 = arith.constant 0 : index
    %c0_33 = arith.constant 0 : index
    %c22 = arith.constant 22 : index
    %30 = vector.load %arg1[%c0_32, %c0_33, %c22] : memref<1x12x132xf32, #tpu.memory_space<vmem>>, vector<1x12x77xf32>
    %31 = vector.shape_cast %30 : vector<1x12x77xf32> to vector<12x77xf32>
    %c120 = arith.constant 120 : index
    %c0_34 = arith.constant 0 : index
    %32 = vector.load %arg6[%c120, %c0_34] : memref<300x77xf32, #tpu.memory_space<vmem>>, vector<12x77xf32>
    tpu.vector_store %arg6[%c120, %c0_34], %31 {strides = array<i32>} : memref<300x77xf32, #tpu.memory_space<vmem>>, vector<12x77xf32>,
    %c0_35 = arith.constant 0 : index
    %c0_36 = arith.constant 0 : index
    %c23 = arith.constant 23 : index
    %33 = vector.load %arg1[%c0_35, %c0_36, %c23] : memref<1x12x132xf32, #tpu.memory_space<vmem>>, vector<1x12x77xf32>
    %34 = vector.shape_cast %33 : vector<1x12x77xf32> to vector<12x77xf32>
    %c132 = arith.constant 132 : index
    %c0_37 = arith.constant 0 : index
    %35 = vector.load %arg6[%c132, %c0_37] : memref<300x77xf32, #tpu.memory_space<vmem>>, vector<12x77xf32>
    tpu.vector_store %arg6[%c132, %c0_37], %34 {strides = array<i32>} : memref<300x77xf32, #tpu.memory_space<vmem>>, vector<12x77xf32>,
    %c0_38 = arith.constant 0 : index
    %c0_39 = arith.constant 0 : index
    %c24_40 = arith.constant 24 : index
    %36 = vector.load %arg1[%c0_38, %c0_39, %c24_40] : memref<1x12x132xf32, #tpu.memory_space<vmem>>, vector<1x12x77xf32>
    %37 = vector.shape_cast %36 : vector<1x12x77xf32> to vector<12x77xf32>
    %c144 = arith.constant 144 : index
    %c0_41 = arith.constant 0 : index
    %38 = vector.load %arg6[%c144, %c0_41] : memref<300x77xf32, #tpu.memory_space<vmem>>, vector<12x77xf32>
    tpu.vector_store %arg6[%c144, %c0_41], %37 {strides = array<i32>} : memref<300x77xf32, #tpu.memory_space<vmem>>, vector<12x77xf32>,
    %c0_42 = arith.constant 0 : index
    %c0_43 = arith.constant 0 : index
    %c25 = arith.constant 25 : index
    %39 = vector.load %arg1[%c0_42, %c0_43, %c25] : memref<1x12x132xf32, #tpu.memory_space<vmem>>, vector<1x12x77xf32>
    %40 = vector.shape_cast %39 : vector<1x12x77xf32> to vector<12x77xf32>
    %c156 = arith.constant 156 : index
    %c0_44 = arith.constant 0 : index
    %41 = vector.load %arg6[%c156, %c0_44] : memref<300x77xf32, #tpu.memory_space<vmem>>, vector<12x77xf32>
    tpu.vector_store %arg6[%c156, %c0_44], %40 {strides = array<i32>} : memref<300x77xf32, #tpu.memory_space<vmem>>, vector<12x77xf32>,
    %c0_45 = arith.constant 0 : index
    %c0_46 = arith.constant 0 : index
    %c26 = arith.constant 26 : index
    %42 = vector.load %arg1[%c0_45, %c0_46, %c26] : memref<1x12x132xf32, #tpu.memory_space<vmem>>, vector<1x12x77xf32>
    %43 = vector.shape_cast %42 : vector<1x12x77xf32> to vector<12x77xf32>
    %c168 = arith.constant 168 : index
    %c0_47 = arith.constant 0 : index
    %44 = vector.load %arg6[%c168, %c0_47] : memref<300x77xf32, #tpu.memory_space<vmem>>, vector<12x77xf32>
    tpu.vector_store %arg6[%c168, %c0_47], %43 {strides = array<i32>} : memref<300x77xf32, #tpu.memory_space<vmem>>, vector<12x77xf32>,
    %c0_48 = arith.constant 0 : index
    %c0_49 = arith.constant 0 : index
    %c33 = arith.constant 33 : index
    %45 = vector.load %arg1[%c0_48, %c0_49, %c33] : memref<1x12x132xf32, #tpu.memory_space<vmem>>, vector<1x12x77xf32>
    %46 = vector.shape_cast %45 : vector<1x12x77xf32> to vector<12x77xf32>
    %c180 = arith.constant 180 : index
    %c0_50 = arith.constant 0 : index
    %47 = vector.load %arg6[%c180, %c0_50] : memref<300x77xf32, #tpu.memory_space<vmem>>, vector<12x77xf32>
    tpu.vector_store %arg6[%c180, %c0_50], %46 {strides = array<i32>} : memref<300x77xf32, #tpu.memory_space<vmem>>, vector<12x77xf32>,
    %c0_51 = arith.constant 0 : index
    %c0_52 = arith.constant 0 : index
    %c34 = arith.constant 34 : index
    %48 = vector.load %arg1[%c0_51, %c0_52, %c34] : memref<1x12x132xf32, #tpu.memory_space<vmem>>, vector<1x12x77xf32>
    %49 = vector.shape_cast %48 : vector<1x12x77xf32> to vector<12x77xf32>
    %c192 = arith.constant 192 : index
    %c0_53 = arith.constant 0 : index
    %50 = vector.load %arg6[%c192, %c0_53] : memref<300x77xf32, #tpu.memory_space<vmem>>, vector<12x77xf32>
    tpu.vector_store %arg6[%c192, %c0_53], %49 {strides = array<i32>} : memref<300x77xf32, #tpu.memory_space<vmem>>, vector<12x77xf32>,
    %c0_54 = arith.constant 0 : index
    %c0_55 = arith.constant 0 : index
    %c35 = arith.constant 35 : index
    %51 = vector.load %arg1[%c0_54, %c0_55, %c35] : memref<1x12x132xf32, #tpu.memory_space<vmem>>, vector<1x12x77xf32>
    %52 = vector.shape_cast %51 : vector<1x12x77xf32> to vector<12x77xf32>
    %c204 = arith.constant 204 : index
    %c0_56 = arith.constant 0 : index
    %53 = vector.load %arg6[%c204, %c0_56] : memref<300x77xf32, #tpu.memory_space<vmem>>, vector<12x77xf32>
    tpu.vector_store %arg6[%c204, %c0_56], %52 {strides = array<i32>} : memref<300x77xf32, #tpu.memory_space<vmem>>, vector<12x77xf32>,
    %c0_57 = arith.constant 0 : index
    %c0_58 = arith.constant 0 : index
    %c36_59 = arith.constant 36 : index
    %54 = vector.load %arg1[%c0_57, %c0_58, %c36_59] : memref<1x12x132xf32, #tpu.memory_space<vmem>>, vector<1x12x77xf32>
    %55 = vector.shape_cast %54 : vector<1x12x77xf32> to vector<12x77xf32>
    %c216 = arith.constant 216 : index
    %c0_60 = arith.constant 0 : index
    %56 = vector.load %arg6[%c216, %c0_60] : memref<300x77xf32, #tpu.memory_space<vmem>>, vector<12x77xf32>
    tpu.vector_store %arg6[%c216, %c0_60], %55 {strides = array<i32>} : memref<300x77xf32, #tpu.memory_space<vmem>>, vector<12x77xf32>,
    %c0_61 = arith.constant 0 : index
    %c0_62 = arith.constant 0 : index
    %c37 = arith.constant 37 : index
    %57 = vector.load %arg1[%c0_61, %c0_62, %c37] : memref<1x12x132xf32, #tpu.memory_space<vmem>>, vector<1x12x77xf32>
    %58 = vector.shape_cast %57 : vector<1x12x77xf32> to vector<12x77xf32>
    %c228 = arith.constant 228 : index
    %c0_63 = arith.constant 0 : index
    %59 = vector.load %arg6[%c228, %c0_63] : memref<300x77xf32, #tpu.memory_space<vmem>>, vector<12x77xf32>
    tpu.vector_store %arg6[%c228, %c0_63], %58 {strides = array<i32>} : memref<300x77xf32, #tpu.memory_space<vmem>>, vector<12x77xf32>,
    %c0_64 = arith.constant 0 : index
    %c0_65 = arith.constant 0 : index
    %c44 = arith.constant 44 : index
    %60 = vector.load %arg1[%c0_64, %c0_65, %c44] : memref<1x12x132xf32, #tpu.memory_space<vmem>>, vector<1x12x77xf32>
    %61 = vector.shape_cast %60 : vector<1x12x77xf32> to vector<12x77xf32>
    %c240 = arith.constant 240 : index
    %c0_66 = arith.constant 0 : index
    %62 = vector.load %arg6[%c240, %c0_66] : memref<300x77xf32, #tpu.memory_space<vmem>>, vector<12x77xf32>
    tpu.vector_store %arg6[%c240, %c0_66], %61 {strides = array<i32>} : memref<300x77xf32, #tpu.memory_space<vmem>>, vector<12x77xf32>,
    %c0_67 = arith.constant 0 : index
    %c0_68 = arith.constant 0 : index
    %c45 = arith.constant 45 : index
    %63 = vector.load %arg1[%c0_67, %c0_68, %c45] : memref<1x12x132xf32, #tpu.memory_space<vmem>>, vector<1x12x77xf32>
    %64 = vector.shape_cast %63 : vector<1x12x77xf32> to vector<12x77xf32>
    %c252 = arith.constant 252 : index
    %c0_69 = arith.constant 0 : index
    %65 = vector.load %arg6[%c252, %c0_69] : memref<300x77xf32, #tpu.memory_space<vmem>>, vector<12x77xf32>
    tpu.vector_store %arg6[%c252, %c0_69], %64 {strides = array<i32>} : memref<300x77xf32, #tpu.memory_space<vmem>>, vector<12x77xf32>,
    %c0_70 = arith.constant 0 : index
    %c0_71 = arith.constant 0 : index
    %c46 = arith.constant 46 : index
    %66 = vector.load %arg1[%c0_70, %c0_71, %c46] : memref<1x12x132xf32, #tpu.memory_space<vmem>>, vector<1x12x77xf32>
    %67 = vector.shape_cast %66 : vector<1x12x77xf32> to vector<12x77xf32>
    %c264 = arith.constant 264 : index
    %c0_72 = arith.constant 0 : index
    %68 = vector.load %arg6[%c264, %c0_72] : memref<300x77xf32, #tpu.memory_space<vmem>>, vector<12x77xf32>
    tpu.vector_store %arg6[%c264, %c0_72], %67 {strides = array<i32>} : memref<300x77xf32, #tpu.memory_space<vmem>>, vector<12x77xf32>,
    %c0_73 = arith.constant 0 : index
    %c0_74 = arith.constant 0 : index
    %c47 = arith.constant 47 : index
    %69 = vector.load %arg1[%c0_73, %c0_74, %c47] : memref<1x12x132xf32, #tpu.memory_space<vmem>>, vector<1x12x77xf32>
    %70 = vector.shape_cast %69 : vector<1x12x77xf32> to vector<12x77xf32>
    %c276 = arith.constant 276 : index
    %c0_75 = arith.constant 0 : index
    %71 = vector.load %arg6[%c276, %c0_75] : memref<300x77xf32, #tpu.memory_space<vmem>>, vector<12x77xf32>
    tpu.vector_store %arg6[%c276, %c0_75], %70 {strides = array<i32>} : memref<300x77xf32, #tpu.memory_space<vmem>>, vector<12x77xf32>,
    %c0_76 = arith.constant 0 : index
    %c0_77 = arith.constant 0 : index
    %c48_78 = arith.constant 48 : index
    %72 = vector.load %arg1[%c0_76, %c0_77, %c48_78] : memref<1x12x132xf32, #tpu.memory_space<vmem>>, vector<1x12x77xf32>
    %73 = vector.shape_cast %72 : vector<1x12x77xf32> to vector<12x77xf32>
    %c288 = arith.constant 288 : index
    %c0_79 = arith.constant 0 : index
    %74 = vector.load %arg6[%c288, %c0_79] : memref<300x77xf32, #tpu.memory_space<vmem>>, vector<12x77xf32>
    tpu.vector_store %arg6[%c288, %c0_79], %73 {strides = array<i32>} : memref<300x77xf32, #tpu.memory_space<vmem>>, vector<12x77xf32>,
    %c0_80 = arith.constant 0 : index
    %c0_81 = arith.constant 0 : index
    %75 = vector.load %arg6[%c0_80, %c0_81] : memref<300x77xf32, #tpu.memory_space<vmem>>, vector<300x77xf32>
    %76 = arith.truncf %75 : vector<300x77xf32> to vector<300x77xbf16>
    %c0_82 = arith.constant 0 : index
    %c0_83 = arith.constant 0 : index
    %77 = vector.load %arg2[%c0_82, %c0_83] : memref<24x300xbf16, #tpu.memory_space<vmem>>, vector<24x300xbf16>
    %cst = arith.constant dense<0.000000e+00> : vector<24x77xf32>
    %78 = tpu.matmul %77, %76, %cst {dimension_numbers = #tpu.dot_dimension_numbers<[1], [0], [0], [1], [0, 0, 1, 1], [], []>} : vector<24x300xbf16>, vector<300x77xbf16>, vector<24x77xf32> -> vector<24x77xf32>
    %c0_84 = arith.constant 0 : index
    %c0_85 = arith.constant 0 : index
    %79 = vector.load %arg3[%c0_84, %c0_85] : memref<24x1xf32, #tpu.memory_space<vmem>>, vector<24x1xf32>
    %80 = vector.broadcast %79 : vector<24x1xf32> to vector<24x77xf32>
    %81 = arith.addf %78, %80 : vector<24x77xf32>
    %cst_86 = arith.constant 0.000000e+00 : f32
    %82 = vector.broadcast %cst_86 : f32 to vector<24x77xf32>
    %83 = arith.maximumf %81, %82 : vector<24x77xf32>
    %c0_87 = arith.constant 0 : index
    %c0_88 = arith.constant 0 : index
    %84 = vector.load %arg7[%c0_87, %c0_88] : memref<24x77xf32, #tpu.memory_space<vmem>>, vector<24x77xf32>
    tpu.vector_store %arg7[%c0_87, %c0_88], %83 {strides = array<i32>} : memref<24x77xf32, #tpu.memory_space<vmem>>, vector<24x77xf32>,
    %c0_89 = arith.constant 0 : index
    %c0_90 = arith.constant 0 : index
    %85 = vector.load %arg7[%c0_89, %c0_90] : memref<24x77xf32, #tpu.memory_space<vmem>>, vector<24x65xf32>
    %c0_91 = arith.constant 0 : index
    %c1_92 = arith.constant 1 : index
    %86 = vector.load %arg7[%c0_91, %c1_92] : memref<24x77xf32, #tpu.memory_space<vmem>>, vector<24x65xf32>
    %87 = arith.maximumf %85, %86 : vector<24x65xf32>
    %c0_93 = arith.constant 0 : index
    %c11_94 = arith.constant 11 : index
    %88 = vector.load %arg7[%c0_93, %c11_94] : memref<24x77xf32, #tpu.memory_space<vmem>>, vector<24x65xf32>
    %c0_95 = arith.constant 0 : index
    %c12_96 = arith.constant 12 : index
    %89 = vector.load %arg7[%c0_95, %c12_96] : memref<24x77xf32, #tpu.memory_space<vmem>>, vector<24x65xf32>
    %90 = arith.maximumf %88, %89 : vector<24x65xf32>
    %91 = arith.maximumf %87, %90 : vector<24x65xf32>
    %c0_97 = arith.constant 0 : index
    %c0_98 = arith.constant 0 : index
    %92 = vector.load %arg4[%c0_97, %c0_98] : memref<65x9xf32, #tpu.memory_space<vmem>>, vector<65x9xf32>
    %cst_99 = arith.constant dense<0.000000e+00> : vector<24x9xf32>
    %93 = tpu.matmul %91, %92, %cst_99 {dimension_numbers = #tpu.dot_dimension_numbers<[1], [0], [0], [1], [0, 0, 1, 1], [], []>} : vector<24x65xf32>, vector<65x9xf32>, vector<24x9xf32> -> vector<24x9xf32>
    %c0_100 = arith.constant 0 : index
    %c0_101 = arith.constant 0 : index
    %c0_102 = arith.constant 0 : index
    %94 = vector.load %arg5[%c0_100, %c0_101, %c0_102] : memref<1x24x9xf32, #tpu.memory_space<vmem>>, vector<1x24x9xf32>
    %95 = vector.shape_cast %94 : vector<1x24x9xf32> to vector<24x9xf32>
    %96 = vector.shape_cast %93 : vector<24x9xf32> to vector<1x24x9xf32>
    tpu.vector_store %arg5[%c0_100, %c0_101, %c0_102], %96 {strides = array<i32>} : memref<1x24x9xf32, #tpu.memory_space<vmem>>, vector<1x24x9xf32>,
    return
  }
  func.func @transform_0(%arg0: i32) -> (i32, i32, i32) {
    %c0_i32 = arith.constant 0 : i32
    %c0_i32_0 = arith.constant 0 : i32
    %c0_i32_1 = arith.constant 0 : i32
    return %arg0, %c0_i32, %c0_i32_0 : i32, i32, i32
  }
  func.func @transform_1(%arg0: i32) -> (i32, i32) {
    %c0_i32 = arith.constant 0 : i32
    %c0_i32_0 = arith.constant 0 : i32
    %c0_i32_1 = arith.constant 0 : i32
    return %c0_i32, %c0_i32_0 : i32, i32
  }
  func.func @transform_2(%arg0: i32) -> (i32, i32) {
    %c0_i32 = arith.constant 0 : i32
    %c0_i32_0 = arith.constant 0 : i32
    %c0_i32_1 = arith.constant 0 : i32
    return %c0_i32, %c0_i32_0 : i32, i32
  }
  func.func @transform_3(%arg0: i32) -> (i32, i32) {
    %c0_i32 = arith.constant 0 : i32
    %c0_i32_0 = arith.constant 0 : i32
    %c0_i32_1 = arith.constant 0 : i32
    return %c0_i32, %c0_i32_0 : i32, i32
  }
  func.func @transform_4(%arg0: i32) -> (i32, i32, i32) {
    %c0_i32 = arith.constant 0 : i32
    %c0_i32_0 = arith.constant 0 : i32
    %c0_i32_1 = arith.constant 0 : i32
    return %arg0, %c0_i32, %c0_i32_0 : i32, i32, i32
  }
}

module attributes {stable_mosaic.version = 11 : i64} {
  func.func @_fc_stack_kernel(%arg0: i32, %arg1: memref<2x216xbf16, #tpu.memory_space<vmem>>, %arg2: memref<216x120xbf16, #tpu.memory_space<vmem>>, %arg3: memref<1x120xf32, #tpu.memory_space<vmem>>, %arg4: memref<120x84xbf16, #tpu.memory_space<vmem>>, %arg5: memref<1x84xf32, #tpu.memory_space<vmem>>, %arg6: memref<84x10xbf16, #tpu.memory_space<vmem>>, %arg7: memref<1x10xf32, #tpu.memory_space<vmem>>, %arg8: memref<2x10xf32, #tpu.memory_space<vmem>>) attributes {dimension_semantics = [#tpu.dimension_semantics<parallel>], iteration_bounds = array<i64: 1>, scalar_prefetch = 0 : i64, scratch_operands = 0 : i64, tpu.core_type = #tpu.core_type<tc>, window_params = [{transform_indices = @transform_0, window_bounds = array<i64: 2, 216>}, {pipeline_mode = #tpu.pipeline_mode<synchronous>, transform_indices = @transform_1, window_bounds = array<i64: 216, 120>}, {pipeline_mode = #tpu.pipeline_mode<synchronous>, transform_indices = @transform_2, window_bounds = array<i64: 1, 120>}, {pipeline_mode = #tpu.pipeline_mode<synchronous>, transform_indices = @transform_3, window_bounds = array<i64: 120, 84>}, {pipeline_mode = #tpu.pipeline_mode<synchronous>, transform_indices = @transform_4, window_bounds = array<i64: 1, 84>}, {pipeline_mode = #tpu.pipeline_mode<synchronous>, transform_indices = @transform_5, window_bounds = array<i64: 84, 10>}, {pipeline_mode = #tpu.pipeline_mode<synchronous>, transform_indices = @transform_6, window_bounds = array<i64: 1, 10>}, {transform_indices = @transform_7, window_bounds = array<i64: 2, 10>}]} {
    %c0 = arith.constant 0 : index
    %c0_0 = arith.constant 0 : index
    %0 = vector.load %arg1[%c0, %c0_0] : memref<2x216xbf16, #tpu.memory_space<vmem>>, vector<2x216xbf16>
    %c0_1 = arith.constant 0 : index
    %c0_2 = arith.constant 0 : index
    %1 = vector.load %arg2[%c0_1, %c0_2] : memref<216x120xbf16, #tpu.memory_space<vmem>>, vector<216x120xbf16>
    %cst = arith.constant dense<0.000000e+00> : vector<2x120xf32>
    %2 = tpu.matmul %0, %1, %cst {dimension_numbers = #tpu.dot_dimension_numbers<[1], [0], [0], [1], [0, 0, 1, 1], [], []>} : vector<2x216xbf16>, vector<216x120xbf16>, vector<2x120xf32> -> vector<2x120xf32>
    %c0_3 = arith.constant 0 : index
    %c0_4 = arith.constant 0 : index
    %3 = vector.load %arg3[%c0_3, %c0_4] : memref<1x120xf32, #tpu.memory_space<vmem>>, vector<1x120xf32>
    %4 = vector.broadcast %3 : vector<1x120xf32> to vector<2x120xf32>
    %5 = arith.addf %2, %4 : vector<2x120xf32>
    %cst_5 = arith.constant 0.000000e+00 : f32
    %6 = vector.broadcast %cst_5 : f32 to vector<2x120xf32>
    %7 = arith.maximumf %5, %6 : vector<2x120xf32>
    %8 = arith.truncf %7 : vector<2x120xf32> to vector<2x120xbf16>
    %c0_6 = arith.constant 0 : index
    %c0_7 = arith.constant 0 : index
    %9 = vector.load %arg4[%c0_6, %c0_7] : memref<120x84xbf16, #tpu.memory_space<vmem>>, vector<120x84xbf16>
    %cst_8 = arith.constant dense<0.000000e+00> : vector<2x84xf32>
    %10 = tpu.matmul %8, %9, %cst_8 {dimension_numbers = #tpu.dot_dimension_numbers<[1], [0], [0], [1], [0, 0, 1, 1], [], []>} : vector<2x120xbf16>, vector<120x84xbf16>, vector<2x84xf32> -> vector<2x84xf32>
    %c0_9 = arith.constant 0 : index
    %c0_10 = arith.constant 0 : index
    %11 = vector.load %arg5[%c0_9, %c0_10] : memref<1x84xf32, #tpu.memory_space<vmem>>, vector<1x84xf32>
    %12 = vector.broadcast %11 : vector<1x84xf32> to vector<2x84xf32>
    %13 = arith.addf %10, %12 : vector<2x84xf32>
    %cst_11 = arith.constant 0.000000e+00 : f32
    %14 = vector.broadcast %cst_11 : f32 to vector<2x84xf32>
    %15 = arith.maximumf %13, %14 : vector<2x84xf32>
    %16 = arith.truncf %15 : vector<2x84xf32> to vector<2x84xbf16>
    %c0_12 = arith.constant 0 : index
    %c0_13 = arith.constant 0 : index
    %17 = vector.load %arg6[%c0_12, %c0_13] : memref<84x10xbf16, #tpu.memory_space<vmem>>, vector<84x10xbf16>
    %cst_14 = arith.constant dense<0.000000e+00> : vector<2x10xf32>
    %18 = tpu.matmul %16, %17, %cst_14 {dimension_numbers = #tpu.dot_dimension_numbers<[1], [0], [0], [1], [0, 0, 1, 1], [], []>} : vector<2x84xbf16>, vector<84x10xbf16>, vector<2x10xf32> -> vector<2x10xf32>
    %c0_15 = arith.constant 0 : index
    %c0_16 = arith.constant 0 : index
    %19 = vector.load %arg7[%c0_15, %c0_16] : memref<1x10xf32, #tpu.memory_space<vmem>>, vector<1x10xf32>
    %20 = vector.broadcast %19 : vector<1x10xf32> to vector<2x10xf32>
    %21 = arith.addf %18, %20 : vector<2x10xf32>
    %c0_17 = arith.constant 0 : index
    %c0_18 = arith.constant 0 : index
    %22 = vector.load %arg8[%c0_17, %c0_18] : memref<2x10xf32, #tpu.memory_space<vmem>>, vector<2x10xf32>
    tpu.vector_store %arg8[%c0_17, %c0_18], %21 {strides = array<i32>} : memref<2x10xf32, #tpu.memory_space<vmem>>, vector<2x10xf32>,
    return
  }
  func.func @transform_0(%arg0: i32) -> (i32, i32) {
    %c0_i32 = arith.constant 0 : i32
    %c0_i32_0 = arith.constant 0 : i32
    return %arg0, %c0_i32 : i32, i32
  }
  func.func @transform_1(%arg0: i32) -> (i32, i32) {
    %c0_i32 = arith.constant 0 : i32
    %c0_i32_0 = arith.constant 0 : i32
    %c0_i32_1 = arith.constant 0 : i32
    return %c0_i32, %c0_i32_0 : i32, i32
  }
  func.func @transform_2(%arg0: i32) -> (i32, i32) {
    %c0_i32 = arith.constant 0 : i32
    %c0_i32_0 = arith.constant 0 : i32
    %c0_i32_1 = arith.constant 0 : i32
    return %c0_i32, %c0_i32_0 : i32, i32
  }
  func.func @transform_3(%arg0: i32) -> (i32, i32) {
    %c0_i32 = arith.constant 0 : i32
    %c0_i32_0 = arith.constant 0 : i32
    %c0_i32_1 = arith.constant 0 : i32
    return %c0_i32, %c0_i32_0 : i32, i32
  }
  func.func @transform_4(%arg0: i32) -> (i32, i32) {
    %c0_i32 = arith.constant 0 : i32
    %c0_i32_0 = arith.constant 0 : i32
    %c0_i32_1 = arith.constant 0 : i32
    return %c0_i32, %c0_i32_0 : i32, i32
  }
  func.func @transform_5(%arg0: i32) -> (i32, i32) {
    %c0_i32 = arith.constant 0 : i32
    %c0_i32_0 = arith.constant 0 : i32
    %c0_i32_1 = arith.constant 0 : i32
    return %c0_i32, %c0_i32_0 : i32, i32
  }
  func.func @transform_6(%arg0: i32) -> (i32, i32) {
    %c0_i32 = arith.constant 0 : i32
    %c0_i32_0 = arith.constant 0 : i32
    %c0_i32_1 = arith.constant 0 : i32
    return %c0_i32, %c0_i32_0 : i32, i32
  }
  func.func @transform_7(%arg0: i32) -> (i32, i32) {
    %c0_i32 = arith.constant 0 : i32
    %c0_i32_0 = arith.constant 0 : i32
    return %arg0, %c0_i32 : i32, i32
  }
}

</mosaic_0001>

<bundles_post_ra>
// kernel: lenet_forward.4
= control target key start
LH: loop header
LB: loop body
LE: loop exit
PB: predicated region body
PF: predicated region fallthrough
CT: control target
= control target key end

     0   :  { %s1511_s15 = smov 0   ;;  %s2397_s0 = inlined_call_operand.vmem [shape: f32[2,1,1056], index: 0, kind: input, shape index: {}]   ;;  %s2398_s1 = inlined_call_operand.vmem [shape: bf16[6,25], index: 1, kind: input, shape index: {}]   ;;  %s2399_s2 = inlined_call_operand.vmem [shape: f32[6,1], index: 2, kind: input, shape index: {}]   ;;  %s2400_s3 = inlined_call_operand.vmem [shape: f32[863,196], index: 3, kind: input, shape index: {}]   ;;  %s2401_s4 = inlined_call_operand.vmem [shape: f32[2,6,196], index: 4, kind: output, shape index: {}]  }
   0x1 LB: > { %s1368_s16 = sadd.s32 4294967295, %s1461_s15   ;;  %p1372_p0 = scmp.ge.s32.totalorder %s1461_s15, 1  ;;  %s1461_s15 = sphi %s1511_s15, %s14_s15  }
   0x2   : > { %p161_p1 = scmp.lt.s32.totalorder %s1461_s15, 3 }
   0x4   : > { %p162_p2 = pnand %p1372_p0, %p161_p1 }
   0x5   : > { %p186_p3 = scmp.lt.s32.totalorder (!%p162_p2), %s1368_s16, 1  ;;  %s1463_s21 = smov (!%p162_p2), 29  }
   0x6   : > { %165 = sbr.rel (%p162_p2) target bundleno = 973 (0x3cd), region = 36  ;;  %s1464_s22 = smov (!%p162_p2), 31  }
   0x7   : > { %s1465_s23 = smov (!%p162_p2), 28   ;;  %s1466_s24 = smov (!%p162_p2), 30  }
   0x8   : > { %s1467_s25 = smov (!%p162_p2), 126   ;;  %s1468_s26 = smov (!%p162_p2), 127  }
   0x9   : > { %s1469_s27 = smov (!%p162_p2), 124   ;;  %s1470_s28 = smov (!%p162_p2), 125  }
   0xa   : > { %s1471_s29 = smov (!%p162_p2), 96   ;;  %s1472_s30 = smov (!%p162_p2), 95  }
   0xb   : > { %s2405_s16 = smov (!%p186_p3, %s1368_s16), 1  ;;  %v197_v0 = vlaneseq  ;;  %s1473_s5 = smov 94   ;;  %v1482_v4 = vmov 0   ;;  %v499_v5 = vld [vmem:[%s2399_s2] sm:$0x3f]  ;;  %vm395_vm1 = vcmask 236544  }
   0xc   : > { %s1396_s17 = smul.u32 9, %s2405_s16  ;;  %s1474_s6 = smov 93   ;;  %566 = vmatprep.mubr.bf16.mxu1 %v1482_v4  ;;  %1428 = vset.pattern.permute.xlu1 %v1482_v4  ;;  %vm373_vm2 = vcmask 252928   ;;  %vm406_vm3 = vcmask 228352   ;;  %vm384_vm4 = vcmask 244736   ;;  %vm219_vm5 = vcmask 1031168  }
   0xd   : > { %vm1525_vm0 = vcmp.lt.s32.totalorder %v197_v0, 896  ;;  %s1475_s7 = smov 92   ;;  %s1476_s8 = smov 64   ;;  %1454 = vset.pattern.permute.xlu0 %v1482_v4  ;;  %vm208_vm6 = vcmask 1039360   ;;  %vm241_vm7 = vcmask 1014784   ;;  %vm230_vm8 = vcmask 1022976  }
   0xe   : > { %s189_s20 = scalar_lea.vmem %s2397_s0, %s1396_s17  ;;  %s1477_s9 = smov 63   ;;  %vm509_vm9 = vcmask 1043456   ;;  %vm510_vm10 = vcmask 1044480   ;;  %v1483_v38 = vmov 65535   ;;  %vm252_vm11 = vcmask 785408  }
   0xf   : > { %v390_v1 = vld [vmem:[%s189_s20] sm:$0xff]  ;;  %s1478_s10 = smov 62   ;;  %s1479_s11 = smov 61   ;;  %v511_v39 = vsel %vm509_vm9, 4294967295, %v1483_v38  ;;  %vm263_vm12 = vcmask 777216   ;;  %vm274_vm13 = vcmask 769024  }
  0x10   : > { %v426_v2 = vld [vmem:[%s189_s20 + $0x1] sm:$0xff]  ;;  %392 = vrot.lane.b32.xlu1 %v390_v1, %s1463_s21  ;;  %370 = vrot.lane.b32.xlu0 %v390_v1, %s1464_s22  ;;  %201 = vst.msk [vmem:[#allocation2] ss:$8 sm:$0xf] %vm1525_vm0, %v390_v1  ;;  %s1480_s12 = smov 60   ;;  %s1481_s13 = smov 32  }
  0x11   : > { %414 = vst.msk [vmem:[#allocation2 + $0x74] ss:$8 sm:$0xf] %vm1525_vm0, %v426_v2  ;;  %415 = vst.msk [vmem:[#allocation2 + $0x74] ss:$8 sm:$0x70] %vm1525_vm0, %v426_v2 }
  0x12   : > { %202 = vst.msk [vmem:[#allocation2] ss:$8 sm:$0x70] %vm1525_vm0, %v390_v1  ;;  %v1594_v46 = vsel %vm510_vm10, %v511_v39, 0  ;;  %vm285_vm14 = vcmask 760832   ;;  %vm296_vm15 = vcmask 752640  }
  0x13   : > { %v498_v3 = vld [vmem:[%s2398_s1] sm:$0x7]  ;;  %vm1019_vm9 = vcmask 1046528   ;;  %s1384_s19 = sshll.u32 %s2405_s16, 4 }
  0x14   : > { %403 = vrot.lane.b32.xlu1 %v390_v1, %s1465_s23  ;;  %381 = vrot.lane.b32.xlu0 %v390_v1, %s1466_s24  ;;  %s194_s22 = scalar_lea.vmem %s2401_s4, %s1384_s19 }
  0x18   : > { %428 = vrot.lane.b32.xlu1 %v426_v2, %s1467_s25  ;;  %418 = vrot.lane.b32.xlu0 %v426_v2, %s1468_s26 }
  0x1c   : > { %448 = vrot.lane.b32.xlu1 %v426_v2, %s1469_s27  ;;  %438 = vrot.lane.b32.xlu0 %v426_v2, %s1470_s28 }
  0x20   : > { %205 = vrot.lane.b32.xlu0 %v390_v1, %s1468_s26  ;;  %216 = vrot.lane.b32.xlu1 %v390_v1, %s1467_s25 }
  0x24   : > { %227 = vrot.lane.b32.xlu0 %v390_v1, %s1470_s28  ;;  %238 = vrot.lane.b32.xlu1 %v390_v1, %s1469_s27 }
  0x28   : > { %249 = vrot.lane.b32.xlu0 %v390_v1, %s1471_s29  ;;  %260 = vrot.lane.b32.xlu1 %v390_v1, %s1472_s30 }
  0x2c   : > { %271 = vrot.lane.b32.xlu0 %v390_v1, %s1473_s5  ;;  %282 = vrot.lane.b32.xlu1 %v390_v1, %s1474_s6 }
  0x30   : > { %293 = vrot.lane.b32.xlu0 %v390_v1, %s1475_s7  ;;  %304 = vrot.lane.b32.xlu1 %v390_v1, %s1476_s8 }
  0x34   : > { %315 = vrot.lane.b32.xlu0 %v390_v1, %s1477_s9  ;;  %326 = vrot.lane.b32.xlu1 %v390_v1, %s1478_s10 }
  0x38   : > { %337 = vrot.lane.b32.xlu0 %v390_v1, %s1479_s11  ;;  %348 = vrot.lane.b32.xlu1 %v390_v1, %s1480_s12 }
  0x3c   : > { %359 = vrot.lane.b32.xlu0 %v390_v1, %s1481_s13  ;;  %502 = vperm.xlu1 %1428, %v499_v5  }
  0x82   : > { %v393_v6 = vpop.permute.xlu1 %392  ;;  %v371_v7 = vpop.permute.xlu0 %370 }
  0x83   : > { %v394_v8 = vrot.slane %v393_v6, 1  ;;  %v372_v9 = vrot.slane %v371_v7, 1 }
  0x85   : > { %v396_v10 = vsel %vm395_vm1, %v393_v6, %v394_v8  ;;  %v374_v11 = vsel %vm373_vm2, %v371_v7, %v372_v9  ;;  %vm307_vm1 = vcmask 523264   ;;  %vm318_vm2 = vcmask 515072  }
  0x86   : > { %399 = vst.msk [vmem:[#allocation2 + $0x72] ss:$8 sm:$0xf] %vm1525_vm0, %v396_v10  ;;  %400 = vst.msk [vmem:[#allocation2 + $0x72] ss:$8 sm:$0x70] %vm1525_vm0, %v396_v10  ;;  %v404_v12 = vpop.permute.xlu1 %403  ;;  %v382_v13 = vpop.permute.xlu0 %381 }
  0x87   : > { %377 = vst.msk [vmem:[#allocation2 + $0x70] ss:$8 sm:$0xf] %vm1525_vm0, %v374_v11  ;;  %378 = vst.msk [vmem:[#allocation2 + $0x70] ss:$8 sm:$0x70] %vm1525_vm0, %v374_v11 }
  0x88   : > { %v405_v14 = vrot.slane %v404_v12, 1  ;;  %v383_v15 = vrot.slane %v382_v13, 1 }
  0x8a   : > { %v407_v16 = vsel %vm406_vm3, %v404_v12, %v405_v14  ;;  %v385_v17 = vsel %vm384_vm4, %v382_v13, %v383_v15  ;;  %v429_v18 = vpop.permute.xlu1 %428  ;;  %v419_v19 = vpop.permute.xlu0 %418  ;;  %vm329_vm3 = vcmask 506880   ;;  %vm340_vm4 = vcmask 498688  }
  0x8b   : > { %410 = vst.msk [vmem:[#allocation2 + $0x73] ss:$8 sm:$0xf] %vm1525_vm0, %v407_v16  ;;  %411 = vst.msk [vmem:[#allocation2 + $0x73] ss:$8 sm:$0x70] %vm1525_vm0, %v407_v16 }
  0x8c   : > { %388 = vst.msk [vmem:[#allocation2 + $0x71] ss:$8 sm:$0xf] %vm1525_vm0, %v385_v17  ;;  %389 = vst.msk [vmem:[#allocation2 + $0x71] ss:$8 sm:$0x70] %vm1525_vm0, %v385_v17 }
  0x8d   : > { %v430_v20 = vrot.slane %v429_v18, 1  ;;  %v420_v21 = vrot.slane %v419_v19, 1 }
  0x8e   : > { %v449_v24 = vpop.permute.xlu1 %448  ;;  %v439_v25 = vpop.permute.xlu0 %438 }
  0x8f   : > { %v431_v22 = vsel %vm219_vm5, %v429_v18, %v430_v20  ;;  %v421_v23 = vsel %vm208_vm6, %v419_v19, %v420_v21  ;;  %v450_v26 = vrot.slane %v449_v24, 1  ;;  %v440_v27 = vrot.slane %v439_v25, 1 }
  0x90   : > { %434 = vst.msk [vmem:[#allocation2 + $0x76] ss:$8 sm:$0xf] %vm1525_vm0, %v431_v22  ;;  %435 = vst.msk [vmem:[#allocation2 + $0x76] ss:$8 sm:$0x70] %vm1525_vm0, %v431_v22 }
  0x91   : > { %424 = vst.msk [vmem:[#allocation2 + $0x75] ss:$8 sm:$0xf] %vm1525_vm0, %v421_v23  ;;  %425 = vst.msk [vmem:[#allocation2 + $0x75] ss:$8 sm:$0x70] %vm1525_vm0, %v421_v23  ;;  %v451_v28 = vsel %vm241_vm7, %v449_v24, %v450_v26  ;;  %v441_v29 = vsel %vm230_vm8, %v439_v25, %v440_v27 }
  0x92   : > { %454 = vst.msk [vmem:[#allocation2 + $0xa8] ss:$8 sm:$0xf] %vm1525_vm0, %v451_v28  ;;  %455 = vst.msk [vmem:[#allocation2 + $0xa8] ss:$8 sm:$0x70] %vm1525_vm0, %v451_v28  ;;  %v206_v30 = vpop.permute.xlu0 %205  ;;  %v217_v31 = vpop.permute.xlu1 %216 }
  0x93   : > { %444 = vst.msk [vmem:[#allocation2 + $0x77] ss:$8 sm:$0xf] %vm1525_vm0, %v441_v29  ;;  %445 = vst.msk [vmem:[#allocation2 + $0x77] ss:$8 sm:$0x70] %vm1525_vm0, %v441_v29 }
  0x94   : > { %v207_v32 = vrot.slane %v206_v30, 1  ;;  %v218_v33 = vrot.slane %v217_v31, 1 }
  0x96   : > { %v209_v34 = vsel %vm208_vm6, %v206_v30, %v207_v32  ;;  %v220_v35 = vsel %vm219_vm5, %v217_v31, %v218_v33  ;;  %v228_v36 = vpop.permute.xlu0 %227  ;;  %v239_v37 = vpop.permute.xlu1 %238  ;;  %vm351_vm5 = vcmask 490496  }
  0x97   : > { %212 = vst.msk [vmem:[#allocation2 + $0x1] ss:$8 sm:$0xf] %vm1525_vm0, %v209_v34  ;;  %213 = vst.msk [vmem:[#allocation2 + $0x1] ss:$8 sm:$0x70] %vm1525_vm0, %v209_v34 }
  0x98   : > { %223 = vst.msk [vmem:[#allocation2 + $0x2] ss:$8 sm:$0xf] %vm1525_vm0, %v220_v35  ;;  %224 = vst.msk [vmem:[#allocation2 + $0x2] ss:$8 sm:$0x70] %vm1525_vm0, %v220_v35 }
  0x99   : > { %v229_v40 = vrot.slane %v228_v36, 1  ;;  %v240_v41 = vrot.slane %v239_v37, 1  ;;  %v478_v45 = vld [vmem:[#allocation2 + $0xb0] sm:$0x1]  ;;  %v477_v51 = vld [vmem:[#allocation2 + $0xa8] sm:$0x1] }
  0x9a   : > { %v471_v44 = vld [vmem:[#allocation2 + $0x78] sm:$0xff]  ;;  %v470_v47 = vld [vmem:[#allocation2 + $0x70] sm:$0xff]  ;;  %v250_v48 = vpop.permute.xlu0 %249  ;;  %v261_v49 = vpop.permute.xlu1 %260  ;;  %v473_v24 = vld [vmem:[#allocation2 + $0x88] sm:$0xff] }
  0x9b   : > { %v231_v42 = vsel %vm230_vm8, %v228_v36, %v229_v40  ;;  %v242_v43 = vsel %vm241_vm7, %v239_v37, %v240_v41  ;;  %v492_v50 = vpack.c.bf16 %v478_v45, %v471_v44  ;;  %v251_v52 = vrot.slane %v250_v48, 1  ;;  %v480_v25 = vld [vmem:[#allocation2 + $0xc0] sm:$0x1]  ;;  %v479_v29 = vld [vmem:[#allocation2 + $0xb8] sm:$0x1]  ;;  %v474_v45 = vld [vmem:[#allocation2 + $0x90] sm:$0xff] }
  0x9c   : > { %234 = vst.msk [vmem:[#allocation2 + $0x3] ss:$8 sm:$0xf] %vm1525_vm0, %v231_v42  ;;  %235 = vst.msk [vmem:[#allocation2 + $0x3] ss:$8 sm:$0x70] %vm1525_vm0, %v231_v42  ;;  %v491_v54 = vpack.c.bf16 %v477_v51, %v470_v47  ;;  %v494_v27 = vpack.c.bf16 %v480_v25, %v473_v24 }
  0x9d   : > { %245 = vst.msk [vmem:[#allocation2 + $0x4] ss:$8 sm:$0xf] %vm1525_vm0, %v242_v43  ;;  %246 = vst.msk [vmem:[#allocation2 + $0x4] ss:$8 sm:$0x70] %vm1525_vm0, %v242_v43  ;;  %v517_v55 = vand.u32 %v1594_v46, %v492_v50  ;;  %v253_v56 = vsel %vm252_vm11, %v250_v48, %v251_v52 }
  0x9e   : > { %v262_v53 = vrot.slane %v261_v49, 1  ;;  %v514_v58 = vand.u32 %v1594_v46, %v491_v54  ;;  %256 = vst.msk [vmem:[#allocation2 + $0x5] ss:$8 sm:$0xf] %vm1525_vm0, %v253_v56  ;;  %v272_v59 = vpop.permute.xlu0 %271  ;;  %v283_v60 = vpop.permute.xlu1 %282  ;;  %vm362_vm7 = vcmask 261120   ;;  %v472_v28 = vld [vmem:[#allocation2 + $0x80] sm:$0xff]  ;;  %v523_v36 = vand.u32 %v1594_v46, %v494_v27 }
  0x9f   : > { %257 = vst.msk [vmem:[#allocation2 + $0x5] ss:$8 sm:$0x70] %vm1525_vm0, %v253_v56  ;;  %546 = vmatprep.subr.bf16.mxu1 %v517_v55  ;;  %v273_v61 = vrot.slane %v272_v59, 1  ;;  %v284_v62 = vrot.slane %v283_v60, 1  ;;  %v493_v35 = vpack.c.bf16 %v479_v29, %v472_v28  ;;  %v475_v38 = vld [vmem:[#allocation2 + $0x98] sm:$0xff] }
  0xa0   : > { %v264_v57 = vsel %vm263_vm12, %v261_v49, %v262_v53  ;;  %547 = vmatpush1.bf16.msra.mxu1 %v514_v58  ;;  %v482_v39 = vld [vmem:[#allocation2 + $0xd0] sm:$0x1]  ;;  %v481_v47 = vld [vmem:[#allocation2 + $0xc8] sm:$0x1]  ;;  %v483_v58 = vld [vmem:[#allocation2 + $0xd8] sm:$0x1] }
  0xa1   : > { %267 = vst.msk [vmem:[#allocation2 + $0x6] ss:$8 sm:$0xf] %vm1525_vm0, %v264_v57  ;;  %268 = vst.msk [vmem:[#allocation2 + $0x6] ss:$8 sm:$0x70] %vm1525_vm0, %v264_v57  ;;  %v275_v63 = vsel %vm274_vm13, %v272_v59, %v273_v61  ;;  %v286_v0 = vsel %vm285_vm14, %v283_v60, %v284_v62  ;;  %v520_v40 = vand.u32 %v1594_v46, %v493_v35 }
  0xa2   : > { %278 = vst.msk [vmem:[#allocation2 + $0x7] ss:$8 sm:$0xf] %vm1525_vm0, %v275_v63  ;;  %279 = vst.msk [vmem:[#allocation2 + $0x7] ss:$8 sm:$0x70] %vm1525_vm0, %v275_v63  ;;  %v294_v1 = vpop.permute.xlu0 %293  ;;  %v305_v2 = vpop.permute.xlu1 %304  ;;  %v496_v44 = vpack.c.bf16 %v482_v39, %v475_v38  ;;  %v495_v50 = vpack.c.bf16 %v481_v47, %v474_v45 }
  0xa3   : > { %289 = vst.msk [vmem:[#allocation2 + $0x38] ss:$8 sm:$0xf] %vm1525_vm0, %v286_v0  ;;  %290 = vst.msk [vmem:[#allocation2 + $0x38] ss:$8 sm:$0x70] %vm1525_vm0, %v286_v0 }
  0xa4   : > { %v295_v5 = vrot.slane %v294_v1, 1  ;;  %v306_v6 = vrot.slane %v305_v2, 1  ;;  %v529_v51 = vand.u32 %v1594_v46, %v496_v44  ;;  %v526_v53 = vand.u32 %v1594_v46, %v495_v50  ;;  %v476_v57 = vld [vmem:[#allocation2 + $0xa0] sm:$0xff]  ;;  %v830_v38 = vld [vmem:[%s2400_s3 + $0xf0] sm:$0xff]  ;;  %v829_v39 = vld [vmem:[%s2400_s3 + $0xe8] sm:$0xff] }
  0xa5   : > { %v497_v61 = vpack.c.bf16 %v483_v58, %v476_v57  ;;  %v1484_v62 = vmov 0.0   ;;  %vm1485_vm8 = vmmov 0   ;;  %v826_v47 = vld [vmem:[%s2400_s3 + $0xd0] sm:$0xff]  ;;  %v825_v50 = vld [vmem:[%s2400_s3 + $0xc8] sm:$0xff] }
  0xa6   : > { %v297_v7 = vsel %vm296_vm15, %v294_v1, %v295_v5  ;;  %v308_v8 = vsel %vm307_vm1, %v305_v2, %v306_v6  ;;  %v316_v9 = vpop.permute.xlu0 %315  ;;  %v327_v10 = vpop.permute.xlu1 %326  ;;  %v822_v57 = vld [vmem:[%s2400_s3 + $0xb0] sm:$0xff] }
  0xa7   : > { %300 = vst.msk [vmem:[#allocation2 + $0x39] ss:$8 sm:$0xf] %vm1525_vm0, %v297_v7  ;;  %301 = vst.msk [vmem:[#allocation2 + $0x39] ss:$8 sm:$0x70] %vm1525_vm0, %v297_v7  ;;  %v532_v63 = vand.u32 %v1594_v46, %v497_v61 }
  0xa8   : > { %311 = vst.msk [vmem:[#allocation2 + $0x3a] ss:$8 sm:$0xf] %vm1525_vm0, %v308_v8  ;;  %312 = vst.msk [vmem:[#allocation2 + $0x3a] ss:$8 sm:$0x70] %vm1525_vm0, %v308_v8 }
  0xa9   : > { %v317_v11 = vrot.slane %v316_v9, 1  ;;  %v328_v12 = vrot.slane %v327_v10, 1  ;;  %v457_v26 = vld [vmem:[#allocation2 + $0x8] sm:$0xff]  ;;  %v456_v31 = vld [vmem:[#allocation2] sm:$0xff]  ;;  %v459_v41 = vld [vmem:[#allocation2 + $0x18] sm:$0xff] }
  0xaa   : > { %v338_v15 = vpop.permute.xlu0 %337  ;;  %v349_v16 = vpop.permute.xlu1 %348  ;;  %v458_v48 = vld [vmem:[#allocation2 + $0x10] sm:$0xff]  ;;  %v461_v54 = vld [vmem:[#allocation2 + $0x28] sm:$0xff]  ;;  %v460_v59 = vld [vmem:[#allocation2 + $0x20] sm:$0xff] }
  0xab   : > { %v319_v13 = vsel %vm318_vm2, %v316_v9, %v317_v11  ;;  %v330_v14 = vsel %vm329_vm3, %v327_v10, %v328_v12  ;;  %v339_v17 = vrot.slane %v338_v15, 1  ;;  %v350_v18 = vrot.slane %v349_v16, 1  ;;  %v890_v58 = vld [vmem:[%s2400_s3 + $0x2d0] sm:$0xff]  ;;  %v820_v61 = vld [vmem:[%s2400_s3 + $0xa0] sm:$0xff] }
  0xac   : > { %322 = vst.msk [vmem:[#allocation2 + $0x3b] ss:$8 sm:$0xf] %vm1525_vm0, %v319_v13  ;;  %323 = vst.msk [vmem:[#allocation2 + $0x3b] ss:$8 sm:$0x70] %vm1525_vm0, %v319_v13 }
  0xad   : > { %333 = vst.msk [vmem:[#allocation2 + $0x3c] ss:$8 sm:$0xf] %vm1525_vm0, %v330_v14  ;;  %334 = vst.msk [vmem:[#allocation2 + $0x3c] ss:$8 sm:$0x70] %vm1525_vm0, %v330_v14  ;;  %v341_v19 = vsel %vm340_vm4, %v338_v15, %v339_v17  ;;  %v352_v20 = vsel %vm351_vm5, %v349_v16, %v350_v18 }
  0xae   : > { %344 = vst.msk [vmem:[#allocation2 + $0x3d] ss:$8 sm:$0xf] %vm1525_vm0, %v341_v19  ;;  %345 = vst.msk [vmem:[#allocation2 + $0x3d] ss:$8 sm:$0x70] %vm1525_vm0, %v341_v19  ;;  %v360_v21 = vpop.permute.xlu0 %359 }
  0xaf   : > { %355 = vst.msk [vmem:[#allocation2 + $0x3e] ss:$8 sm:$0xf] %vm1525_vm0, %v352_v20  ;;  %356 = vst.msk [vmem:[#allocation2 + $0x3e] ss:$8 sm:$0x70] %vm1525_vm0, %v352_v20 }
  0xb0   : > { %v361_v22 = vrot.slane %v360_v21, 1 }
  0xb2   : > { %v363_v23 = vsel %vm362_vm7, %v360_v21, %v361_v22 }
  0xb3   : > { %366 = vst.msk [vmem:[#allocation2 + $0x3f] ss:$8 sm:$0xf] %vm1525_vm0, %v363_v23  ;;  %367 = vst.msk [vmem:[#allocation2 + $0x3f] ss:$8 sm:$0x70] %vm1525_vm0, %v363_v23 }
  0xb4   : > { %vm505_vm0 = vcmask 203776  }
  0xb7   : > { %v503_v2 = vpop.permute.xlu1 %502 }
  0xba   : > { %v464_v30 = vld [vmem:[#allocation2 + $0x40] sm:$0xff]  ;;  %v463_v32 = vld [vmem:[#allocation2 + $0x38] sm:$0xff]  ;;  %v466_v37 = vld [vmem:[#allocation2 + $0x50] sm:$0xff] }
  0xbb   : > { %v485_v33 = vpack.c.bf16 %v464_v30, %v457_v26  ;;  %v484_v34 = vpack.c.bf16 %v463_v32, %v456_v31  ;;  %v487_v42 = vpack.c.bf16 %v466_v37, %v459_v41  ;;  %v465_v43 = vld [vmem:[#allocation2 + $0x48] sm:$0xff]  ;;  %v468_v52 = vld [vmem:[#allocation2 + $0x60] sm:$0xff]  ;;  %v467_v56 = vld [vmem:[#allocation2 + $0x58] sm:$0xff] }
  0xbc   : > { %v486_v49 = vpack.c.bf16 %v465_v43, %v458_v48  ;;  %v489_v55 = vpack.c.bf16 %v468_v52, %v461_v54  ;;  %v488_v60 = vpack.c.bf16 %v467_v56, %v460_v59  ;;  %v469_v0 = vld [vmem:[#allocation2 + $0x68] sm:$0xff]  ;;  %v831_v37 = vld [vmem:[%s2400_s3 + $0xf8] sm:$0xff]  ;;  %v828_v41 = vld [vmem:[%s2400_s3 + $0xe0] sm:$0xff] }
  0xbd   : > { %548 = vmatprep.subr.bf16.mxu1 %v485_v33  ;;  %1026 = vmatprep.subr.mxu0 %v831_v37  ;;  %v827_v43 = vld [vmem:[%s2400_s3 + $0xd8] sm:$0xff]  ;;  %v824_v52 = vld [vmem:[%s2400_s3 + $0xc0] sm:$0xff]  ;;  %v821_v59 = vld [vmem:[%s2400_s3 + $0xa8] sm:$0xff] }
  0xbe   : > { %549 = vmatpush1.bf16.msra.mxu1 %v484_v34  ;;  %1027 = vmatpush1.msra.mxu0 %v830_v38  ;;  %v895_v48 = vld [vmem:[%s2400_s3 + $0x2f8] sm:$0xff]  ;;  %v892_v54 = vld [vmem:[%s2400_s3 + $0x2e0] sm:$0xff]  ;;  %v802_v37 = vld [vmem:[%s2400_s3 + $0x10] sm:$0xff] }
  0xbf   : > { %587 = vmatprep.subr.bf16.mxu1 %v523_v36  ;;  %1028 = vmatprep.subr.mxu0 %v829_v39  ;;  %v891_v56 = vld [vmem:[%s2400_s3 + $0x2d8] sm:$0xff]  ;;  %v870_v38 = vld [vmem:[%s2400_s3 + $0x230] sm:$0xff]  ;;  %v801_v39 = vld [vmem:[%s2400_s3 + $0x8] sm:$0xff] }
  0xc0   : > { %1029 = vmatpush1.msra.mxu0 %v828_v41  ;;  %v800_v41 = vld [vmem:[%s2400_s3] sm:$0xff] }
  0xc1   : > { %1375 = vmatmul.mubr.msk.bf16.vlgmr.msra.gmra.mxu1 %vm505_vm0, %v498_v3  ;;  %1030 = vmatprep.subr.mxu0 %v827_v43  ;;  %v868_v43 = vld [vmem:[%s2400_s3 + $0x220] sm:$0xff] }
  0xc2   : > { %588 = vmatpush1.bf16.msra.mxu1 %v520_v40  ;;  %607 = vmatprep.mubr.bf16.mxu1 %v1482_v4 }
  0xc3   : > { %589 = vmatprep.subr.bf16.mxu1 %v487_v42  ;;  %1031 = vmatpush1.msra.mxu0 %v826_v47  ;;  %v867_v47 = vld [vmem:[%s2400_s3 + $0x218] sm:$0xff] }
  0xc4   : > { %1032 = vmatprep.subr.mxu0 %v825_v50  ;;  %v861_v50 = vld [vmem:[%s2400_s3 + $0x1e8] sm:$0xff] }
  0xc5   : > { %1033 = vmatpush1.msra.mxu0 %v824_v52  ;;  %v860_v52 = vld [vmem:[%s2400_s3 + $0x1e0] sm:$0xff] }
  0xc6   : > { %590 = vmatpush1.bf16.msra.mxu1 %v486_v49 }
  0xc7   : > { %628 = vmatprep.subr.bf16.mxu1 %v529_v51  ;;  %v894_v51 = vld [vmem:[%s2400_s3 + $0x2f0] sm:$0xff] }
  0xc9   : > { %1376 = vmatmul.mubr.msk.bf16.vlgmr.msra.gmra.mxu1 %vm505_vm0, %v498_v3 }
  0xca   : > { %629 = vmatpush1.bf16.msra.mxu1 %v526_v53  ;;  %648 = vmatprep.mubr.bf16.mxu1 %v1482_v4  ;;  %v462_v4 = vld [vmem:[#allocation2 + $0x30] sm:$0xff]  ;;  %v893_v53 = vld [vmem:[%s2400_s3 + $0x2e8] sm:$0xff] }
  0xcb   : > { %630 = vmatprep.subr.bf16.mxu1 %v489_v55  ;;  %v490_v1 = vpack.c.bf16 %v469_v0, %v462_v4  ;;  %v823_v55 = vld [vmem:[%s2400_s3 + $0xb8] sm:$0xff] }
  0xcc   : > { %1034 = vmatprep.subr.mxu0 %v823_v55  ;;  %v819_v0 = vld [vmem:[%s2400_s3 + $0x98] sm:$0xff] }
  0xcd   : > { %1035 = vmatpush1.msra.mxu0 %v822_v57  ;;  %v887_v4 = vld [vmem:[%s2400_s3 + $0x2b8] sm:$0xff]  ;;  %v926_v57 = vld [vmem:[%s2400_s3 + $0x3f0] sm:$0xff] }
  0xce   : > { %631 = vmatpush1.bf16.msra.mxu1 %v488_v60  ;;  %v889_v60 = vld [vmem:[%s2400_s3 + $0x2c8] sm:$0xff]  ;;  %1036 = vmatprep.subr.mxu0 %v821_v59  ;;  %v927_v55 = vld [vmem:[%s2400_s3 + $0x3f8] sm:$0xff] }
  0xcf   : > { %1388 = vmatprep.subr.bf16.mxu1 %v1484_v62  ;;  %1037 = vmatpush1.msra.mxu0 %v820_v61  ;;  %v925_v59 = vld [vmem:[%s2400_s3 + $0x3e8] sm:$0xff]  ;;  %v924_v61 = vld [vmem:[%s2400_s3 + $0x3e0] sm:$0xff] }
  0xd0   : > { %1038 = vmatprep.subr.mxu0 %v819_v0  ;;  %v923_v0 = vld [vmem:[%s2400_s3 + $0x3d8] sm:$0xff] }
  0xd1   : > { %1377 = vmatmul.mubr.msk.bf16.vlgmr.msra.gmra.mxu1 %vm505_vm0, %v498_v3 }
  0xd2   : > { %1389 = vmatpush3.bf16.msra.mxu1 %v532_v63  ;;  %1392 = vmatprep.mubr.msk.bf16.mxu1 %vm1485_vm8, %v1484_v62  ;;  %v888_v63 = vld [vmem:[%s2400_s3 + $0x2c0] sm:$0xff] }
  0xd3   : > { %1390 = vmatprep.subr.bf16.mxu1 %v1484_v62 }
  0xd6   : > { %1391 = vmatpush3.bf16.msra.mxu1 %v490_v1  ;;  %v818_v1 = vld [vmem:[%s2400_s3 + $0x90] sm:$0xff] }
  0xd7   : > { %1097 = vmatprep.subr.mxu1 %v895_v48  ;;  %1039 = vmatpush1.msra.mxu0 %v818_v1  ;;  %v862_v48 = vld [vmem:[%s2400_s3 + $0x1f0] sm:$0xff] }
  0xd8   : > { %v922_v1 = vld [vmem:[%s2400_s3 + $0x3d0] sm:$0xff] }
  0xd9   : > { %1393 = vmatmul.mubr.msk.bf16.vlgmr.msra.gmra.mxu1 %vm505_vm0, %v498_v3 }
  0xda   : > { %1098 = vmatpush1.msra.mxu1 %v894_v51  ;;  %v865_v51 = vld [vmem:[%s2400_s3 + $0x208] sm:$0xff] }
  0xdb   : > { %1099 = vmatprep.subr.mxu1 %v893_v53  ;;  %v864_v53 = vld [vmem:[%s2400_s3 + $0x200] sm:$0xff] }
  0xdc   : > { %1100 = vmatpush1.msra.mxu1 %v892_v54  ;;  %v859_v54 = vld [vmem:[%s2400_s3 + $0x1d8] sm:$0xff] }
  0xdd   : > { %1101 = vmatprep.subr.mxu1 %v891_v56  ;;  %v858_v56 = vld [vmem:[%s2400_s3 + $0x1d0] sm:$0xff] }
  0xde   : > { %1102 = vmatpush1.msra.mxu1 %v890_v58  ;;  %v857_v58 = vld [vmem:[%s2400_s3 + $0x1c8] sm:$0xff] }
  0xdf   : > { %1103 = vmatprep.subr.mxu1 %v889_v60  ;;  %v856_v60 = vld [vmem:[%s2400_s3 + $0x1c0] sm:$0xff] }
  0xe0   : > { %1104 = vmatpush1.msra.mxu1 %v888_v63  ;;  %v855_v63 = vld [vmem:[%s2400_s3 + $0x1b8] sm:$0xff] }
  0xe1   : > { %1105 = vmatprep.subr.mxu1 %v887_v4  ;;  %v854_v4 = vld [vmem:[%s2400_s3 + $0x1b0] sm:$0xff] }
 0x181   : > { %v568_v5 = vpop.f32.mrf.mxu1 }
 0x182   : > { %v569_v6 = vadd.f32 %v568_v5, %v503_v2  ;;  %v817_v5 = vld [vmem:[%s2400_s3 + $0x88] sm:$0xff] }
 0x183   : > { %v570_v7 = vpop.f32.mrf.mxu1  ;;  %1040 = vmatprep.subr.mxu0 %v817_v5  ;;  %v921_v5 = vld [vmem:[%s2400_s3 + $0x3c8] sm:$0xff] }
 0x184   : > { %v697_v8 = vmax.f32 %v569_v6, 0.0  ;;  %v571_v46 = vadd.f32 %v570_v7, %v503_v2  ;;  %v885_v6 = vld [vmem:[%s2400_s3 + $0x2a8] sm:$0xff]  ;;  %v816_v7 = vld [vmem:[%s2400_s3 + $0x80] sm:$0xff] }
 0x185   : > { %v572_v9 = vpop.f32.mrf.mxu1  ;;  %1041 = vmatpush1.msra.mxu0 %v816_v7  ;;  %v920_v7 = vld [vmem:[%s2400_s3 + $0x3c0] sm:$0xff] }
 0x186   : > { %704 = vst [vmem:[#allocation3 + $0x30] sm:$0x3f] %v697_v8  ;;  %v698_v10 = vmax.f32 %v571_v46, 0.0  ;;  %v884_v8 = vld [vmem:[%s2400_s3 + $0x2a0] sm:$0xff]  ;;  %v815_v46 = vld [vmem:[%s2400_s3 + $0x78] sm:$0xff] }
 0x187   : > { %v573_v11 = vpop.f32.mrf.mxu1  ;;  %v883_v9 = vld [vmem:[%s2400_s3 + $0x298] sm:$0xff]  ;;  %1042 = vmatprep.subr.mxu0 %v815_v46 }
 0x188   : > { %705 = vst [vmem:[#allocation3] sm:$0x3f] %v698_v10  ;;  %v814_v10 = vld [vmem:[%s2400_s3 + $0x70] sm:$0xff]  ;;  %v919_v46 = vld [vmem:[%s2400_s3 + $0x3b8] sm:$0xff] }
 0x189   : > { %v609_v12 = vpop.f32.mrf.mxu1  ;;  %v882_v11 = vld [vmem:[%s2400_s3 + $0x290] sm:$0xff]  ;;  %1043 = vmatpush1.msra.mxu0 %v814_v10 }
 0x18a   : > { %v610_v13 = vadd.f32 %v609_v12, %v503_v2  ;;  %v813_v12 = vld [vmem:[%s2400_s3 + $0x68] sm:$0xff]  ;;  %v918_v10 = vld [vmem:[%s2400_s3 + $0x3b0] sm:$0xff] }
 0x18b   : > { %v611_v14 = vpop.f32.mrf.mxu1  ;;  %1044 = vmatprep.subr.mxu0 %v813_v12  ;;  %v917_v12 = vld [vmem:[%s2400_s3 + $0x3a8] sm:$0xff] }
 0x18c   : > { %v699_v15 = vmax.f32 %v610_v13, 0.0  ;;  %v612_v16 = vadd.f32 %v611_v14, %v503_v2  ;;  %v881_v13 = vld [vmem:[%s2400_s3 + $0x288] sm:$0xff]  ;;  %v812_v14 = vld [vmem:[%s2400_s3 + $0x60] sm:$0xff] }
 0x18d   : > { %v613_v17 = vpop.f32.mrf.mxu1  ;;  %v1675_v31 = vld [vmem:[#allocation3 + $0x30] sm:$0x3f]  ;;  %1045 = vmatpush1.msra.mxu0 %v812_v14  ;;  %v916_v14 = vld [vmem:[%s2400_s3 + $0x3a0] sm:$0xff] }
 0x18e   : > { %706 = vst [vmem:[#allocation3 + $0x18] sm:$0x3f] %v699_v15  ;;  %v700_v18 = vmax.f32 %v612_v16, 0.0  ;;  %v880_v15 = vld [vmem:[%s2400_s3 + $0x280] sm:$0xff]  ;;  %v811_v16 = vld [vmem:[%s2400_s3 + $0x58] sm:$0xff] }
 0x18f   : > { %v614_v19 = vpop.f32.mrf.mxu1  ;;  %v1669_v26 = vld [vmem:[#allocation3] sm:$0x3f]  ;;  %v879_v17 = vld [vmem:[%s2400_s3 + $0x278] sm:$0xff]  ;;  %1046 = vmatprep.subr.mxu0 %v811_v16 }
 0x190   : > { %707 = vst [vmem:[#allocation3 + $0x10] sm:$0x3f] %v700_v18  ;;  %v810_v18 = vld [vmem:[%s2400_s3 + $0x50] sm:$0xff]  ;;  %v915_v16 = vld [vmem:[%s2400_s3 + $0x398] sm:$0xff] }
 0x191   : > { %v650_v20 = vpop.f32.mrf.mxu1  ;;  %v878_v19 = vld [vmem:[%s2400_s3 + $0x270] sm:$0xff]  ;;  %1047 = vmatpush1.msra.mxu0 %v810_v18 }
 0x192   : > { %v651_v21 = vadd.f32 %v650_v20, %v503_v2  ;;  %v809_v20 = vld [vmem:[%s2400_s3 + $0x48] sm:$0xff]  ;;  %v914_v18 = vld [vmem:[%s2400_s3 + $0x390] sm:$0xff] }
 0x193   : > { %v652_v22 = vpop.f32.mrf.mxu1  ;;  %1048 = vmatprep.subr.mxu0 %v809_v20  ;;  %v913_v20 = vld [vmem:[%s2400_s3 + $0x388] sm:$0xff] }
 0x194   : > { %v701_v23 = vmax.f32 %v651_v21, 0.0  ;;  %v653_v24 = vadd.f32 %v652_v22, %v503_v2  ;;  %v877_v21 = vld [vmem:[%s2400_s3 + $0x268] sm:$0xff]  ;;  %v808_v22 = vld [vmem:[%s2400_s3 + $0x40] sm:$0xff] }
 0x195   : > { %v654_v25 = vpop.f32.mrf.mxu1  ;;  %v1671_v27 = vld [vmem:[#allocation3 + $0x18] sm:$0x3f]  ;;  %1049 = vmatpush1.msra.mxu0 %v808_v22  ;;  %v912_v22 = vld [vmem:[%s2400_s3 + $0x380] sm:$0xff] }
 0x196   : > { %708 = vst [vmem:[#allocation3 + $0x8] sm:$0x3f] %v701_v23  ;;  %v702_v28 = vmax.f32 %v653_v24, 0.0  ;;  %v1429_v29 = vpack.i.bf16 %v1671_v27, %v1669_v26  ;;  %v876_v23 = vld [vmem:[%s2400_s3 + $0x260] sm:$0xff]  ;;  %v807_v24 = vld [vmem:[%s2400_s3 + $0x38] sm:$0xff] }
 0x197   : > { %v655_v30 = vpop.f32.mrf.mxu1  ;;  %v1677_v32 = vld [vmem:[#allocation3 + $0x10] sm:$0x3f]  ;;  %v875_v25 = vld [vmem:[%s2400_s3 + $0x258] sm:$0xff]  ;;  %1050 = vmatprep.subr.mxu0 %v807_v24 }
 0x198   : > { %709 = vst [vmem:[#allocation3 + $0x20] sm:$0x3f] %v702_v28  ;;  %1430 = vrot.lane.b32.xlu0 %v1429_v29, %s1468_s26  ;;  %v1434_v33 = vpack.i.bf16 %v1675_v31, %v1677_v32  ;;  %v806_v28 = vld [vmem:[%s2400_s3 + $0x30] sm:$0xff]  ;;  %v805_v30 = vld [vmem:[%s2400_s3 + $0x28] sm:$0xff] }
 0x199   : > { %v691_v34 = vpop.f32.mrf.mxu1  ;;  %v874_v29 = vld [vmem:[%s2400_s3 + $0x250] sm:$0xff]  ;;  %1051 = vmatpush1.msra.mxu0 %v806_v28  ;;  %v840_v28 = vld [vmem:[%s2400_s3 + $0x140] sm:$0xff] }
 0x19a   : > { %v692_v35 = vadd.f32 %v691_v34, %v503_v2  ;;  %1435 = vrot.lane.b32.xlu1 %v1434_v33, %s1468_s26  ;;  %v886_v2 = vld [vmem:[%s2400_s3 + $0x2b0] sm:$0xff]  ;;  %v873_v33 = vld [vmem:[%s2400_s3 + $0x248] sm:$0xff]  ;;  %v804_v34 = vld [vmem:[%s2400_s3 + $0x20] sm:$0xff]  ;;  %1052 = vmatprep.subr.mxu0 %v805_v30 }
 0x19b   : > { %v1394_v36 = vpop.f32.mrf.mxu1  ;;  %1106 = vmatpush1.msra.mxu1 %v886_v2  ;;  %1053 = vmatpush1.msra.mxu0 %v804_v34  ;;  %v853_v2 = vld [vmem:[%s2400_s3 + $0x1a8] sm:$0xff]  ;;  %v842_v24 = vld [vmem:[%s2400_s3 + $0x150] sm:$0xff]  ;;  %v911_v30 = vld [vmem:[%s2400_s3 + $0x378] sm:$0xff] }
 0x19c   : > { %v703_v3 = vmax.f32 %v692_v35, 0.0  ;;  %1107 = vmatprep.subr.mxu1 %v885_v6  ;;  %v872_v35 = vld [vmem:[%s2400_s3 + $0x240] sm:$0xff]  ;;  %v803_v36 = vld [vmem:[%s2400_s3 + $0x18] sm:$0xff]  ;;  %v910_v34 = vld [vmem:[%s2400_s3 + $0x370] sm:$0xff] }
 0x19d   : > { %v694_v40 = vpop.f32.mrf.mxu1  ;;  %v1695_v42 = vld [vmem:[#allocation3 + $0x8] sm:$0x3f]  ;;  %1108 = vmatpush1.msra.mxu1 %v884_v8  ;;  %1054 = vmatprep.subr.mxu0 %v803_v36  ;;  %v852_v6 = vld [vmem:[%s2400_s3 + $0x1a0] sm:$0xff]  ;;  %v851_v8 = vld [vmem:[%s2400_s3 + $0x198] sm:$0xff] }
 0x19e   : > { %710 = vst [vmem:[#allocation3 + $0x28] sm:$0x3f] %v703_v3  ;;  %1109 = vmatprep.subr.mxu1 %v883_v9  ;;  %v871_v3 = vld [vmem:[%s2400_s3 + $0x238] sm:$0xff]  ;;  %v869_v40 = vld [vmem:[%s2400_s3 + $0x228] sm:$0xff]  ;;  %1055 = vmatpush1.msra.mxu0 %v802_v37  ;;  %v850_v9 = vld [vmem:[%s2400_s3 + $0x190] sm:$0xff] }
 0x19f   : > { %v1700_v44 = vld [vmem:[#allocation3 + $0x20] sm:$0x3f]  ;;  %v1395_v45 = vpop.f32.mrf.mxu1  ;;  %1110 = vmatpush1.msra.mxu1 %v882_v11  ;;  %1056 = vmatprep.subr.mxu0 %v801_v39  ;;  %v849_v11 = vld [vmem:[%s2400_s3 + $0x188] sm:$0xff]  ;;  %v907_v39 = vld [vmem:[%s2400_s3 + $0x358] sm:$0xff] }
 0x1a0   : > { %v1439_v49 = vpack.i.bf16 %v1700_v44, %v1695_v42  ;;  %1111 = vmatprep.subr.mxu1 %v881_v13  ;;  %v863_v45 = vld [vmem:[%s2400_s3 + $0x1f8] sm:$0xff]  ;;  %1057 = vmatpush1.msra.mxu0 %v800_v41  ;;  %v848_v13 = vld [vmem:[%s2400_s3 + $0x180] sm:$0xff]  ;;  %v909_v36 = vld [vmem:[%s2400_s3 + $0x368] sm:$0xff] }
 0x1a1   : > { %1112 = vmatpush1.msra.mxu1 %v880_v15  ;;  %1058 = vmatprep.subr.mxu0 %v863_v45  ;;  %v847_v15 = vld [vmem:[%s2400_s3 + $0x178] sm:$0xff]  ;;  %v908_v37 = vld [vmem:[%s2400_s3 + $0x360] sm:$0xff]  ;;  %v906_v41 = vld [vmem:[%s2400_s3 + $0x350] sm:$0xff] }
 0x1a2   : > { %1440 = vrot.lane.b32.xlu0 %v1439_v49, %s1468_s26  ;;  %1113 = vmatprep.subr.mxu1 %v879_v17  ;;  %v866_v49 = vld [vmem:[%s2400_s3 + $0x210] sm:$0xff] }
 0x1a3   : > { %1114 = vmatpush1.msra.mxu1 %v878_v19  ;;  %1059 = vmatpush2.msra.mxu0 %v862_v48  ;;  %v846_v17 = vld [vmem:[%s2400_s3 + $0x170] sm:$0xff]  ;;  %v845_v19 = vld [vmem:[%s2400_s3 + $0x168] sm:$0xff] }
 0x1a4   : > { %1115 = vmatprep.subr.mxu1 %v877_v21  ;;  %1060 = vmatprep.subr.mxu0 %v861_v50  ;;  %v844_v21 = vld [vmem:[%s2400_s3 + $0x160] sm:$0xff]  ;;  %v905_v50 = vld [vmem:[%s2400_s3 + $0x348] sm:$0xff] }
 0x1a5   : > { %1116 = vmatpush1.msra.mxu1 %v876_v23  ;;  %1061 = vmatpush2.msra.mxu0 %v860_v52  ;;  %v843_v23 = vld [vmem:[%s2400_s3 + $0x158] sm:$0xff] }
 0x1a6   : > { %1117 = vmatprep.subr.mxu1 %v875_v25  ;;  %1062 = vmatprep.subr.mxu0 %v859_v54  ;;  %v841_v25 = vld [vmem:[%s2400_s3 + $0x148] sm:$0xff] }
 0x1a7   : > { %1118 = vmatpush1.msra.mxu1 %v874_v29  ;;  %1063 = vmatpush2.msra.mxu0 %v858_v56  ;;  %v839_v29 = vld [vmem:[%s2400_s3 + $0x138] sm:$0xff] }
 0x1a8   : > { %1119 = vmatprep.subr.mxu1 %v873_v33  ;;  %1064 = vmatprep.subr.mxu0 %v857_v58  ;;  %v838_v33 = vld [vmem:[%s2400_s3 + $0x130] sm:$0xff]  ;;  %v903_v56 = vld [vmem:[%s2400_s3 + $0x338] sm:$0xff] }
 0x1a9   : > { %1120 = vmatpush1.msra.mxu1 %v872_v35  ;;  %1065 = vmatpush2.msra.mxu0 %v856_v60  ;;  %v837_v35 = vld [vmem:[%s2400_s3 + $0x128] sm:$0xff] }
 0x1aa   : > { %1121 = vmatprep.subr.mxu1 %v871_v3  ;;  %1066 = vmatprep.subr.mxu0 %v855_v63  ;;  %v836_v3 = vld [vmem:[%s2400_s3 + $0x120] sm:$0xff] }
 0x1ab   : > { %1122 = vmatpush1.msra.mxu1 %v870_v38  ;;  %1067 = vmatpush2.msra.mxu0 %v854_v4  ;;  %v835_v38 = vld [vmem:[%s2400_s3 + $0x118] sm:$0xff]  ;;  %v901_v4 = vld [vmem:[%s2400_s3 + $0x328] sm:$0xff] }
 0x1ac   : > { %1123 = vmatprep.subr.mxu1 %v869_v40  ;;  %1068 = vmatprep.subr.mxu0 %v853_v2  ;;  %v834_v40 = vld [vmem:[%s2400_s3 + $0x110] sm:$0xff]  ;;  %v897_v2 = vld [vmem:[%s2400_s3 + $0x308] sm:$0xff] }
 0x1ad   : > { %1124 = vmatpush1.msra.mxu1 %v868_v43  ;;  %1069 = vmatpush2.msra.mxu0 %v852_v6 }
 0x1ae   : > { %1125 = vmatprep.subr.mxu1 %v867_v47  ;;  %1070 = vmatprep.subr.mxu0 %v851_v8  ;;  %v959_v8 = vld [vmem:[%s2400_s3 + $0x4f8] sm:$0xff] }
 0x1af   : > { %1126 = vmatpush1.msra.mxu1 %v866_v49  ;;  %1071 = vmatpush2.msra.mxu0 %v850_v9  ;;  %v833_v49 = vld [vmem:[%s2400_s3 + $0x108] sm:$0xff] }
 0x1b0   : > { %1127 = vmatprep.subr.mxu1 %v865_v51  ;;  %1072 = vmatprep.subr.mxu0 %v849_v11  ;;  %v832_v51 = vld [vmem:[%s2400_s3 + $0x100] sm:$0xff] }
 0x1b1   : > { %1128 = vmatpush1.msra.mxu1 %v864_v53  ;;  %1073 = vmatpush2.msra.mxu0 %v848_v13 }
 0x1b2   : > { %1129 = vmatprep.subr.mxu1 %v927_v55  ;;  %1074 = vmatprep.subr.mxu0 %v847_v15  ;;  %v904_v55 = vld [vmem:[%s2400_s3 + $0x340] sm:$0xff] }
 0x1b3   : > { %1130 = vmatpush2.msra.mxu1 %v926_v57  ;;  %1075 = vmatpush2.msra.mxu0 %v846_v17  ;;  %v902_v57 = vld [vmem:[%s2400_s3 + $0x330] sm:$0xff] }
 0x1b4   : > { %1131 = vmatprep.subr.mxu1 %v925_v59  ;;  %1076 = vmatprep.subr.mxu0 %v845_v19 }
 0x1b5   : > { %1132 = vmatpush2.msra.mxu1 %v924_v61  ;;  %1077 = vmatpush2.msra.mxu0 %v844_v21 }
 0x1b6   : > { %1133 = vmatprep.subr.mxu1 %v923_v0  ;;  %1078 = vmatprep.subr.mxu0 %v843_v23 }
 0x1b7   : > { %1134 = vmatpush2.msra.mxu1 %v922_v1  ;;  %1079 = vmatpush2.msra.mxu0 %v842_v24  ;;  %v900_v1 = vld [vmem:[%s2400_s3 + $0x320] sm:$0xff]  ;;  %v958_v24 = vld [vmem:[%s2400_s3 + $0x4f0] sm:$0xff] }
 0x1b8   : > { %1135 = vmatprep.subr.mxu1 %v921_v5  ;;  %1080 = vmatprep.subr.mxu0 %v841_v25 }
 0x1b9   : > { %1136 = vmatpush2.msra.mxu1 %v920_v7  ;;  %1081 = vmatpush2.msra.mxu0 %v840_v28  ;;  %v896_v7 = vld [vmem:[%s2400_s3 + $0x300] sm:$0xff]  ;;  %v957_v28 = vld [vmem:[%s2400_s3 + $0x4e8] sm:$0xff] }
 0x1ba   : > { %1137 = vmatprep.subr.mxu1 %v919_v46  ;;  %1082 = vmatprep.subr.mxu0 %v839_v29  ;;  %v956_v29 = vld [vmem:[%s2400_s3 + $0x4e0] sm:$0xff] }
 0x1bb   : > { %1138 = vmatpush2.msra.mxu1 %v918_v10  ;;  %1083 = vmatpush2.msra.mxu0 %v838_v33  ;;  %v717_v10 = vld [vmem:[#allocation3 + $0x28] sm:$0x3f] }
 0x1bc   : > { %1139 = vmatprep.subr.mxu1 %v917_v12  ;;  %1084 = vmatprep.subr.mxu0 %v837_v35  ;;  %v954_v35 = vld [vmem:[%s2400_s3 + $0x4d0] sm:$0xff] }
 0x1bd   : > { %1140 = vmatpush2.msra.mxu1 %v916_v14  ;;  %1085 = vmatpush2.msra.mxu0 %v836_v3  ;;  %v1015_v14 = vld [vmem:[%s2400_s3 + $0x6b8] sm:$0x7f] }
 0x1be   : > { %1141 = vmatprep.subr.mxu1 %v915_v16  ;;  %1086 = vmatprep.subr.mxu0 %v835_v38  ;;  %v952_v38 = vld [vmem:[%s2400_s3 + $0x4c0] sm:$0xff] }
 0x1bf   : > { %1142 = vmatpush2.msra.mxu1 %v914_v18  ;;  %1087 = vmatpush2.msra.mxu0 %v834_v40 }
 0x1c0   : > { %1143 = vmatprep.subr.mxu1 %v913_v20  ;;  %1088 = vmatprep.subr.mxu0 %v833_v49  ;;  %v948_v49 = vld [vmem:[%s2400_s3 + $0x4a0] sm:$0xff] }
 0x1c1   : > { %1144 = vmatpush2.msra.mxu1 %v912_v22  ;;  %1089 = vmatpush2.msra.mxu0 %v832_v51  ;;  %v947_v51 = vld [vmem:[%s2400_s3 + $0x498] sm:$0xff] }
 0x1c2   : > { %1145 = vmatprep.subr.mxu1 %v911_v30  ;;  %1168 = vmatprep.subr.mxu0 %v959_v8  ;;  %v936_v8 = vld [vmem:[%s2400_s3 + $0x440] sm:$0xff] }
 0x1c3   : > { %1146 = vmatpush2.msra.mxu1 %v910_v34 }
 0x1c4   : > { %1147 = vmatprep.subr.mxu1 %v909_v36  ;;  %v953_v36 = vld [vmem:[%s2400_s3 + $0x4c8] sm:$0xff] }
 0x1c5   : > { %1148 = vmatpush2.msra.mxu1 %v908_v37 }
 0x1c6   : > { %1149 = vmatprep.subr.mxu1 %v907_v39 }
 0x1c7   : > { %1150 = vmatpush2.msra.mxu1 %v906_v41  ;;  %v951_v41 = vld [vmem:[%s2400_s3 + $0x4b8] sm:$0xff] }
 0x1c8   : > { %1151 = vmatprep.subr.mxu1 %v905_v50  ;;  %v1012_v50 = vld [vmem:[%s2400_s3 + $0x6a0] sm:$0xff] }
 0x1c9   : > { %1152 = vmatpush2.msra.mxu1 %v904_v55  ;;  %v945_v55 = vld [vmem:[%s2400_s3 + $0x488] sm:$0xff] }
 0x1ca   : > { %1153 = vmatprep.subr.mxu1 %v903_v56  ;;  %v1009_v56 = vld [vmem:[%s2400_s3 + $0x688] sm:$0xff] }
 0x1cb   : > { %1154 = vmatpush2.msra.mxu1 %v902_v57  ;;  %v944_v57 = vld [vmem:[%s2400_s3 + $0x480] sm:$0xff] }
 0x1cc   : > { %1155 = vmatprep.subr.mxu1 %v901_v4  ;;  %v1005_v4 = vld [vmem:[%s2400_s3 + $0x668] sm:$0xff] }
 0x1cd   : > { %1156 = vmatpush2.msra.mxu1 %v900_v1  ;;  %v940_v1 = vld [vmem:[%s2400_s3 + $0x460] sm:$0xff] }
 0x20a   : > { %v1431_v43 = vpop.permute.xlu0 %1430 }
 0x20b   : > { %v1433_v45 = vunpack.i.h.bf16 %v1431_v43  ;;  %v1432_v47 = vunpack.i.l.bf16 %v1431_v43  ;;  %v950_v43 = vld [vmem:[%s2400_s3 + $0x4b0] sm:$0xff] }
 0x20c   : > { %v1436_v48 = vpop.permute.xlu1 %1435 }
 0x20d   : > { %v740_v52 = vsel %vm208_vm6, %v1432_v47, %v1433_v45  ;;  %v1438_v53 = vunpack.i.h.bf16 %v1436_v48  ;;  %v1437_v54 = vunpack.i.l.bf16 %v1436_v48  ;;  %v1013_v48 = vld [vmem:[%s2400_s3 + $0x6a8] sm:$0xff] }
 0x20e   : > { %v753_v61 = vmax.f32 %v1669_v26, %v740_v52  ;;  %v899_v26 = vld [vmem:[%s2400_s3 + $0x318] sm:$0xff] }
 0x20f   : > { %v741_v58 = vsel %vm208_vm6, %v1433_v45, %v1437_v54  ;;  %v739_v59 = vsel %vm208_vm6, %v1438_v53, %v1432_v47  ;;  %1157 = vmatprep.subr.mxu1 %v899_v26  ;;  %v1014_v45 = vld [vmem:[%s2400_s3 + $0x6b0] sm:$0x7f]  ;;  %v949_v47 = vld [vmem:[%s2400_s3 + $0x4a8] sm:$0xff]  ;;  %v1011_v52 = vld [vmem:[%s2400_s3 + $0x698] sm:$0xff] }
 0x210   : > { %v752_v60 = vmax.f32 %v1675_v31, %v739_v59  ;;  %v2062_v63 = vmax.f32 %v1671_v27, %v741_v58  ;;  %v898_v27 = vld [vmem:[%s2400_s3 + $0x310] sm:$0xff]  ;;  %v1008_v58 = vld [vmem:[%s2400_s3 + $0x680] sm:$0xff]  ;;  %v943_v59 = vld [vmem:[%s2400_s3 + $0x478] sm:$0xff] }
 0x211   : > { %1158 = vmatpush2.msra.mxu1 %v898_v27  ;;  %v946_v53 = vld [vmem:[%s2400_s3 + $0x490] sm:$0xff]  ;;  %v1004_v26 = vld [vmem:[%s2400_s3 + $0x660] sm:$0xff]  ;;  %v939_v27 = vld [vmem:[%s2400_s3 + $0x458] sm:$0xff] }
 0x212   : > { %766 = vrot.lane.b32.xlu0 %v752_v60, %s1471_s29  ;;  %v1444_v0 = vpack.i.bf16 %v2062_v63, %v753_v61  ;;  %1159 = vmatprep.subr.mxu1 %v897_v2  ;;  %v938_v2 = vld [vmem:[%s2400_s3 + $0x450] sm:$0xff] }
 0x213   : > { %1160 = vmatpush2.msra.mxu1 %v896_v7  ;;  %v1001_v7 = vld [vmem:[%s2400_s3 + $0x648] sm:$0xff] }
 0x214   : > { %v1441_v31 = vpop.permute.xlu0 %1440  ;;  %1445 = vrot.lane.b32.xlu1 %v1444_v0, %s1471_s29  ;;  %1379 = vmatprep.subr.msk.mxu1 %vm1019_vm9, %v1015_v14  ;;  %v941_v0 = vld [vmem:[%s2400_s3 + $0x468] sm:$0xff] }
 0x215   : > { %v1443_v5 = vunpack.i.h.bf16 %v1441_v31  ;;  %v1442_v6 = vunpack.i.l.bf16 %v1441_v31  ;;  %v1003_v31 = vld [vmem:[%s2400_s3 + $0x658] sm:$0xff]  ;;  %v933_v14 = vld [vmem:[%s2400_s3 + $0x428] sm:$0xff] }
 0x217   : > { %v742_v46 = vsel %vm208_vm6, %v1437_v54, %v1442_v6  ;;  %v743_v9 = vsel %vm208_vm6, %v1442_v6, %v1443_v5  ;;  %v1010_v54 = vld [vmem:[%s2400_s3 + $0x690] sm:$0xff]  ;;  %v937_v6 = vld [vmem:[%s2400_s3 + $0x448] sm:$0xff] }
 0x218   : > { %737 = vrot.lane.b32.xlu1 %v717_v10, %s1468_s26  ;;  %v755_v11 = vmax.f32 %v1677_v32, %v742_v46  ;;  %v2093_v12 = vmax.f32 %v1695_v42, %v743_v9  ;;  %v1000_v46 = vld [vmem:[%s2400_s3 + $0x640] sm:$0xff]  ;;  %v935_v9 = vld [vmem:[%s2400_s3 + $0x438] sm:$0xff] }
 0x21a   : > { %v1449_v13 = vpack.i.bf16 %v2093_v12, %v755_v11 }
 0x21c   : > { %1450 = vrot.lane.b32.xlu0 %v1449_v13, %s1471_s29  ;;  %v998_v13 = vld [vmem:[%s2400_s3 + $0x630] sm:$0xff] }
 0x284   : > { %v767_v18 = vpop.permute.xlu0 %766 }
 0x286   : > { %v1446_v15 = vpop.permute.xlu1 %1445 }
 0x287   : > { %v1448_v16 = vunpack.i.h.bf16 %v1446_v15  ;;  %v1447_v17 = vunpack.i.l.bf16 %v1446_v15  ;;  %v997_v15 = vld [vmem:[%s2400_s3 + $0x628] sm:$0xff] }
 0x289   : > { %v781_v32 = vsel %vm252_vm11, %v1447_v17, %v1448_v16  ;;  %v780_v42 = vsel %vm252_vm11, %v767_v18, %v1447_v17  ;;  %v996_v17 = vld [vmem:[%s2400_s3 + $0x620] sm:$0xff]  ;;  %v931_v18 = vld [vmem:[%s2400_s3 + $0x418] sm:$0xff] }
 0x28a   : > { %v738_v19 = vpop.permute.xlu1 %737  ;;  %v794_v20 = vmax.f32 %v753_v61, %v781_v32  ;;  %v793_v21 = vmax.f32 %v752_v60, %v780_v42  ;;  %v1007_v60 = vld [vmem:[%s2400_s3 + $0x678] sm:$0xff]  ;;  %v942_v61 = vld [vmem:[%s2400_s3 + $0x470] sm:$0xff] }
 0x28b   : > { %v744_v22 = vsel %vm208_vm6, %v1443_v5, %v738_v19  ;;  %v2104_v23 = vmax.f32 %v717_v10, %v738_v19  ;;  %v1002_v5 = vld [vmem:[%s2400_s3 + $0x650] sm:$0xff]  ;;  %v999_v10 = vld [vmem:[%s2400_s3 + $0x638] sm:$0xff]  ;;  %vm1311_vm6 = vcmask 553984  }
 0x28c   : > { %v2110_v25 = vmax.f32 %v1700_v44, %v744_v22  ;;  %1090 = vmatprep.mubr.f32.mxu0 %v794_v20  ;;  %v955_v44 = vld [vmem:[%s2400_s3 + $0x4d8] sm:$0xff]  ;;  %v930_v42 = vld [vmem:[%s2400_s3 + $0x410] sm:$0xff]  ;;  %v929_v20 = vld [vmem:[%s2400_s3 + $0x408] sm:$0xff] }
 0x28d   : > { %778 = vrot.lane.b32.xlu0 %v2104_v23, %s1471_s29  ;;  %1091 = vmatmul.mubr.f32.vlgmr.msra.gmra.mxu0 %v793_v21  ;;  %v995_v32 = vld [vmem:[%s2400_s3 + $0x618] sm:$0xff]  ;;  %v994_v19 = vld [vmem:[%s2400_s3 + $0x610] sm:$0xff]  ;;  %v993_v21 = vld [vmem:[%s2400_s3 + $0x608] sm:$0xff] }
 0x28e   : > { %v2120_v30 = vpop.permute.xlu0 %1450  ;;  %776 = vrot.lane.b32.xlu1 %v2110_v25, %s1471_s29  ;;  %1169 = vmatpush1.msra.mxu0 %v958_v24  ;;  %v928_v22 = vld [vmem:[%s2400_s3 + $0x400] sm:$0xff] }
 0x28f   : > { %v1453_v33 = vunpack.i.h.bf16 %v2120_v30  ;;  %v1452_v34 = vunpack.i.l.bf16 %v2120_v30  ;;  %1170 = vmatprep.subr.mxu0 %v957_v28  ;;  %v992_v24 = vld [vmem:[%s2400_s3 + $0x600] sm:$0xff]  ;;  %v991_v28 = vld [vmem:[%s2400_s3 + $0x5f8] sm:$0xff] }
 0x290   : > { %1171 = vmatpush1.msra.mxu0 %v956_v29  ;;  %v990_v29 = vld [vmem:[%s2400_s3 + $0x5f0] sm:$0xff] }
 0x291   : > { %v782_v3 = vsel %vm252_vm11, %v1448_v16, %v1452_v34  ;;  %v783_v37 = vsel %vm252_vm11, %v1452_v34, %v1453_v33  ;;  %1172 = vmatprep.subr.mxu0 %v955_v44  ;;  %v932_v16 = vld [vmem:[%s2400_s3 + $0x420] sm:$0xff]  ;;  %v989_v44 = vld [vmem:[%s2400_s3 + $0x5e8] sm:$0xff] }
 0x292   : > { %v795_v39 = vmax.f32 %v2062_v63, %v782_v3  ;;  %v796_v40 = vmax.f32 %v755_v11, %v783_v37  ;;  %1173 = vmatpush1.msra.mxu0 %v954_v35  ;;  %v1006_v63 = vld [vmem:[%s2400_s3 + $0x670] sm:$0xff]  ;;  %v988_v34 = vld [vmem:[%s2400_s3 + $0x5e0] sm:$0xff]  ;;  %v987_v35 = vld [vmem:[%s2400_s3 + $0x5d8] sm:$0xff] }
 0x293   : > { %1174 = vmatprep.subr.mxu0 %v953_v36  ;;  %v934_v11 = vld [vmem:[%s2400_s3 + $0x430] sm:$0xff]  ;;  %v985_v3 = vld [vmem:[%s2400_s3 + $0x5c8] sm:$0xff]  ;;  %v983_v37 = vld [vmem:[%s2400_s3 + $0x5b8] sm:$0xff] }
 0x294   : > { %1161 = vmatprep.mubr.f32.mxu1 %v796_v40  ;;  %1175 = vmatpush1.msra.mxu0 %v952_v38  ;;  %v986_v36 = vld [vmem:[%s2400_s3 + $0x5d0] sm:$0xff]  ;;  %v980_v40 = vld [vmem:[%s2400_s3 + $0x5a0] sm:$0xff] }
 0x295   : > { %1162 = vmatmul.mubr.f32.vlgmr.msra.gmra.mxu1 %v795_v39  ;;  %1176 = vmatprep.subr.mxu0 %v951_v41  ;;  %v982_v38 = vld [vmem:[%s2400_s3 + $0x5b0] sm:$0xff]  ;;  %v981_v39 = vld [vmem:[%s2400_s3 + $0x5a8] sm:$0xff]  ;;  %v979_v41 = vld [vmem:[%s2400_s3 + $0x598] sm:$0xff] }
 0x296   : > { %1177 = vmatpush1.msra.mxu0 %v950_v43  ;;  %1380 = vmatpush1.msk.msra.mxu1 %vm1019_vm9, %v1014_v45  ;;  %v978_v43 = vld [vmem:[%s2400_s3 + $0x590] sm:$0xff]  ;;  %v977_v45 = vld [vmem:[%s2400_s3 + $0x588] sm:$0xff] }
 0x297   : > { %1178 = vmatprep.subr.mxu0 %v949_v47  ;;  %1249 = vmatprep.subr.mxu1 %v1013_v48  ;;  %v976_v47 = vld [vmem:[%s2400_s3 + $0x580] sm:$0xff]  ;;  %v975_v48 = vld [vmem:[%s2400_s3 + $0x578] sm:$0xff] }
 0x298   : > { %1179 = vmatpush1.msra.mxu0 %v948_v49  ;;  %1250 = vmatpush1.msra.mxu1 %v1012_v50  ;;  %v974_v49 = vld [vmem:[%s2400_s3 + $0x570] sm:$0xff]  ;;  %v973_v50 = vld [vmem:[%s2400_s3 + $0x568] sm:$0xff] }
 0x299   : > { %1180 = vmatprep.subr.mxu0 %v947_v51  ;;  %1251 = vmatprep.subr.mxu1 %v1011_v52  ;;  %v972_v51 = vld [vmem:[%s2400_s3 + $0x560] sm:$0xff]  ;;  %v971_v52 = vld [vmem:[%s2400_s3 + $0x558] sm:$0xff] }
 0x29a   : > { %1181 = vmatpush1.msra.mxu0 %v946_v53  ;;  %1252 = vmatpush1.msra.mxu1 %v1010_v54  ;;  %v970_v53 = vld [vmem:[%s2400_s3 + $0x550] sm:$0xff]  ;;  %v969_v54 = vld [vmem:[%s2400_s3 + $0x548] sm:$0xff] }
 0x29b   : > { %1182 = vmatprep.subr.mxu0 %v945_v55  ;;  %1253 = vmatprep.subr.mxu1 %v1009_v56  ;;  %v968_v55 = vld [vmem:[%s2400_s3 + $0x540] sm:$0xff]  ;;  %v967_v56 = vld [vmem:[%s2400_s3 + $0x538] sm:$0xff] }
 0x29c   : > { %1183 = vmatpush1.msra.mxu0 %v944_v57  ;;  %1254 = vmatpush1.msra.mxu1 %v1008_v58  ;;  %v966_v57 = vld [vmem:[%s2400_s3 + $0x530] sm:$0xff]  ;;  %v965_v58 = vld [vmem:[%s2400_s3 + $0x528] sm:$0xff] }
 0x29d   : > { %1184 = vmatprep.subr.mxu0 %v943_v59  ;;  %1255 = vmatprep.subr.mxu1 %v1007_v60  ;;  %v964_v59 = vld [vmem:[%s2400_s3 + $0x520] sm:$0xff]  ;;  %v963_v60 = vld [vmem:[%s2400_s3 + $0x518] sm:$0xff] }
 0x29e   : > { %1185 = vmatpush1.msra.mxu0 %v942_v61  ;;  %1256 = vmatpush1.msra.mxu1 %v1006_v63  ;;  %v962_v61 = vld [vmem:[%s2400_s3 + $0x510] sm:$0xff]  ;;  %v961_v63 = vld [vmem:[%s2400_s3 + $0x508] sm:$0xff] }
 0x29f   : > { %1186 = vmatprep.subr.mxu0 %v941_v0  ;;  %1257 = vmatprep.subr.mxu1 %v1005_v4  ;;  %v960_v0 = vld [vmem:[%s2400_s3 + $0x500] sm:$0xff] }
 0x2a0   : > { %1187 = vmatpush1.msra.mxu0 %v940_v1  ;;  %1258 = vmatpush1.msra.mxu1 %v1004_v26 }
 0x2a1   : > { %1188 = vmatprep.subr.mxu0 %v939_v27  ;;  %1259 = vmatprep.subr.mxu1 %v1003_v31 }
 0x2a2   : > { %1189 = vmatpush1.msra.mxu0 %v938_v2  ;;  %1260 = vmatpush1.msra.mxu1 %v1002_v5 }
 0x2a3   : > { %1190 = vmatprep.subr.mxu0 %v937_v6  ;;  %1261 = vmatprep.subr.mxu1 %v1001_v7 }
 0x2a4   : > { %1191 = vmatpush1.msra.mxu0 %v936_v8  ;;  %1262 = vmatpush1.msra.mxu1 %v1000_v46 }
 0x2a5   : > { %1192 = vmatprep.subr.mxu0 %v935_v9  ;;  %1263 = vmatprep.subr.mxu1 %v999_v10 }
 0x2a6   : > { %1193 = vmatpush1.msra.mxu0 %v934_v11  ;;  %1264 = vmatpush1.msra.mxu1 %v998_v13 }
 0x2a7   : > { %1194 = vmatprep.subr.mxu0 %v933_v14  ;;  %1265 = vmatprep.subr.mxu1 %v997_v15 }
 0x2a8   : > { %1195 = vmatpush1.msra.mxu0 %v932_v16  ;;  %1266 = vmatpush1.msra.mxu1 %v996_v17 }
 0x2a9   : > { %1196 = vmatprep.subr.mxu0 %v931_v18  ;;  %1267 = vmatprep.subr.mxu1 %v995_v32 }
 0x2aa   : > { %1197 = vmatpush1.msra.mxu0 %v930_v42  ;;  %1268 = vmatpush1.msra.mxu1 %v994_v19 }
 0x2ab   : > { %1198 = vmatprep.subr.mxu0 %v929_v20  ;;  %1269 = vmatprep.subr.mxu1 %v993_v21 }
 0x2ac   : > { %1199 = vmatpush1.msra.mxu0 %v928_v22  ;;  %1270 = vmatpush1.msra.mxu1 %v992_v24 }
 0x2ad   : > { %1200 = vmatprep.subr.mxu0 %v991_v28  ;;  %1303 = vmatprep.mubr.f32.mxu1 %v1484_v62  ;;  %v984_v62 = vld [vmem:[%s2400_s3 + $0x5c0] sm:$0xff] }
 0x2ae   : > { %1201 = vmatpush2.msra.mxu0 %v990_v29 }
 0x2af   : > { %1202 = vmatprep.subr.mxu0 %v989_v44 }
 0x2b0   : > { %1203 = vmatpush2.msra.mxu0 %v988_v34 }
 0x2b1   : > { %1204 = vmatprep.subr.mxu0 %v987_v35 }
 0x2b2   : > { %1205 = vmatpush2.msra.mxu0 %v986_v36 }
 0x2b3   : > { %1206 = vmatprep.subr.mxu0 %v985_v3 }
 0x2b4   : > { %1207 = vmatpush2.msra.mxu0 %v984_v62 }
 0x2b5   : > { %1208 = vmatprep.subr.mxu0 %v983_v37 }
 0x2b6   : > { %1209 = vmatpush2.msra.mxu0 %v982_v38 }
 0x2b7   : > { %1210 = vmatprep.subr.mxu0 %v981_v39 }
 0x2b8   : > { %1211 = vmatpush2.msra.mxu0 %v980_v40 }
 0x2b9   : > { %1212 = vmatprep.subr.mxu0 %v979_v41 }
 0x2ba   : > { %1213 = vmatpush2.msra.mxu0 %v978_v43 }
 0x2bb   : > { %1214 = vmatprep.subr.mxu0 %v977_v45 }
 0x2bc   : > { %1215 = vmatpush2.msra.mxu0 %v976_v47 }
 0x2bd   : > { %1216 = vmatprep.subr.mxu0 %v975_v48 }
 0x2be   : > { %1217 = vmatpush2.msra.mxu0 %v974_v49 }
 0x2bf   : > { %1218 = vmatprep.subr.mxu0 %v973_v50 }
 0x2c0   : > { %1219 = vmatpush2.msra.mxu0 %v972_v51 }
 0x2c1   : > { %1220 = vmatprep.subr.mxu0 %v971_v52 }
 0x2c2   : > { %1221 = vmatpush2.msra.mxu0 %v970_v53 }
 0x2c3   : > { %1222 = vmatprep.subr.mxu0 %v969_v54 }
 0x2c4   : > { %1223 = vmatpush2.msra.mxu0 %v968_v55 }
 0x2c5   : > { %1224 = vmatprep.subr.mxu0 %v967_v56 }
 0x2c6   : > { %1225 = vmatpush2.msra.mxu0 %v966_v57 }
 0x2c7   : > { %1226 = vmatprep.subr.mxu0 %v965_v58 }
 0x2c8   : > { %1227 = vmatpush2.msra.mxu0 %v964_v59 }
 0x2c9   : > { %1228 = vmatprep.subr.mxu0 %v963_v60 }
 0x2ca   : > { %1229 = vmatpush2.msra.mxu0 %v962_v61 }
 0x2cb   : > { %1230 = vmatprep.subr.mxu0 %v961_v63 }
 0x2cc   : > { %1231 = vmatpush2.msra.mxu0 %v960_v0 }
 0x2ff   : > { %v779_v4 = vpop.permute.xlu0 %778 }
 0x300   : > { %v799_v1 = vmax.f32 %v2104_v23, %v779_v4  ;;  %v777_v26 = vpop.permute.xlu1 %776 }
 0x301   : > { %v784_v27 = vsel %vm252_vm11, %v1453_v33, %v777_v26  ;;  %v785_v31 = vsel %vm252_vm11, %v777_v26, %v779_v4 }
 0x302   : > { %v797_v2 = vmax.f32 %v2093_v12, %v784_v27  ;;  %v798_v5 = vmax.f32 %v2110_v25, %v785_v31  ;;  %1381 = vmatmul.mubr.msk.f32.vlgmr.msra.gmra.mxu1 %vm263_vm12, %v799_v1 }
 0x304   : > { %1232 = vmatprep.mubr.f32.mxu0 %v798_v5 }
 0x305   : > { %1233 = vmatmul.mubr.f32.vlgmr.msra.gmra.mxu0 %v797_v2 }
 0x34d   : > { %v1092_v6 = vpop.f32.mrf.mxu0 }
 0x34f   : > { %v1094_v8 = vpop.f32.mrf.mxu0 }
 0x355   : > { %v1163_v7 = vpop.f32.mrf.mxu1 }
 0x356   : > { %v1164_v23 = vadd.f32 %v1163_v7, %v1092_v6 }
 0x357   : > { %v1165_v46 = vpop.f32.mrf.mxu1 }
 0x358   : > { %v1166_v10 = vadd.f32 %v1165_v46, %v1094_v8 }
 0x3c2   : > { %v1305_v9 = vpop.f32.mrf.mxu1 }
 0x3c4   : > { %v1307_v13 = vpop.f32.mrf.mxu1 }
 0x3c5   : > { %v1234_v30 = vpop.f32.mrf.mxu0 }
 0x3c6   : > { %v1235_v33 = vadd.f32 %v1234_v30, %v1164_v23 }
 0x3c7   : > { %v1236_v12 = vpop.f32.mrf.mxu0 }
 0x3c8   : > { %v1306_v25 = vadd.f32 %v1305_v9, %v1235_v33  ;;  %v1237_v11 = vadd.f32 %v1236_v12, %v1166_v10 }
 0x3ca   : > { %1310 = vst [vmem:[%s194_s22] sm:$0x3f] %v1306_v25  ;;  %v1308_v14 = vadd.f32 %v1307_v13, %v1237_v11 }
 0x3cc   : > { %1312 = vst.msk [vmem:[%s194_s22 + $0x8] sm:$0x3f] %vm1311_vm6, %v1308_v14 }
 0x3cd PF: > { %s14_s15 = sadd.s32 1, %s1461_s15  }
 0x3ce   : > { %p11_p4 = scmp.ge.s32.totalorder %s14_s15, 4  }
 0x3d0   :  { %13 = sbr.rel (!%p11_p4) target bundleno = 1 (0x1), region = 90 }

// kernel: lenet_forward.5
= control target key start
LH: loop header
LB: loop body
LE: loop exit
PB: predicated region body
PF: predicated region fallthrough
CT: control target
= control target key end

     0   :  { %s1203_s15 = smov 0   ;;  %s1540_s0 = inlined_call_operand.vmem [shape: f32[2,6,342], index: 0, kind: input, shape index: {}]   ;;  %s1541_s1 = inlined_call_operand.vmem [shape: bf16[12,150], index: 1, kind: input, shape index: {}]   ;;  %s1542_s2 = inlined_call_operand.vmem [shape: f32[12,1], index: 2, kind: input, shape index: {}]   ;;  %s1543_s3 = inlined_call_operand.vmem [shape: f32[233,49], index: 3, kind: input, shape index: {}]   ;;  %s1544_s4 = inlined_call_operand.vmem [shape: f32[2,12,49], index: 4, kind: output, shape index: {}]  }
   0x1 LB: > { %s1086_s16 = sadd.s32 4294967295, %s1150_s15   ;;  %p1090_p0 = scmp.ge.s32.totalorder %s1150_s15, 1  ;;  %s1150_s15 = sphi %s1203_s15, %s14_s15  }
   0x2   : > { %p162_p1 = scmp.lt.s32.totalorder %s1150_s15, 3 }
   0x4   : > { %p163_p2 = pnand %p1090_p0, %p162_p1 }
   0x5   : > { %p188_p3 = scmp.lt.s32.totalorder (!%p163_p2), %s1086_s16, 1  ;;  %s1152_s21 = smov (!%p163_p2), 56  }
   0x6   : > { %166 = sbr.rel (%p163_p2) target bundleno = 919 (0x397), region = 36  ;;  %s1153_s22 = smov (!%p163_p2), 70  }
   0x7   : > { %s1154_s23 = smov (!%p163_p2), 71   ;;  %s1155_s24 = smov (!%p163_p2), 55  }
   0x8   : > { %s1156_s25 = smov (!%p163_p2), 73   ;;  %s1157_s26 = smov (!%p163_p2), 72  }
   0x9   : > { %s1158_s27 = smov (!%p163_p2), 89   ;;  %s1159_s28 = smov (!%p163_p2), 88  }
   0xa   : > { %s1160_s29 = smov (!%p163_p2), 74   ;;  %s1161_s30 = smov (!%p163_p2), 92  }
   0xb   : > { %s1546_s16 = smov (!%p188_p3, %s1086_s16), 1  ;;  %vm202_vm0 = vcmask 1012736   ;;  %s1162_s5 = smov 91   ;;  %vm624_vm1 = vcmask 457728   ;;  %vm259_vm2 = vcmask 1014786   ;;  %vm605_vm3 = vcmask 572416  }
   0xc   : > { %s1104_s17 = smul.u32 24, %s1546_s16  ;;  %s1163_s6 = smov 90   ;;  %vm239_vm4 = vcmask 1014788   ;;  %vm581_vm5 = vcmask 580608   ;;  %vm242_vm6 = vcmask 1008640   ;;  %vm219_vm7 = vcmask 1014790  }
   0xd   : > { %s1164_s7 = smov 107   ;;  %s1165_s8 = smov 106   ;;  %vm646_vm8 = vcmask 449536   ;;  %vm222_vm9 = vcmask 1010688   ;;  %vm801_vm10 = vcmask 179200   ;;  %vm535_vm11 = vcmask 596992  }
   0xe   : > { %s1217_s20 = scalar_lea.vmem %s1540_s0, %s1104_s17  ;;  %s1166_s9 = smov 110   ;;  %vm557_vm12 = vcmask 588800   ;;  %vm468_vm13 = vcmask 728064   ;;  %vm492_vm14 = vcmask 719872   ;;  %vm516_vm15 = vcmask 605184  }
   0xf   : > { %v614_v0 = vld [vmem:[%s1217_s20 + $0x10] sm:$0x3f]  ;;  %v613_v1 = vld [vmem:[%s1217_s20 + $0x8] sm:$0x3f]  ;;  %v590_v14 = vld [vmem:[%s1217_s20] sm:$0x3f] }
  0x10   : > { %v591_v2 = vld [vmem:[%s1217_s20 + $0x8] sm:$0x3f]  ;;  %622 = vrot.lane.b32.xlu1 %v614_v0, %s1152_s21  ;;  %620 = vrot.lane.b32.xlu0 %v613_v1, %s1152_s21  ;;  %v592_v6 = vld [vmem:[%s1217_s20 + $0x10] sm:$0x3f]  ;;  %v596_v16 = vrot.slane %v590_v14, 6  ;;  %s1167_s10 = smov 109  }
  0x11   : > { %v597_v3 = vrot.slane %v591_v2, 6  ;;  %v567_v4 = vld [vmem:[%s1217_s20 + $0x8] sm:$0x3f]  ;;  %v568_v7 = vld [vmem:[%s1217_s20 + $0x10] sm:$0x3f]  ;;  %v598_v8 = vrot.slane %v592_v6, 6 }
  0x12   : > { %v573_v5 = vrot.slane %v567_v4, 4  ;;  %v574_v9 = vrot.slane %v568_v7, 4  ;;  %v633_v10 = vld [vmem:[%s1217_s20 + $0x10] sm:$0x3f]  ;;  %v632_v11 = vld [vmem:[%s1217_s20 + $0x8] sm:$0x3f] }
  0x13   : > { %v639_v12 = vrot.slane %v633_v10, 2  ;;  %v638_v13 = vrot.slane %v632_v11, 2  ;;  %v566_v15 = vld [vmem:[%s1217_s20] sm:$0x3f]  ;;  %v525_v21 = vld [vmem:[%s1217_s20 + $0x10] sm:$0x3f] }
  0x14   : > { %601 = vrot.lane.b32.xlu1 %v597_v3, %s1153_s22  ;;  %577 = vrot.lane.b32.xlu0 %v573_v5, %s1154_s23  ;;  %v572_v17 = vrot.slane %v566_v15, 4  ;;  %v631_v18 = vld [vmem:[%s1217_s20] sm:$0x3f]  ;;  %v524_v22 = vld [vmem:[%s1217_s20 + $0x8] sm:$0x3f]  ;;  %s1168_s11 = smov 108  }
  0x15   : > { %v637_v19 = vrot.slane %v631_v18, 2  ;;  %v612_v20 = vld [vmem:[%s1217_s20] sm:$0x3f]  ;;  %v544_v23 = vld [vmem:[%s1217_s20 + $0x10] sm:$0x3f]  ;;  %s1169_s12 = smov 126  }
  0x16   : > { %v543_v24 = vld [vmem:[%s1217_s20 + $0x8] sm:$0x3f]  ;;  %v550_v25 = vrot.slane %v544_v23, 2  ;;  %v542_v27 = vld [vmem:[%s1217_s20] sm:$0x3f]  ;;  %s1170_s13 = smov 125  }
  0x17   : > { %v549_v26 = vrot.slane %v543_v24, 2  ;;  %v200_v28 = vld [vmem:[%s1217_s20 + $0x8] sm:$0x3f]  ;;  %v548_v29 = vrot.slane %v542_v27, 2  ;;  %v523_v30 = vld [vmem:[%s1217_s20] sm:$0x3f] }
  0x18   : > { %603 = vrot.lane.b32.xlu1 %v598_v8, %s1153_s22  ;;  %579 = vrot.lane.b32.xlu0 %v574_v9, %s1154_s23  ;;  %203 = vst.msk [vmem:[#allocation2 + $0x8] sm:$0x3f] %vm202_vm0, %v200_v28  ;;  %v455_v31 = vld [vmem:[%s1217_s20 + $0x10] sm:$0x3f]  ;;  %v454_v32 = vld [vmem:[%s1217_s20 + $0x8] sm:$0x3f] }
  0x19   : > { %v461_v33 = vrot.slane %v455_v31, 2  ;;  %v460_v34 = vrot.slane %v454_v32, 2  ;;  %v479_v35 = vld [vmem:[%s1217_s20 + $0x10] sm:$0x3f]  ;;  %v478_v36 = vld [vmem:[%s1217_s20 + $0x8] sm:$0x3f] }
  0x1a   : > { %v485_v37 = vrot.slane %v479_v35, 4  ;;  %v484_v38 = vrot.slane %v478_v36, 4  ;;  %v503_v39 = vld [vmem:[%s1217_s20 + $0x10] sm:$0x3f]  ;;  %v502_v40 = vld [vmem:[%s1217_s20 + $0x8] sm:$0x3f] }
  0x1b   : > { %v509_v41 = vrot.slane %v503_v39, 6  ;;  %v508_v42 = vrot.slane %v502_v40, 6  ;;  %v477_v43 = vld [vmem:[%s1217_s20] sm:$0x3f]  ;;  %v389_v48 = vld [vmem:[%s1217_s20 + $0x8] sm:$0x3f] }
  0x1c   : > { %644 = vrot.lane.b32.xlu1 %v639_v12, %s1155_s24  ;;  %642 = vrot.lane.b32.xlu0 %v638_v13, %s1155_s24  ;;  %v453_v44 = vld [vmem:[%s1217_s20] sm:$0x3f]  ;;  %v483_v45 = vrot.slane %v477_v43, 4  ;;  %v395_v50 = vrot.slane %v389_v48, 4  ;;  %v390_v51 = vld [vmem:[%s1217_s20 + $0x10] sm:$0x3f] }
  0x1d   : > { %v459_v46 = vrot.slane %v453_v44, 2  ;;  %v501_v47 = vld [vmem:[%s1217_s20] sm:$0x3f]  ;;  %v413_v52 = vld [vmem:[%s1217_s20 + $0x8] sm:$0x3f]  ;;  %v396_v53 = vrot.slane %v390_v51, 4 }
  0x1e   : > { %v507_v49 = vrot.slane %v501_v47, 6  ;;  %v419_v54 = vrot.slane %v413_v52, 6  ;;  %v414_v55 = vld [vmem:[%s1217_s20 + $0x10] sm:$0x3f]  ;;  %v435_v57 = vld [vmem:[%s1217_s20 + $0x8] sm:$0x3f] }
  0x1f   : > { %v420_v56 = vrot.slane %v414_v55, 6  ;;  %v388_v58 = vld [vmem:[%s1217_s20] sm:$0x3f]  ;;  %v436_v60 = vld [vmem:[%s1217_s20 + $0x10] sm:$0x3f]  ;;  %s1171_s14 = smov 124  }
  0x20   : > { %599 = vrot.lane.b32.xlu1 %v596_v16, %s1153_s22  ;;  %575 = vrot.lane.b32.xlu0 %v572_v17, %s1154_s23  ;;  %v394_v59 = vrot.slane %v388_v58, 4  ;;  %v412_v61 = vld [vmem:[%s1217_s20] sm:$0x3f]  ;;  %v347_v0 = vld [vmem:[%s1217_s20 + $0x10] sm:$0x3f]  ;;  %s1172_s17 = smov 127  }
  0x21   : > { %v418_v62 = vrot.slane %v412_v61, 6  ;;  %v434_v63 = vld [vmem:[%s1217_s20] sm:$0x3f]  ;;  %v346_v1 = vld [vmem:[%s1217_s20 + $0x8] sm:$0x3f]  ;;  %s1173_s18 = smov 52  }
  0x22   : > { %v366_v2 = vld [vmem:[%s1217_s20 + $0x10] sm:$0x3f]  ;;  %v365_v3 = vld [vmem:[%s1217_s20 + $0x8] sm:$0x3f]  ;;  %v364_v6 = vld [vmem:[%s1217_s20] sm:$0x3f] }
  0x23   : > { %v372_v4 = vrot.slane %v366_v2, 2  ;;  %v371_v5 = vrot.slane %v365_v3, 2  ;;  %v370_v7 = vrot.slane %v364_v6, 2  ;;  %v345_v8 = vld [vmem:[%s1217_s20] sm:$0x3f]  ;;  %s1174_s19 = smov 54  }
  0x24   : > { %640 = vrot.lane.b32.xlu1 %v637_v19, %s1155_s24  ;;  %618 = vrot.lane.b32.xlu0 %v612_v20, %s1152_s21  ;;  %v277_v9 = vld [vmem:[%s1217_s20 + $0x10] sm:$0x3f]  ;;  %v276_v10 = vld [vmem:[%s1217_s20 + $0x8] sm:$0x3f]  ;;  %s1175_s21 = smov 53   ;;  %s1103_s22 = sshll.u32 %s1546_s16, 4 }
  0x25   : > { %v283_v11 = vrot.slane %v277_v9, 2  ;;  %v282_v12 = vrot.slane %v276_v10, 2  ;;  %v301_v13 = vld [vmem:[%s1217_s20 + $0x10] sm:$0x3f]  ;;  %v300_v14 = vld [vmem:[%s1217_s20 + $0x8] sm:$0x3f] }
  0x26   : > { %v307_v15 = vrot.slane %v301_v13, 4  ;;  %v306_v16 = vrot.slane %v300_v14, 4  ;;  %v325_v17 = vld [vmem:[%s1217_s20 + $0x10] sm:$0x3f]  ;;  %v324_v18 = vld [vmem:[%s1217_s20 + $0x8] sm:$0x3f] }
  0x27   : > { %v331_v19 = vrot.slane %v325_v17, 6  ;;  %v330_v20 = vrot.slane %v324_v18, 6  ;;  %v261_v36 = vld [vmem:[%s1217_s20] sm:$0x3f]  ;;  %v262_v39 = vld [vmem:[%s1217_s20 + $0x8] sm:$0x3f] }
  0x28   : > { %533 = vrot.lane.b32.xlu1 %v525_v21, %s1156_s25  ;;  %531 = vrot.lane.b32.xlu0 %v524_v22, %s1156_s25  ;;  %v299_v21 = vld [vmem:[%s1217_s20] sm:$0x3f]  ;;  %v205_v40 = vld [vmem:[%s1217_s20 + $0x8] sm:$0x3f]  ;;  %v1176_v14 = vmov 0  }
  0x29   : > { %v275_v22 = vld [vmem:[%s1217_s20] sm:$0x3f]  ;;  %v305_v23 = vrot.slane %v299_v21, 4  ;;  %v703_v47 = vld [vmem:[%s1217_s20 + $0x10] sm:$0x3f]  ;;  %1139 = vset.pattern.permute.xlu0 %v1176_v14  ;;  %1140 = vset.pattern.permute.xlu1 %v1176_v14 }
  0x2a   : > { %v281_v24 = vrot.slane %v275_v22, 2  ;;  %v656_v48 = vld [vmem:[%s1217_s20 + $0x8] sm:$0x3f]  ;;  %v681_v55 = vld [vmem:[%s1217_s20 + $0x10] sm:$0x3f]  ;;  %v780_v10 = vld [vmem:[%s1542_s2] sm:$0xff] }
  0x2b   : > { %v662_v52 = vrot.slane %v656_v48, 4  ;;  %v687_v61 = vrot.slane %v681_v55, 6 }
  0x2c   : > { %555 = vrot.lane.b32.xlu1 %v550_v25, %s1157_s26  ;;  %553 = vrot.lane.b32.xlu0 %v549_v26, %s1157_s26  ;;  %v323_v25 = vld [vmem:[%s1217_s20] sm:$0x3f] }
  0x2d   : > { %v224_v26 = vld [vmem:[%s1217_s20] sm:$0x3f]  ;;  %v329_v27 = vrot.slane %v323_v25, 6 }
  0x2e   : > { %v228_v28 = vrot.slane %v224_v26, 4 }
  0x30   : > { %551 = vrot.lane.b32.xlu1 %v548_v29, %s1157_s26  ;;  %529 = vrot.lane.b32.xlu0 %v523_v30, %s1156_s25  ;;  %v225_v29 = vld [vmem:[%s1217_s20 + $0x8] sm:$0x3f]  ;;  %v244_v30 = vld [vmem:[%s1217_s20] sm:$0x3f] }
  0x31   : > { %v229_v31 = vrot.slane %v225_v29, 4  ;;  %v248_v32 = vrot.slane %v244_v30, 6 }
  0x34   : > { %466 = vrot.lane.b32.xlu1 %v461_v33, %s1158_s27  ;;  %464 = vrot.lane.b32.xlu0 %v460_v34, %s1158_s27  ;;  %v245_v33 = vld [vmem:[%s1217_s20 + $0x8] sm:$0x3f]  ;;  %v199_v34 = vld [vmem:[%s1217_s20] sm:$0x3f] }
  0x35   : > { %v249_v35 = vrot.slane %v245_v33, 6  ;;  %201 = vst [vmem:[#allocation2] sm:$0x3f] %v199_v34 }
  0x38   : > { %490 = vrot.lane.b32.xlu1 %v485_v37, %s1159_s28  ;;  %488 = vrot.lane.b32.xlu0 %v484_v38, %s1159_s28  ;;  %v204_v37 = vld [vmem:[%s1217_s20] sm:$0x3f] }
  0x39   : > { %v208_v38 = vrot.slane %v204_v37, 2 }
  0x3c   : > { %514 = vrot.lane.b32.xlu1 %v509_v41, %s1160_s29  ;;  %512 = vrot.lane.b32.xlu0 %v508_v42, %s1160_s29  ;;  %v209_v41 = vrot.slane %v205_v40, 2  ;;  %v701_v42 = vld [vmem:[%s1217_s20] sm:$0x3f] }
  0x40   : > { %486 = vrot.lane.b32.xlu1 %v483_v45, %s1159_s28  ;;  %462 = vrot.lane.b32.xlu0 %v459_v46, %s1158_s27  ;;  %v702_v46 = vld [vmem:[%s1217_s20 + $0x8] sm:$0x3f] }
  0x44   : > { %510 = vrot.lane.b32.xlu0 %v507_v49, %s1160_s29  ;;  %399 = vrot.lane.b32.xlu1 %v395_v50, %s1161_s30  ;;  %v657_v49 = vld [vmem:[%s1217_s20 + $0x10] sm:$0x3f] }
  0x48   : > { %401 = vrot.lane.b32.xlu0 %v396_v53, %s1161_s30  ;;  %423 = vrot.lane.b32.xlu1 %v419_v54, %s1162_s5  ;;  %v663_v53 = vrot.slane %v657_v49, 4  ;;  %v680_v54 = vld [vmem:[%s1217_s20 + $0x8] sm:$0x3f] }
  0x4c   : > { %425 = vrot.lane.b32.xlu0 %v420_v56, %s1162_s5  ;;  %442 = vrot.lane.b32.xlu1 %v435_v57, %s1163_s6 }
  0x50   : > { %444 = vrot.lane.b32.xlu0 %v436_v60, %s1163_s6  ;;  %397 = vrot.lane.b32.xlu1 %v394_v59, %s1161_s30  ;;  %v686_v60 = vrot.slane %v680_v54, 6 }
  0x54   : > { %421 = vrot.lane.b32.xlu0 %v418_v62, %s1162_s5  ;;  %440 = vrot.lane.b32.xlu1 %v434_v63, %s1163_s6  ;;  %v655_v62 = vld [vmem:[%s1217_s20] sm:$0x3f] }
  0x55   : > { %v679_v63 = vld [vmem:[%s1217_s20] sm:$0x3f]  ;;  %v661_v3 = vrot.slane %v655_v62, 4  ;;  %s197_s20 = scalar_lea.vmem %s1544_s4, %s1103_s22 }
  0x58   : > { %355 = vrot.lane.b32.xlu1 %v347_v0, %s1164_s7  ;;  %353 = vrot.lane.b32.xlu0 %v346_v1, %s1164_s7 }
  0x5c   : > { %377 = vrot.lane.b32.xlu1 %v372_v4, %s1165_s8  ;;  %375 = vrot.lane.b32.xlu0 %v371_v5, %s1165_s8  ;;  %v685_v4 = vrot.slane %v679_v63, 6 }
  0x60   : > { %373 = vrot.lane.b32.xlu1 %v370_v7, %s1165_s8  ;;  %351 = vrot.lane.b32.xlu0 %v345_v8, %s1164_s7  ;;  %v1143_v7 = vld [vmem:[%s1541_s1 + $0x4] ss:$8 sps:$4 sm:$0x3f]  }
  0x61   : > { %1097 = vmatprep.mubr.msk.bf16.mxu0 %vm801_vm10, %v1143_v7  ;;  %vm379_vm10 = vcmask 867328  }
  0x64   : > { %288 = vrot.lane.b32.xlu1 %v283_v11, %s1166_s9  ;;  %286 = vrot.lane.b32.xlu0 %v282_v12, %s1166_s9  ;;  %v781_v11 = vld [vmem:[%s1542_s2 + $0x8] sm:$0xf] }
  0x68   : > { %312 = vrot.lane.b32.xlu1 %v307_v15, %s1167_s10  ;;  %310 = vrot.lane.b32.xlu0 %v306_v16, %s1167_s10 }
  0x6c   : > { %336 = vrot.lane.b32.xlu1 %v331_v19, %s1168_s11  ;;  %334 = vrot.lane.b32.xlu0 %v330_v20, %s1168_s11 }
  0x70   : > { %308 = vrot.lane.b32.xlu1 %v305_v23, %s1167_s10  ;;  %284 = vrot.lane.b32.xlu0 %v281_v24, %s1166_s9 }
  0x74   : > { %332 = vrot.lane.b32.xlu0 %v329_v27, %s1168_s11  ;;  %230 = vrot.lane.b32.xlu1 %v228_v28, %s1169_s12 }
  0x78   : > { %232 = vrot.lane.b32.xlu0 %v229_v31, %s1169_s12  ;;  %250 = vrot.lane.b32.xlu1 %v248_v32, %s1170_s13 }
  0x7c   : > { %252 = vrot.lane.b32.xlu0 %v249_v35, %s1170_s13  ;;  %265 = vrot.lane.b32.xlu1 %v261_v36, %s1171_s14 }
  0x80   : > { %267 = vrot.lane.b32.xlu0 %v262_v39, %s1171_s14  ;;  %210 = vrot.lane.b32.xlu1 %v208_v38, %s1172_s17 }
  0x82   : > { %v623_v43 = vpop.permute.xlu1 %622  ;;  %v1289_v44 = vpop.permute.xlu0 %620 }
  0x83   : > { %v626_v45 = vsel %vm624_vm1, %v1289_v44, %v623_v43 }
  0x84   : > { %630 = vst.msk [vmem:[#allocation2 + $0xf8] sm:$0x3f] %vm202_vm0, %v626_v45  ;;  %212 = vrot.lane.b32.xlu0 %v209_v41, %s1172_s17  ;;  %707 = vrot.lane.b32.xlu1 %v701_v42, %s1173_s18 }
  0x86   : > { %v602_v50 = vpop.permute.xlu1 %601  ;;  %v578_v51 = vpop.permute.xlu0 %577 }
  0x88   : > { %709 = vrot.lane.b32.xlu0 %v702_v46, %s1173_s18  ;;  %711 = vrot.lane.b32.xlu1 %v703_v47, %s1173_s18 }
  0x8a   : > { %v604_v56 = vpop.permute.xlu1 %603  ;;  %v580_v57 = vpop.permute.xlu0 %579 }
  0x8b   : > { %v607_v58 = vsel %vm605_vm3, %v602_v50, %v604_v56  ;;  %v583_v59 = vsel %vm581_vm5, %v578_v51, %v580_v57 }
  0x8c   : > { %611 = vst.msk [vmem:[#allocation2 + $0xe8] sm:$0xfc] %vm259_vm2, %v607_v58  ;;  %666 = vrot.lane.b32.xlu0 %v662_v52, %s1174_s19  ;;  %668 = vrot.lane.b32.xlu1 %v663_v53, %s1174_s19 }
  0x8d   : > { %587 = vst.msk [vmem:[#allocation2 + $0xd8] sm:$0xf0] %vm239_vm4, %v583_v59 }
  0x8e   : > { %589 = vst.msk [vmem:[#allocation2 + $0xe8] sm:$0x3] %vm242_vm6, %v583_v59  ;;  %v645_v0 = vpop.permute.xlu1 %644  ;;  %v643_v1 = vpop.permute.xlu0 %642 }
  0x8f   : > { %v648_v2 = vsel %vm646_vm8, %v643_v1, %v645_v0 }
  0x90   : > { %652 = vst.msk [vmem:[#allocation2 + $0xf8] sm:$0xc0] %vm219_vm7, %v648_v2  ;;  %690 = vrot.lane.b32.xlu0 %v686_v60, %s1175_s21  ;;  %692 = vrot.lane.b32.xlu1 %v687_v61, %s1175_s21 }
  0x91   : > { %654 = vst.msk [vmem:[#allocation2 + $0x108] sm:$0xf] %vm222_vm9, %v648_v2 }
  0x92   : > { %v600_v5 = vpop.permute.xlu1 %599  ;;  %v576_v6 = vpop.permute.xlu0 %575 }
  0x93   : > { %v606_v8 = vsel %vm605_vm3, %v600_v5, %v602_v50  ;;  %v582_v9 = vsel %vm581_vm5, %v576_v6, %v578_v51  ;;  %vm427_vm3 = vcmask 744448   ;;  %vm446_vm5 = vcmask 736256  }
  0x94   : > { %610 = vst [vmem:[#allocation2 + $0xe0] sm:$0xfc] %v606_v8  ;;  %586 = vst [vmem:[#allocation2 + $0xe0] ss:$-12 sps:$4 sm:$0xf3] %v582_v9   ;;  %664 = vrot.lane.b32.xlu0 %v661_v3, %s1174_s19  ;;  %688 = vrot.lane.b32.xlu1 %v685_v4, %s1175_s21 }
  0x95   : > { %v749_v17 = vld [vmem:[#allocation2 + $0xe8] sm:$0xff] }
  0x96   : > { %v641_v12 = vpop.permute.xlu1 %640  ;;  %v619_v13 = vpop.permute.xlu0 %618 }
  0x97   : > { %v647_v15 = vsel %vm646_vm8, %v641_v12, %v643_v1  ;;  %v625_v16 = vsel %vm624_vm1, %v619_v13, %v1289_v44  ;;  %v751_v18 = vld [vmem:[#allocation2 + $0xf8] sm:$0xff]  ;;  %vm403_vm1 = vcmask 752640   ;;  %vm357_vm8 = vcmask 875520  }
  0x98   : > { %651 = vst [vmem:[#allocation2 + $0x100] ss:$-12 sps:$4 sm:$0xcf] %v647_v15   ;;  %629 = vst [vmem:[#allocation2 + $0xf0] sm:$0x3f] %v625_v16  ;;  %v773_v19 = vpack.c.bf16 %v751_v18, %v749_v17  ;;  %784 = vperm.xlu0 %1139, %v780_v10   ;;  %789 = vperm.xlu1 %1140, %v781_v11  }
  0x9a   : > { %812 = vmatprep.subr.bf16.mxu0 %v773_v19  ;;  %v534_v20 = vpop.permute.xlu1 %533  ;;  %v532_v21 = vpop.permute.xlu0 %531 }
  0x9b   : > { %v537_v22 = vsel %vm535_vm11, %v532_v21, %v534_v20  ;;  %v748_v26 = vld [vmem:[#allocation2 + $0xe0] sm:$0xff] }
  0x9c   : > { %541 = vst.msk [vmem:[#allocation2 + $0xc8] sm:$0x3f] %vm202_vm0, %v537_v22 }
  0x9e   : > { %v556_v23 = vpop.permute.xlu1 %555  ;;  %v554_v24 = vpop.permute.xlu0 %553 }
  0x9f   : > { %v559_v25 = vsel %vm557_vm12, %v554_v24, %v556_v23  ;;  %v750_v27 = vld [vmem:[#allocation2 + $0xf0] sm:$0xff] }
  0xa0   : > { %563 = vst.msk [vmem:[#allocation2 + $0xc8] sm:$0xc0] %vm219_vm7, %v559_v25  ;;  %v772_v28 = vpack.c.bf16 %v750_v27, %v748_v26 }
  0xa1   : > { %565 = vst.msk [vmem:[#allocation2 + $0xd8] sm:$0xf] %vm222_vm9, %v559_v25 }
  0xa2   : > { %813 = vmatpush1.bf16.msra.mxu0 %v772_v28  ;;  %v552_v29 = vpop.permute.xlu1 %551  ;;  %v530_v30 = vpop.permute.xlu0 %529 }
  0xa3   : > { %v558_v31 = vsel %vm557_vm12, %v552_v29, %v554_v24  ;;  %v536_v32 = vsel %vm535_vm11, %v530_v30, %v532_v21  ;;  %vm290_vm11 = vcmask 900096   ;;  %vm314_vm12 = vcmask 891904  }
  0xa4   : > { %562 = vst [vmem:[#allocation2 + $0xd0] ss:$-12 sps:$4 sm:$0xcf] %v558_v31   ;;  %540 = vst [vmem:[#allocation2 + $0xc0] sm:$0x3f] %v536_v32 }
  0xa6   : > { %v467_v33 = vpop.permute.xlu1 %466  ;;  %v465_v34 = vpop.permute.xlu0 %464 }
  0xa7   : > { %v470_v35 = vsel %vm468_vm13, %v465_v34, %v467_v33  ;;  %v745_v36 = vld [vmem:[#allocation2 + $0xc8] sm:$0xff] }
  0xa8   : > { %v747_v37 = vld [vmem:[#allocation2 + $0xd8] sm:$0xff]  ;;  %474 = vst.msk [vmem:[#allocation2 + $0x98] sm:$0xc0] %vm219_vm7, %v470_v35 }
  0xa9   : > { %476 = vst.msk [vmem:[#allocation2 + $0xa8] sm:$0xf] %vm222_vm9, %v470_v35  ;;  %v771_v38 = vpack.c.bf16 %v747_v37, %v745_v36 }
  0xaa   : > { %v491_v39 = vpop.permute.xlu1 %490  ;;  %v489_v40 = vpop.permute.xlu0 %488 }
  0xab   : > { %814 = vmatprep.subr.bf16.mxu0 %v771_v38  ;;  %v494_v41 = vsel %vm492_vm14, %v489_v40, %v491_v39  ;;  %v744_v42 = vld [vmem:[#allocation2 + $0xc0] sm:$0xff]  ;;  %v746_v43 = vld [vmem:[#allocation2 + $0xd0] sm:$0xff] }
  0xac   : > { %498 = vst.msk [vmem:[#allocation2 + $0xa8] sm:$0xf0] %vm239_vm4, %v494_v41  ;;  %v770_v44 = vpack.c.bf16 %v746_v43, %v744_v42 }
  0xad   : > { %500 = vst.msk [vmem:[#allocation2 + $0xb8] sm:$0x3] %vm242_vm6, %v494_v41 }
  0xae   : > { %815 = vmatpush1.bf16.msra.mxu0 %v770_v44  ;;  %v515_v45 = vpop.permute.xlu1 %514  ;;  %v513_v46 = vpop.permute.xlu0 %512 }
  0xaf   : > { %v518_v47 = vsel %vm516_vm15, %v513_v46, %v515_v45 }
  0xb0   : > { %522 = vst.msk [vmem:[#allocation2 + $0xb8] sm:$0xfc] %vm259_vm2, %v518_v47 }
  0xb2   : > { %v487_v48 = vpop.permute.xlu1 %486  ;;  %v463_v49 = vpop.permute.xlu0 %462 }
  0xb3   : > { %v493_v50 = vsel %vm492_vm14, %v487_v48, %v489_v40  ;;  %v469_v51 = vsel %vm468_vm13, %v463_v49, %v465_v34  ;;  %v741_v55 = vld [vmem:[#allocation2 + $0xa8] sm:$0xff]  ;;  %vm338_vm13 = vcmask 883712   ;;  %vm234_vm14 = vcmask 1031168  }
  0xb4   : > { %497 = vst [vmem:[#allocation2 + $0xb0] ss:$-12 sps:$4 sm:$0xf3] %v493_v50   ;;  %473 = vst [vmem:[#allocation2 + $0xa0] ss:$-12 sps:$4 sm:$0xcf] %v469_v51  }
  0xb6   : > { %v511_v52 = vpop.permute.xlu0 %510  ;;  %v400_v53 = vpop.permute.xlu1 %399 }
  0xb7   : > { %v517_v54 = vsel %vm516_vm15, %v511_v52, %v513_v46  ;;  %v743_v56 = vld [vmem:[#allocation2 + $0xb8] sm:$0xff]  ;;  %vm254_vm15 = vcmask 1022976  }
  0xb8   : > { %521 = vst [vmem:[#allocation2 + $0xb0] sm:$0xfc] %v517_v54  ;;  %v769_v57 = vpack.c.bf16 %v743_v56, %v741_v55 }
  0xba   : > { %816 = vmatprep.subr.bf16.mxu0 %v769_v57  ;;  %v402_v58 = vpop.permute.xlu0 %401  ;;  %v424_v59 = vpop.permute.xlu1 %423 }
  0xbb   : > { %v405_v60 = vsel %vm403_vm1, %v400_v53, %v402_v58  ;;  %v740_v0 = vld [vmem:[#allocation2 + $0xa0] sm:$0xff] }
  0xbc   : > { %409 = vst.msk [vmem:[#allocation2 + $0x78] sm:$0xf0] %vm239_vm4, %v405_v60 }
  0xbd   : > { %411 = vst.msk [vmem:[#allocation2 + $0x88] sm:$0x3] %vm242_vm6, %v405_v60 }
  0xbe   : > { %v426_v61 = vpop.permute.xlu0 %425  ;;  %v443_v62 = vpop.permute.xlu1 %442 }
  0xbf   : > { %v429_v63 = vsel %vm427_vm3, %v424_v59, %v426_v61  ;;  %v742_v1 = vld [vmem:[#allocation2 + $0xb0] sm:$0xff] }
  0xc0   : > { %433 = vst.msk [vmem:[#allocation2 + $0x88] sm:$0xfc] %vm259_vm2, %v429_v63  ;;  %v768_v2 = vpack.c.bf16 %v742_v1, %v740_v0 }
  0xc2   : > { %817 = vmatpush1.bf16.msra.mxu0 %v768_v2  ;;  %v445_v3 = vpop.permute.xlu0 %444  ;;  %v398_v4 = vpop.permute.xlu1 %397 }
  0xc3   : > { %v448_v5 = vsel %vm446_vm5, %v443_v62, %v445_v3  ;;  %v404_v6 = vsel %vm403_vm1, %v398_v4, %v400_v53  ;;  %vm269_vm1 = vcmask 1014784  }
  0xc4   : > { %452 = vst.msk [vmem:[#allocation2 + $0x98] sm:$0x3f] %vm202_vm0, %v448_v5  ;;  %408 = vst [vmem:[#allocation2 + $0x80] ss:$-12 sps:$4 sm:$0xf3] %v404_v6  }
  0xc6   : > { %v422_v7 = vpop.permute.xlu0 %421  ;;  %v441_v8 = vpop.permute.xlu1 %440 }
  0xc7   : > { %v428_v9 = vsel %vm427_vm3, %v422_v7, %v424_v59  ;;  %v447_v10 = vsel %vm446_vm5, %v441_v8, %v443_v62  ;;  %v737_v14 = vld [vmem:[#allocation2 + $0x88] sm:$0xff]  ;;  %vm214_vm3 = vcmask 1039360   ;;  %vm713_vm5 = vcmask 424960  }
  0xc8   : > { %432 = vst [vmem:[#allocation2 + $0x80] sm:$0xfc] %v428_v9  ;;  %451 = vst [vmem:[#allocation2 + $0x90] sm:$0x3f] %v447_v10 }
  0xca   : > { %v356_v11 = vpop.permute.xlu1 %355  ;;  %v354_v12 = vpop.permute.xlu0 %353 }
  0xcb   : > { %v359_v13 = vsel %vm357_vm8, %v354_v12, %v356_v11  ;;  %v739_v15 = vld [vmem:[#allocation2 + $0x98] sm:$0xff] }
  0xcc   : > { %363 = vst.msk [vmem:[#allocation2 + $0x68] sm:$0x3f] %vm202_vm0, %v359_v13  ;;  %v767_v16 = vpack.c.bf16 %v739_v15, %v737_v14 }
  0xce   : > { %818 = vmatprep.subr.bf16.mxu0 %v767_v16  ;;  %v378_v17 = vpop.permute.xlu1 %377  ;;  %v376_v18 = vpop.permute.xlu0 %375 }
  0xcf   : > { %v381_v19 = vsel %vm379_vm10, %v376_v18, %v378_v17  ;;  %v736_v20 = vld [vmem:[#allocation2 + $0x80] sm:$0xff]  ;;  %v738_v21 = vld [vmem:[#allocation2 + $0x90] sm:$0xff] }
  0xd0   : > { %385 = vst.msk [vmem:[#allocation2 + $0x68] sm:$0xc0] %vm219_vm7, %v381_v19  ;;  %v766_v22 = vpack.c.bf16 %v738_v21, %v736_v20 }
  0xd1   : > { %387 = vst.msk [vmem:[#allocation2 + $0x78] sm:$0xf] %vm222_vm9, %v381_v19 }
  0xd2   : > { %819 = vmatpush1.bf16.msra.mxu0 %v766_v22  ;;  %v374_v23 = vpop.permute.xlu1 %373  ;;  %v352_v24 = vpop.permute.xlu0 %351 }
  0xd3   : > { %v380_v25 = vsel %vm379_vm10, %v374_v23, %v376_v18  ;;  %v358_v26 = vsel %vm357_vm8, %v352_v24, %v354_v12  ;;  %vm670_vm8 = vcmask 441344  }
  0xd4   : > { %384 = vst [vmem:[#allocation2 + $0x70] ss:$-12 sps:$4 sm:$0xcf] %v380_v25   ;;  %362 = vst [vmem:[#allocation2 + $0x60] sm:$0x3f] %v358_v26 }
  0xd6   : > { %v289_v27 = vpop.permute.xlu1 %288  ;;  %v287_v28 = vpop.permute.xlu0 %286 }
  0xd7   : > { %v292_v29 = vsel %vm290_vm11, %v287_v28, %v289_v27  ;;  %v733_v30 = vld [vmem:[#allocation2 + $0x68] sm:$0xff] }
  0xd8   : > { %v735_v31 = vld [vmem:[#allocation2 + $0x78] sm:$0xff]  ;;  %296 = vst.msk [vmem:[#allocation2 + $0x38] sm:$0xc0] %vm219_vm7, %v292_v29 }
  0xd9   : > { %298 = vst.msk [vmem:[#allocation2 + $0x48] sm:$0xf] %vm222_vm9, %v292_v29  ;;  %v765_v32 = vpack.c.bf16 %v735_v31, %v733_v30 }
  0xda   : > { %v313_v33 = vpop.permute.xlu1 %312  ;;  %v311_v34 = vpop.permute.xlu0 %310 }
  0xdb   : > { %820 = vmatprep.subr.bf16.mxu0 %v765_v32  ;;  %v316_v35 = vsel %vm314_vm12, %v311_v34, %v313_v33  ;;  %v732_v36 = vld [vmem:[#allocation2 + $0x60] sm:$0xff]  ;;  %v734_v37 = vld [vmem:[#allocation2 + $0x70] sm:$0xff] }
  0xdc   : > { %320 = vst.msk [vmem:[#allocation2 + $0x48] sm:$0xf0] %vm239_vm4, %v316_v35  ;;  %v764_v38 = vpack.c.bf16 %v734_v37, %v732_v36 }
  0xdd   : > { %322 = vst.msk [vmem:[#allocation2 + $0x58] sm:$0x3] %vm242_vm6, %v316_v35 }
  0xde   : > { %821 = vmatpush1.bf16.msra.mxu0 %v764_v38  ;;  %v337_v39 = vpop.permute.xlu1 %336  ;;  %v335_v40 = vpop.permute.xlu0 %334 }
  0xdf   : > { %v340_v41 = vsel %vm338_vm13, %v335_v40, %v337_v39 }
  0xe0   : > { %344 = vst.msk [vmem:[#allocation2 + $0x58] sm:$0xfc] %vm259_vm2, %v340_v41 }
  0xe2   : > { %v309_v42 = vpop.permute.xlu1 %308  ;;  %v285_v43 = vpop.permute.xlu0 %284 }
  0xe3   : > { %v315_v44 = vsel %vm314_vm12, %v309_v42, %v311_v34  ;;  %v291_v45 = vsel %vm290_vm11, %v285_v43, %v287_v28  ;;  %v729_v49 = vld [vmem:[#allocation2 + $0x48] sm:$0xff] }
  0xe4   : > { %319 = vst [vmem:[#allocation2 + $0x50] ss:$-12 sps:$4 sm:$0xf3] %v315_v44   ;;  %295 = vst [vmem:[#allocation2 + $0x40] ss:$-12 sps:$4 sm:$0xcf] %v291_v45  }
  0xe6   : > { %v333_v46 = vpop.permute.xlu0 %332  ;;  %v231_v47 = vpop.permute.xlu1 %230 }
  0xe7   : > { %v339_v48 = vsel %vm338_vm13, %v333_v46, %v335_v40  ;;  %v731_v50 = vld [vmem:[#allocation2 + $0x58] sm:$0xff]  ;;  %v1141_v40 = vld [vmem:[%s1541_s1] ss:$8 sps:$4 sm:$0x3f]  }
  0xe8   : > { %343 = vst [vmem:[#allocation2 + $0x50] sm:$0xfc] %v339_v48  ;;  %v763_v51 = vpack.c.bf16 %v731_v50, %v729_v49 }
  0xea   : > { %822 = vmatprep.subr.bf16.mxu0 %v763_v51  ;;  %v233_v52 = vpop.permute.xlu0 %232  ;;  %v251_v53 = vpop.permute.xlu1 %250 }
  0xeb   : > { %v235_v54 = vsel %vm234_vm14, %v231_v47, %v233_v52  ;;  %240 = vst.msk [vmem:[#allocation2 + $0x18] sm:$0xf0] %vm239_vm4, %v233_v52  ;;  %v728_v58 = vld [vmem:[#allocation2 + $0x40] sm:$0xff] }
  0xec   : > { %243 = vst.msk [vmem:[#allocation2 + $0x28] sm:$0x3] %vm242_vm6, %v233_v52  ;;  %238 = vst [vmem:[#allocation2 + $0x20] ss:$-12 sps:$4 sm:$0xf3] %v235_v54  }
  0xee   : > { %v253_v55 = vpop.permute.xlu0 %252  ;;  %v266_v56 = vpop.permute.xlu1 %265 }
  0xef   : > { %v255_v57 = vsel %vm254_vm15, %v251_v53, %v253_v55  ;;  %260 = vst.msk [vmem:[#allocation2 + $0x28] sm:$0xfc] %vm259_vm2, %v253_v55  ;;  %v730_v59 = vld [vmem:[#allocation2 + $0x50] sm:$0xff]  ;;  %v926_v55 = vld [vmem:[%s1543_s3 + $0x78] sm:$0xff] }
  0xf0   : > { %258 = vst [vmem:[#allocation2 + $0x20] sm:$0xfc] %v255_v57  ;;  %v762_v60 = vpack.c.bf16 %v730_v59, %v728_v58  ;;  %v925_v57 = vld [vmem:[%s1543_s3 + $0x70] sm:$0xff]  ;;  %v924_v58 = vld [vmem:[%s1543_s3 + $0x68] sm:$0xff] }
  0xf2   : > { %823 = vmatpush1.bf16.msra.mxu0 %v762_v60  ;;  %v268_v61 = vpop.permute.xlu0 %267  ;;  %v211_v62 = vpop.permute.xlu1 %210  ;;  %v923_v60 = vld [vmem:[%s1543_s3 + $0x60] sm:$0xff] }
  0xf3   : > { %v270_v63 = vsel %vm269_vm1, %v266_v56, %v268_v61  ;;  %274 = vst.msk [vmem:[#allocation2 + $0x38] sm:$0x3f] %vm202_vm0, %v268_v61  ;;  %v1177_v56 = vmov 0.0  }
  0xf4   : > { %273 = vst [vmem:[#allocation2 + $0x30] sm:$0x3f] %v270_v63  ;;  %952 = vmatprep.subr.mxu1 %v1177_v56 }
  0xf5   : > { %953 = vmatpush1.msra.mxu1 %v926_v55 }
  0xf6   : > { %v213_v0 = vpop.permute.xlu0 %212  ;;  %v708_v1 = vpop.permute.xlu1 %707  ;;  %v725_v5 = vld [vmem:[#allocation2 + $0x28] sm:$0xff]  ;;  %954 = vmatprep.subr.mxu1 %v1177_v56 }
  0xf7   : > { %v215_v2 = vsel %vm214_vm3, %v211_v62, %v213_v0  ;;  %220 = vst.msk [vmem:[#allocation2 + $0x8] sm:$0xc0] %vm219_vm7, %v213_v0  ;;  %v724_v10 = vld [vmem:[#allocation2 + $0x20] sm:$0xff]  ;;  %vm694_vm7 = vcmask 433152   ;;  %955 = vmatpush1.msra.mxu1 %v925_v57  ;;  %v922_v62 = vld [vmem:[%s1543_s3 + $0x58] sm:$0xff] }
  0xf8   : > { %223 = vst.msk [vmem:[#allocation2 + $0x18] sm:$0xf] %vm222_vm9, %v213_v0  ;;  %218 = vst [vmem:[#allocation2 + $0x10] ss:$-12 sps:$4 sm:$0xcf] %v215_v2   ;;  %956 = vmatprep.subr.mxu1 %v1177_v56  ;;  %v921_v0 = vld [vmem:[%s1543_s3 + $0x50] sm:$0xff] }
  0xf9   : > { %957 = vmatpush1.msra.mxu1 %v924_v58  ;;  %v919_v2 = vld [vmem:[%s1543_s3 + $0x40] sm:$0xff] }
  0xfa   : > { %v710_v3 = vpop.permute.xlu0 %709  ;;  %v712_v4 = vpop.permute.xlu1 %711  ;;  %v727_v6 = vld [vmem:[#allocation2 + $0x38] sm:$0xff]  ;;  %958 = vmatprep.subr.mxu1 %v1177_v56 }
  0xfb   : > { %v714_v7 = vsel %vm713_vm5, %v708_v1, %v710_v3  ;;  %v715_v8 = vsel %vm713_vm5, %v710_v3, %v712_v4  ;;  %v761_v9 = vpack.c.bf16 %v727_v6, %v725_v5  ;;  %v726_v11 = vld [vmem:[#allocation2 + $0x30] sm:$0xff]  ;;  %959 = vmatpush1.msra.mxu1 %v923_v60  ;;  %v920_v1 = vld [vmem:[%s1543_s3 + $0x48] sm:$0xff]  ;;  %v918_v3 = vld [vmem:[%s1543_s3 + $0x38] sm:$0xff] }
  0xfc   : > { %718 = vst [vmem:[#allocation2 + $0x120] sm:$0x3f] %v714_v7  ;;  %719 = vst.msk [vmem:[#allocation2 + $0x128] sm:$0x3f] %vm202_vm0, %v715_v8  ;;  %v760_v12 = vpack.c.bf16 %v726_v11, %v724_v10  ;;  %vm805_vm0 = vcmask 1042432   ;;  %960 = vmatprep.subr.mxu1 %v1177_v56  ;;  %v917_v4 = vld [vmem:[%s1543_s3 + $0x30] sm:$0xff] }
  0xfd   : > { %824 = vmatprep.subr.bf16.mxu0 %v761_v9  ;;  %961 = vmatpush1.msra.mxu1 %v922_v62  ;;  %v916_v5 = vld [vmem:[%s1543_s3 + $0x28] sm:$0xff]  ;;  %v915_v6 = vld [vmem:[%s1543_s3 + $0x20] sm:$0xff]  ;;  %v914_v7 = vld [vmem:[%s1543_s3 + $0x18] sm:$0xff] }
  0xfe   : > { %825 = vmatpush1.bf16.msra.mxu0 %v760_v12  ;;  %v667_v13 = vpop.permute.xlu0 %666  ;;  %v669_v14 = vpop.permute.xlu1 %668  ;;  %v721_v15 = vld [vmem:[#allocation2 + $0x8] sm:$0xff]  ;;  %962 = vmatprep.subr.mxu1 %v1177_v56  ;;  %v913_v8 = vld [vmem:[%s1543_s3 + $0x10] sm:$0xff]  ;;  %v911_v10 = vld [vmem:[%s1543_s3] sm:$0xff] }
  0xff   : > { %v723_v16 = vld [vmem:[#allocation2 + $0x18] sm:$0xff]  ;;  %v672_v17 = vsel %vm670_vm8, %v667_v13, %v669_v14  ;;  %v720_v19 = vld [vmem:[#allocation2] sm:$0xff]  ;;  %v722_v20 = vld [vmem:[#allocation2 + $0x10] sm:$0xff]  ;;  %963 = vmatpush1.msra.mxu1 %v921_v0 }
 0x100   : > { %v759_v18 = vpack.c.bf16 %v723_v16, %v721_v15  ;;  %676 = vst.msk [vmem:[#allocation2 + $0x108] sm:$0xf0] %vm239_vm4, %v672_v17  ;;  %v758_v21 = vpack.c.bf16 %v722_v20, %v720_v19  ;;  %964 = vmatprep.subr.mxu1 %v1177_v56  ;;  %v912_v9 = vld [vmem:[%s1543_s3 + $0x8] sm:$0xff]  ;;  %v939_v12 = vld [vmem:[%s1543_s3 + $0xe0] sm:$0xff]  ;;  %v937_v14 = vld [vmem:[%s1543_s3 + $0xd0] sm:$0xff]  ;;  %vm941_vm4 = vcmask 859136  }
 0x101   : > { %678 = vst.msk [vmem:[#allocation2 + $0x118] sm:$0x3] %vm242_vm6, %v672_v17  ;;  %965 = vmatpush1.msra.mxu1 %v920_v1  ;;  %v940_v11 = vld [vmem:[%s1543_s3 + $0xe8] sm:$0x1]  ;;  %v935_v16 = vld [vmem:[%s1543_s3 + $0xc0] sm:$0xff]  ;;  %v934_v17 = vld [vmem:[%s1543_s3 + $0xb8] sm:$0xff] }
 0x102   : > { %826 = vmatprep.subr.bf16.mxu0 %v759_v18  ;;  %v691_v22 = vpop.permute.xlu0 %690  ;;  %v693_v23 = vpop.permute.xlu1 %692  ;;  %966 = vmatprep.subr.mxu1 %v1177_v56  ;;  %v936_v15 = vld [vmem:[%s1543_s3 + $0xc8] sm:$0xff]  ;;  %v933_v18 = vld [vmem:[%s1543_s3 + $0xb0] sm:$0xff]  ;;  %v931_v20 = vld [vmem:[%s1543_s3 + $0xa0] sm:$0xff]  ;;  %vm1027_vm6 = vcmask 400384  }
 0x103   : > { %827 = vmatpush1.bf16.msra.mxu0 %v758_v21  ;;  %v696_v24 = vsel %vm694_vm7, %v691_v22, %v693_v23  ;;  %v757_v25 = vld [vmem:[#allocation2 + $0x128] sm:$0x3f]  ;;  %v756_v26 = vld [vmem:[#allocation2 + $0x120] sm:$0x3f]  ;;  %967 = vmatpush1.msra.mxu1 %v919_v2  ;;  %v930_v21 = vld [vmem:[%s1543_s3 + $0x98] sm:$0xff] }
 0x104   : > { %700 = vst.msk [vmem:[#allocation2 + $0x118] sm:$0xfc] %vm259_vm2, %v696_v24  ;;  %v777_v27 = vpack.c.bf16 %v757_v25, %v757_v25  ;;  %v776_v28 = vpack.c.bf16 %v756_v26, %v756_v26  ;;  %968 = vmatprep.subr.mxu1 %v1177_v56  ;;  %vm948_vm2 = vcmask 1040384   ;;  %v932_v19 = vld [vmem:[%s1543_s3 + $0xa8] sm:$0xff]  ;;  %v927_v24 = vld [vmem:[%s1543_s3 + $0x80] sm:$0xff] }
 0x105   : > { %969 = vmatpush1.msra.mxu1 %v918_v3  ;;  %v928_v23 = vld [vmem:[%s1543_s3 + $0x88] sm:$0xff] }
 0x106   : > { %v665_v29 = vpop.permute.xlu0 %664  ;;  %v689_v30 = vpop.permute.xlu1 %688  ;;  %1096 = vmatprep.subr.msk.bf16.mxu0 %vm805_vm0, %v777_v27  ;;  %v807_v31 = vsel %vm805_vm0, %v776_v28, 0  ;;  %970 = vmatprep.subr.mxu1 %v1177_v56 }
 0x107   : > { %v671_v32 = vsel %vm670_vm8, %v665_v29, %v667_v13  ;;  %v695_v33 = vsel %vm694_vm7, %v689_v30, %v691_v22  ;;  %841 = vmatpush2.bf16.msra.mxu0 %v807_v31  ;;  %v753_v34 = vld [vmem:[#allocation2 + $0x108] sm:$0xff]  ;;  %971 = vmatpush1.msra.mxu1 %v917_v4  ;;  %v938_v13 = vld [vmem:[%s1543_s3 + $0xd8] sm:$0xff]  ;;  %v929_v22 = vld [vmem:[%s1543_s3 + $0x90] sm:$0xff] }
 0x108   : > { %675 = vst [vmem:[#allocation2 + $0x110] ss:$-12 sps:$4 sm:$0xf3] %v671_v32   ;;  %699 = vst [vmem:[#allocation2 + $0x110] sm:$0xfc] %v695_v33  ;;  %972 = vmatprep.subr.mxu1 %v1177_v56 }
 0x109   : > { %973 = vmatpush1.msra.mxu1 %v916_v5 }
 0x10a   : > { %974 = vmatprep.subr.mxu1 %v1177_v56 }
 0x10b   : > { %v755_v35 = vld [vmem:[#allocation2 + $0x118] sm:$0xff]  ;;  %975 = vmatpush1.msra.mxu1 %v915_v6 }
 0x10c   : > { %v775_v36 = vpack.c.bf16 %v755_v35, %v753_v34  ;;  %976 = vmatprep.subr.mxu1 %v1177_v56 }
 0x10d   : > { %977 = vmatpush1.msra.mxu1 %v914_v7 }
 0x10e   : > { %842 = vmatprep.subr.bf16.mxu0 %v775_v36  ;;  %978 = vmatprep.subr.mxu1 %v1177_v56 }
 0x10f   : > { %v752_v37 = vld [vmem:[#allocation2 + $0x100] sm:$0xff]  ;;  %v754_v38 = vld [vmem:[#allocation2 + $0x110] sm:$0xff]  ;;  %979 = vmatpush1.msra.mxu1 %v913_v8 }
 0x110   : > { %v774_v39 = vpack.c.bf16 %v754_v38, %v752_v37  ;;  %980 = vmatprep.subr.mxu1 %v1177_v56 }
 0x111   : > { %981 = vmatpush1.msra.mxu1 %v912_v9 }
 0x112   : > { %843 = vmatpush2.bf16.msra.mxu0 %v774_v39  ;;  %982 = vmatprep.subr.mxu1 %v1177_v56 }
 0x113   : > { %v785_v41 = vpop.permute.xlu0 %784  ;;  %v790_v45 = vpop.permute.xlu1 %789  ;;  %983 = vmatpush1.msra.mxu1 %v911_v10 }
 0x114   : > { %988 = vmatprep.subr.mxu1 %v1177_v56 }
 0x115   : > { %845 = vmatmul.mubr.bf16.vlgmr.msra.gmra.mxu0 %v1141_v40  ;;  %1098 = vmatpush2.msk.msra.mxu1 %vm948_vm2, %v940_v11 }
 0x116   : > { %990 = vmatprep.subr.mxu1 %v1177_v56 }
 0x117   : > { %991 = vmatpush2.msra.mxu1 %v939_v12 }
 0x118   : > { %992 = vmatprep.subr.mxu1 %v1177_v56 }
 0x119   : > { %993 = vmatpush2.msra.mxu1 %v938_v13 }
 0x11a   : > { %994 = vmatprep.subr.mxu1 %v1177_v56 }
 0x11b   : > { %995 = vmatpush2.msra.mxu1 %v937_v14 }
 0x11c   : > { %996 = vmatprep.subr.mxu1 %v1177_v56 }
 0x11d   : > { %997 = vmatpush2.msra.mxu1 %v936_v15 }
 0x11e   : > { %998 = vmatprep.subr.mxu1 %v1177_v56 }
 0x11f   : > { %999 = vmatpush2.msra.mxu1 %v935_v16 }
 0x120   : > { %1000 = vmatprep.subr.mxu1 %v1177_v56 }
 0x121   : > { %1001 = vmatpush2.msra.mxu1 %v934_v17 }
 0x122   : > { %1002 = vmatprep.subr.mxu1 %v1177_v56 }
 0x123   : > { %1003 = vmatpush2.msra.mxu1 %v933_v18 }
 0x124   : > { %1004 = vmatprep.subr.mxu1 %v1177_v56 }
 0x125   : > { %1005 = vmatpush2.msra.mxu1 %v932_v19 }
 0x126   : > { %1006 = vmatprep.subr.mxu1 %v1177_v56 }
 0x127   : > { %1007 = vmatpush2.msra.mxu1 %v931_v20 }
 0x128   : > { %1008 = vmatprep.subr.mxu1 %v1177_v56 }
 0x129   : > { %1009 = vmatpush2.msra.mxu1 %v930_v21 }
 0x12a   : > { %1010 = vmatprep.subr.mxu1 %v1177_v56 }
 0x12b   : > { %1011 = vmatpush2.msra.mxu1 %v929_v22 }
 0x12c   : > { %1012 = vmatprep.subr.mxu1 %v1177_v56 }
 0x12d   : > { %1013 = vmatpush2.msra.mxu1 %v928_v23 }
 0x12e   : > { %1014 = vmatprep.subr.mxu1 %v1177_v56 }
 0x12f   : > { %1015 = vmatpush2.msra.mxu1 %v927_v24 }
 0x1d5   : > { %v846_v42 = vpop.f32.mrf.mxu0 }
 0x1d6   : > { %v1380_v43 = vadd.f32 %v846_v42, %v785_v41 }
 0x1d7   : > { %v848_v44 = vpop.f32.mrf.mxu0 }
 0x1d8   : > { %v855_v46 = vmax.f32 %v1380_v43, 0.0  ;;  %v849_v47 = vadd.f32 %v848_v44, %v785_v41 }
 0x1d9   : > { %v850_v48 = vpop.f32.mrf.mxu0 }
 0x1da   : > { %v856_v49 = vmax.f32 %v849_v47, 0.0  ;;  %v851_v50 = vadd.f32 %v850_v48, %v790_v45  ;;  %871 = vrot.lane.b32.xlu1 %v855_v46, %s1172_s17 }
 0x1db   : > { %v852_v51 = vpop.f32.mrf.mxu0 }
 0x1dc   : > { %860 = vst.msk [vmem:[#allocation3 + $0x8] sm:$0xff] %vm269_vm1, %v856_v49  ;;  %v857_v52 = vmax.f32 %v851_v50, 0.0  ;;  %v853_v53 = vadd.f32 %v852_v51, %v790_v45 }
 0x1de   : > { %861 = vst [vmem:[#allocation3 + $0x10] sm:$0xf] %v857_v52  ;;  %v858_v54 = vmax.f32 %v853_v53, 0.0 }
 0x1e0   : > { %862 = vst.msk [vmem:[#allocation3 + $0x18] sm:$0xf] %vm222_vm9, %v858_v54  ;;  %vm1029_vm9 = vcmask 396288  }
 0x1e3   : > { %v1399_v59 = vld [vmem:[#allocation3 + $0x8] sm:$0xff] }
 0x1e4   : > { %873 = vrot.lane.b32.xlu0 %v1399_v59, %s1172_s17 }
 0x1e5   : > { %v1407_v61 = vld [vmem:[#allocation3 + $0x10] sm:$0xf] }
 0x1e6   : > { %875 = vrot.lane.b32.xlu1 %v1407_v61, %s1172_s17 }
 0x1e7   : > { %v1415_v63 = vld [vmem:[#allocation3 + $0x18] sm:$0xf] }
 0x1e8   : > { %877 = vrot.lane.b32.xlu0 %v1415_v63, %s1172_s17 }
 0x24c   : > { %v872_v25 = vpop.permute.xlu1 %871 }
 0x256   : > { %v874_v26 = vpop.permute.xlu0 %873 }
 0x257   : > { %v879_v27 = vsel %vm214_vm3, %v872_v25, %v874_v26  ;;  %v886_v28 = vmax.f32 %v1399_v59, %v874_v26 }
 0x258   : > { %v885_v29 = vmax.f32 %v855_v46, %v879_v27  ;;  %v876_v30 = vpop.permute.xlu1 %875 }
 0x259   : > { %895 = vrot.lane.b32.xlu0 %v886_v28, %s1166_s9 }
 0x25a   : > { %v878_v31 = vpop.permute.xlu0 %877  ;;  %893 = vrot.lane.b32.xlu1 %v885_v29, %s1166_s9 }
 0x25b   : > { %v880_v32 = vsel %vm214_vm3, %v876_v30, %v878_v31  ;;  %v888_v33 = vmax.f32 %v1415_v63, %v878_v31 }
 0x25c   : > { %v887_v34 = vmax.f32 %v1407_v61, %v880_v32 }
 0x25d   : > { %899 = vrot.lane.b32.xlu0 %v888_v33, %s1166_s9 }
 0x25e   : > { %897 = vrot.lane.b32.xlu1 %v887_v34, %s1166_s9 }
 0x2cb   : > { %v896_v35 = vpop.permute.xlu0 %895 }
 0x2cc   : > { %v894_v36 = vpop.permute.xlu1 %893  ;;  %v908_v37 = vmax.f32 %v886_v28, %v896_v35 }
 0x2cd   : > { %v901_v38 = vsel %vm290_vm11, %v894_v36, %v896_v35 }
 0x2ce   : > { %v907_v39 = vmax.f32 %v885_v29, %v901_v38  ;;  %1099 = vmatprep.mubr.msk.f32.mxu1 %vm941_vm4, %v908_v37 }
 0x2cf   : > { %v900_v40 = vpop.permute.xlu0 %899 }
 0x2d0   : > { %v910_v41 = vmax.f32 %v888_v33, %v900_v40  ;;  %1017 = vmatmul.mubr.f32.vlgmr.msra.gmra.mxu1 %v907_v39  ;;  %v898_v42 = vpop.permute.xlu1 %897 }
 0x2d1   : > { %v902_v43 = vsel %vm290_vm11, %v898_v42, %v900_v40 }
 0x2d2   : > { %v909_v44 = vmax.f32 %v887_v34, %v902_v43  ;;  %1100 = vmatprep.mubr.msk.f32.mxu1 %vm941_vm4, %v910_v41 }
 0x2d4   : > { %1022 = vmatmul.mubr.f32.gmra.mxu1 %v909_v44 }
 0x390   : > { %v1018_v45 = vpop.f32.mrf.mxu1 }
 0x391   : > { %1028 = vst.msk [vmem:[%s197_s20] sm:$0xff] %vm1027_vm6, %v1018_v45 }
 0x392   : > { %v1020_v46 = vpop.f32.mrf.mxu1 }
 0x394   : > { %v1023_v47 = vpop.f32.mrf.mxu1 }
 0x395   : > { %1030 = vst.msk [vmem:[%s197_s20 + $0x8] sm:$0xf] %vm1029_vm9, %v1023_v47 }
 0x396   : > { %v1025_v48 = vpop.f32.mrf.mxu1 }
 0x397 PF: > { %s14_s15 = sadd.s32 1, %s1150_s15  }
 0x398   : > { %p11_p4 = scmp.ge.s32.totalorder %s14_s15, 4  }
 0x39a   :  { %13 = sbr.rel (!%p11_p4) target bundleno = 1 (0x1), region = 66 }

// kernel: lenet_forward.6
= control target key start
LH: loop header
LB: loop body
LE: loop exit
PB: predicated region body
PF: predicated region fallthrough
CT: control target
= control target key end

     0   :  { %s1118_s15 = smov 0   ;;  %s1317_s0 = inlined_call_operand.vmem [shape: f32[2,12,132], index: 0, kind: input, shape index: {}]   ;;  %s1318_s1 = inlined_call_operand.vmem [shape: bf16[24,300], index: 1, kind: input, shape index: {}]   ;;  %s1319_s2 = inlined_call_operand.vmem [shape: f32[24,1], index: 2, kind: input, shape index: {}]   ;;  %s1320_s3 = inlined_call_operand.vmem [shape: f32[65,9], index: 3, kind: input, shape index: {}]   ;;  %s1321_s4 = inlined_call_operand.vmem [shape: f32[2,24,9], index: 4, kind: output, shape index: {}]  }
   0x1 LB: > { %s907_s16 = sadd.s32 4294967295, %s1064_s15   ;;  %p911_p0 = scmp.ge.s32.totalorder %s1064_s15, 1  ;;  %s1064_s15 = sphi %s1118_s15, %s14_s15  }
   0x2   : > { %p162_p1 = scmp.lt.s32.totalorder %s1064_s15, 3 }
   0x4   : > { %p163_p2 = pnand %p911_p0, %p162_p1 }
   0x5   : > { %p188_p3 = scmp.lt.s32.totalorder (!%p163_p2), %s907_s16, 1  ;;  %s1066_s21 = smov (!%p163_p2), 83  }
   0x6   : > { %166 = sbr.rel (%p163_p2) target bundleno = 881 (0x371), region = 36  ;;  %s1067_s22 = smov (!%p163_p2), 84  }
   0x7   : > { %s1068_s23 = smov (!%p163_p2), 113   ;;  %s1069_s24 = smov (!%p163_p2), 106  }
   0x8   : > { %s1070_s25 = smov (!%p163_p2), 92   ;;  %s1071_s26 = smov (!%p163_p2), 91  }
   0x9   : > { %s1072_s27 = smov (!%p163_p2), 114   ;;  %s1073_s28 = smov (!%p163_p2), 93  }
   0xa   : > { %s1074_s29 = smov (!%p163_p2), 115   ;;  %s1075_s30 = smov (!%p163_p2), 116  }
   0xb   : > { %s1323_s16 = smov (!%p188_p3, %s907_s16), 1  ;;  %vm201_vm0 = vcmask 629760   ;;  %s1076_s5 = smov 94   ;;  %vm203_vm1 = vcmask 625664   ;;  %v1053_v24 = vld [vmem:[%s1318_s1 + $0x4] ss:$12 sps:$4 sm:$0xff]  }
   0xc   : > { %s929_s17 = sshll.u32 %s1323_s16, 5  ;;  %s1077_s6 = smov 117   ;;  %642 = vmatprep.mubr.bf16.mxu0 %v1053_v24  ;;  %v1055_v27 = vld [vmem:[%s1318_s1 + $0x8] ss:$12 sps:$4 sm:$0xff]   ;;  %vm599_vm2 = vcmask 359424   ;;  %v556_v28 = vld [vmem:[%s1319_s2] sm:$0xff] }
   0xd   : > { %s1132_s20 = scalar_lea.vmem %s1317_s0, %s929_s17  ;;  %s1078_s7 = smov 102   ;;  %981 = vmatprep.mubr.msk.bf16.mxu1 %vm599_vm2, %v1055_v27  ;;  %v557_v29 = vld [vmem:[%s1319_s2 + $0x8] sm:$0xff]  ;;  %v1090_v30 = vmov 0   ;;  %v558_v31 = vld [vmem:[%s1319_s2 + $0x10] sm:$0xff]  ;;  %vm606_vm3 = vcmask 1045504   ;;  %vm764_vm4 = vcmask 1040384  }
   0xe   : > { %v1135_v0 = vld [vmem:[%s1132_s20] sm:$0xff]  ;;  %v434_v1 = vld [vmem:[%s1132_s20 + $0x10] sm:$0xf]  ;;  %s1079_s8 = smov 95   ;;  %s1080_s9 = smov 124   ;;  %1049 = vset.pattern.permute.xlu0 %v1090_v30  ;;  %1050 = vset.pattern.permute.xlu1 %v1090_v30  ;;  %vm1092_vm5 = vmmov 0  }
   0xf   : > { %449 = vrot.lane.b32.xlu1 %v1135_v0, %s1066_s21  ;;  %437 = vrot.lane.b32.xlu0 %v1135_v0, %s1067_s22  ;;  %202 = vst.msk [vmem:[#allocation2] sm:$0xff] %vm201_vm0, %v1135_v0  ;;  %v302_v2 = vld [vmem:[%s1132_s20 + $0x10] sm:$0xf]  ;;  %s1081_s10 = smov 103   ;;  %s1082_s11 = smov 125   ;;  %vm754_vm6 = vcmask 531456  }
  0x10   : > { %v410_v3 = vld [vmem:[%s1132_s20 + $0x10] sm:$0xf]  ;;  %s1083_s12 = smov 126   ;;  %s1084_s13 = smov 104   ;;  %vm848_vm7 = vcmask 72704  }
  0x11   : > { %v422_v4 = vld [vmem:[%s1132_s20 + $0x10] sm:$0xf]  ;;  %s1085_s14 = smov 80   ;;  %s1086_s17 = smov 127  }
  0x12   : > { %v290_v5 = vld [vmem:[%s1132_s20 + $0x10] sm:$0xf]  ;;  %s1087_s18 = smov 105  }
  0x13   : > { %439 = vrot.lane.b32.xlu0 %v434_v1, %s1067_s22  ;;  %305 = vrot.lane.b32.xlu1 %v1135_v0, %s1068_s23  ;;  %v398_v6 = vld [vmem:[%s1132_s20 + $0x10] sm:$0xf] }
  0x14   : > { %v266_v7 = vld [vmem:[%s1132_s20 + $0x10] sm:$0xf] }
  0x15   : > { %v278_v8 = vld [vmem:[%s1132_s20 + $0x10] sm:$0xf] }
  0x16   : > { %v386_v9 = vld [vmem:[%s1132_s20 + $0x10] sm:$0xf] }
  0x17   : > { %307 = vrot.lane.b32.xlu0 %v302_v2, %s1068_s23  ;;  %317 = vrot.lane.b32.xlu1 %v1135_v0, %s1069_s24  ;;  %v254_v10 = vld [vmem:[%s1132_s20 + $0x10] sm:$0xf]  ;;  %s1088_s23 = smov 82  }
  0x18   : > { %v362_v11 = vld [vmem:[%s1132_s20 + $0x10] sm:$0xf] }
  0x19   : > { %v374_v12 = vld [vmem:[%s1132_s20 + $0x10] sm:$0xf] }
  0x1a   : > { %v242_v13 = vld [vmem:[%s1132_s20 + $0x10] sm:$0xf] }
  0x1b   : > { %415 = vrot.lane.b32.xlu0 %v410_v3, %s1070_s25  ;;  %425 = vrot.lane.b32.xlu1 %v1135_v0, %s1071_s26  ;;  %v350_v14 = vld [vmem:[%s1132_s20 + $0x10] sm:$0xf] }
  0x1c   : > { %v218_v15 = vld [vmem:[%s1132_s20 + $0x10] sm:$0xf] }
  0x1d   : > { %v200_v16 = vld [vmem:[%s1132_s20 + $0x10] sm:$0xf] }
  0x1e   : > { %204 = vst.msk [vmem:[#allocation2 + $0x8] sm:$0xf] %vm203_vm1, %v200_v16  ;;  %v230_v17 = vld [vmem:[%s1132_s20 + $0x10] sm:$0xf] }
  0x1f   : > { %427 = vrot.lane.b32.xlu0 %v422_v4, %s1071_s26  ;;  %293 = vrot.lane.b32.xlu1 %v1135_v0, %s1072_s27  ;;  %v338_v18 = vld [vmem:[%s1132_s20 + $0x10] sm:$0xf] }
  0x20   : > { %v482_v19 = vld [vmem:[%s1132_s20 + $0x10] sm:$0xf] }
  0x21   : > { %v206_v20 = vld [vmem:[%s1132_s20 + $0x10] sm:$0xf] }
  0x22   : > { %v314_v21 = vld [vmem:[%s1132_s20 + $0x10] sm:$0xf] }
  0x23   : > { %295 = vrot.lane.b32.xlu0 %v290_v5, %s1072_s27  ;;  %401 = vrot.lane.b32.xlu1 %v1135_v0, %s1073_s28  ;;  %v326_v22 = vld [vmem:[%s1132_s20 + $0x10] sm:$0xf] }
  0x24   : > { %v458_v23 = vld [vmem:[%s1132_s20 + $0x10] sm:$0xf] }
  0x25   : > { %v470_v25 = vld [vmem:[%s1132_s20 + $0x10] sm:$0xf] }
  0x26   : > { %v446_v26 = vld [vmem:[%s1132_s20 + $0x10] sm:$0xf] }
  0x27   : > { %403 = vrot.lane.b32.xlu0 %v398_v6, %s1073_s28  ;;  %413 = vrot.lane.b32.xlu1 %v1135_v0, %s1070_s25  ;;  %s1089_s25 = smov 81  }
  0x2b   : > { %281 = vrot.lane.b32.xlu1 %v1135_v0, %s1074_s29  ;;  %271 = vrot.lane.b32.xlu0 %v266_v7, %s1075_s30 }
  0x2f   : > { %389 = vrot.lane.b32.xlu1 %v1135_v0, %s1076_s5  ;;  %283 = vrot.lane.b32.xlu0 %v278_v8, %s1074_s29 }
  0x33   : > { %391 = vrot.lane.b32.xlu0 %v386_v9, %s1076_s5  ;;  %257 = vrot.lane.b32.xlu1 %v1135_v0, %s1077_s6 }
  0x37   : > { %259 = vrot.lane.b32.xlu0 %v254_v10, %s1077_s6  ;;  %269 = vrot.lane.b32.xlu1 %v1135_v0, %s1075_s30 }
  0x3b   : > { %367 = vrot.lane.b32.xlu0 %v362_v11, %s1078_s7  ;;  %377 = vrot.lane.b32.xlu1 %v1135_v0, %s1079_s8 }
  0x3f   : > { %379 = vrot.lane.b32.xlu0 %v374_v12, %s1079_s8  ;;  %245 = vrot.lane.b32.xlu1 %v1135_v0, %s1080_s9 }
  0x43   : > { %247 = vrot.lane.b32.xlu0 %v242_v13, %s1080_s9  ;;  %353 = vrot.lane.b32.xlu1 %v1135_v0, %s1081_s10 }
  0x47   : > { %355 = vrot.lane.b32.xlu0 %v350_v14, %s1081_s10  ;;  %365 = vrot.lane.b32.xlu1 %v1135_v0, %s1078_s7 }
  0x4b   : > { %233 = vrot.lane.b32.xlu1 %v1135_v0, %s1082_s11  ;;  %223 = vrot.lane.b32.xlu0 %v218_v15, %s1083_s12 }
  0x4f   : > { %341 = vrot.lane.b32.xlu1 %v1135_v0, %s1084_s13  ;;  %235 = vrot.lane.b32.xlu0 %v230_v17, %s1082_s11 }
  0x53   : > { %485 = vrot.lane.b32.xlu1 %v1135_v0, %s1085_s14  ;;  %343 = vrot.lane.b32.xlu0 %v338_v18, %s1084_s13 }
  0x57   : > { %487 = vrot.lane.b32.xlu0 %v482_v19, %s1085_s14  ;;  %209 = vrot.lane.b32.xlu1 %v1135_v0, %s1086_s17 }
  0x5b   : > { %211 = vrot.lane.b32.xlu0 %v206_v20, %s1086_s17  ;;  %221 = vrot.lane.b32.xlu1 %v1135_v0, %s1083_s12 }
  0x5f   : > { %319 = vrot.lane.b32.xlu0 %v314_v21, %s1069_s24  ;;  %329 = vrot.lane.b32.xlu1 %v1135_v0, %s1087_s18 }
  0x63   : > { %331 = vrot.lane.b32.xlu0 %v326_v22, %s1087_s18  ;;  %463 = vrot.lane.b32.xlu1 %v458_v23, %s1088_s23 }
  0x67   : > { %473 = vrot.lane.b32.xlu0 %v1135_v0, %s1089_s25  ;;  %475 = vrot.lane.b32.xlu1 %v470_v25, %s1089_s25 }
  0x6b   : > { %451 = vrot.lane.b32.xlu0 %v446_v26, %s1066_s21  ;;  %461 = vrot.lane.b32.xlu1 %v1135_v0, %s1088_s23 }
  0x6f   : > { %561 = vperm.xlu0 %1049, %v556_v28   ;;  %566 = vperm.xlu1 %1050, %v557_v29  }
  0x73   : > { %571 = vperm.xlu1 %1050, %v558_v31  }
  0x81   : > { %v450_v32 = vpop.permute.xlu1 %449  ;;  %v438_v33 = vpop.permute.xlu0 %437 }
  0x82   : > { %455 = vst.msk [vmem:[#allocation2 + $0xfc] sm:$0xff] %vm201_vm0, %v450_v32  ;;  %443 = vst.msk [vmem:[#allocation2 + $0xf0] sm:$0xff] %vm201_vm0, %v438_v33 }
  0x85   : > { %v440_v34 = vpop.permute.xlu0 %439  ;;  %v306_v35 = vpop.permute.xlu1 %305 }
  0x86   : > { %444 = vst.msk [vmem:[#allocation2 + $0xf8] sm:$0xf] %vm203_vm1, %v440_v34 }
  0x87   : > { %311 = vst.msk [vmem:[#allocation2 + $0x6c] sm:$0xff] %vm201_vm0, %v306_v35 }
  0x89   : > { %v308_v36 = vpop.permute.xlu0 %307  ;;  %v318_v37 = vpop.permute.xlu1 %317  ;;  %v523_v40 = vld [vmem:[#allocation2 + $0xf0] sm:$0xff] }
  0x8a   : > { %312 = vst.msk [vmem:[#allocation2 + $0x74] sm:$0xf] %vm203_vm1, %v308_v36 }
  0x8b   : > { %323 = vst.msk [vmem:[#allocation2 + $0x78] sm:$0xff] %vm201_vm0, %v318_v37 }
  0x8d   : > { %v416_v38 = vpop.permute.xlu0 %415  ;;  %v426_v39 = vpop.permute.xlu1 %425  ;;  %v524_v41 = vld [vmem:[#allocation2 + $0xf8] sm:$0xff] }
  0x8e   : > { %420 = vst.msk [vmem:[#allocation2 + $0xe0] sm:$0xf] %vm203_vm1, %v416_v38  ;;  %v546_v42 = vpack.c.bf16 %v524_v41, %v523_v40 }
  0x8f   : > { %431 = vst.msk [vmem:[#allocation2 + $0xe4] sm:$0xff] %vm201_vm0, %v426_v39 }
  0x90   : > { %930 = vmatprep.subr.bf16.mxu0 %v546_v42 }
  0x91   : > { %v428_v43 = vpop.permute.xlu0 %427  ;;  %v294_v44 = vpop.permute.xlu1 %293  ;;  %v507_v45 = vld [vmem:[#allocation2 + $0x70] sm:$0xff] }
  0x92   : > { %v508_v46 = vld [vmem:[#allocation2 + $0x78] sm:$0xff]  ;;  %432 = vst.msk [vmem:[#allocation2 + $0xec] sm:$0xf] %vm203_vm1, %v428_v43 }
  0x93   : > { %299 = vst.msk [vmem:[#allocation2 + $0x60] sm:$0xff] %vm201_vm0, %v294_v44  ;;  %v538_v47 = vpack.c.bf16 %v508_v46, %v507_v45 }
  0x95   : > { %931 = vmatpush3.bf16.msra.mxu0 %v538_v47  ;;  %v296_v48 = vpop.permute.xlu0 %295  ;;  %v402_v49 = vpop.permute.xlu1 %401 }
  0x96   : > { %300 = vst.msk [vmem:[#allocation2 + $0x68] sm:$0xf] %vm203_vm1, %v296_v48  ;;  %v521_v52 = vld [vmem:[#allocation2 + $0xe0] sm:$0xff] }
  0x97   : > { %407 = vst.msk [vmem:[#allocation2 + $0xcc] sm:$0xff] %vm201_vm0, %v402_v49 }
  0x99   : > { %v404_v50 = vpop.permute.xlu0 %403  ;;  %v414_v51 = vpop.permute.xlu1 %413  ;;  %v522_v53 = vld [vmem:[#allocation2 + $0xe8] sm:$0xff] }
  0x9a   : > { %408 = vst.msk [vmem:[#allocation2 + $0xd4] sm:$0xf] %vm203_vm1, %v404_v50  ;;  %v545_v54 = vpack.c.bf16 %v522_v53, %v521_v52  ;;  %v505_v57 = vld [vmem:[#allocation2 + $0x60] sm:$0xff] }
  0x9b   : > { %419 = vst.msk [vmem:[#allocation2 + $0xd8] sm:$0xff] %vm201_vm0, %v414_v51 }
  0x9c   : > { %932 = vmatprep.subr.bf16.mxu0 %v545_v54 }
  0x9d   : > { %v282_v55 = vpop.permute.xlu1 %281  ;;  %v272_v56 = vpop.permute.xlu0 %271  ;;  %v506_v58 = vld [vmem:[#allocation2 + $0x68] sm:$0xff] }
  0x9e   : > { %287 = vst.msk [vmem:[#allocation2 + $0x54] sm:$0xff] %vm201_vm0, %v282_v55  ;;  %v537_v59 = vpack.c.bf16 %v506_v58, %v505_v57 }
  0x9f   : > { %276 = vst.msk [vmem:[#allocation2 + $0x50] sm:$0xf] %vm203_vm1, %v272_v56 }
  0xa0   : > { %933 = vmatpush3.bf16.msra.mxu0 %v537_v59 }
  0xa1   : > { %v390_v60 = vpop.permute.xlu1 %389  ;;  %v284_v61 = vpop.permute.xlu0 %283  ;;  %v519_v62 = vld [vmem:[#allocation2 + $0xd0] sm:$0xff] }
  0xa2   : > { %v520_v63 = vld [vmem:[#allocation2 + $0xd8] sm:$0xff]  ;;  %395 = vst.msk [vmem:[#allocation2 + $0xc0] sm:$0xff] %vm201_vm0, %v390_v60  ;;  %v493_v60 = vld [vmem:[#allocation2] sm:$0xff] }
  0xa3   : > { %288 = vst.msk [vmem:[#allocation2 + $0x5c] sm:$0xf] %vm203_vm1, %v284_v61  ;;  %v544_v0 = vpack.c.bf16 %v520_v63, %v519_v62 }
  0xa5   : > { %934 = vmatprep.subr.bf16.mxu0 %v544_v0  ;;  %v392_v1 = vpop.permute.xlu0 %391  ;;  %v258_v2 = vpop.permute.xlu1 %257 }
  0xa6   : > { %396 = vst.msk [vmem:[#allocation2 + $0xc8] sm:$0xf] %vm203_vm1, %v392_v1  ;;  %v503_v5 = vld [vmem:[#allocation2 + $0x50] sm:$0xff] }
  0xa7   : > { %263 = vst.msk [vmem:[#allocation2 + $0x3c] sm:$0xff] %vm201_vm0, %v258_v2 }
  0xa9   : > { %v260_v3 = vpop.permute.xlu0 %259  ;;  %v270_v4 = vpop.permute.xlu1 %269  ;;  %v517_v10 = vld [vmem:[#allocation2 + $0xc0] sm:$0xff] }
  0xaa   : > { %v504_v6 = vld [vmem:[#allocation2 + $0x58] sm:$0xff]  ;;  %264 = vst.msk [vmem:[#allocation2 + $0x44] sm:$0xf] %vm203_vm1, %v260_v3 }
  0xab   : > { %275 = vst.msk [vmem:[#allocation2 + $0x48] sm:$0xff] %vm201_vm0, %v270_v4  ;;  %v536_v7 = vpack.c.bf16 %v504_v6, %v503_v5  ;;  %v554_v3 = vld [vmem:[%s1318_s1 + $0x18] sm:$0xff]  ;;  %v1051_v5 = vld [vmem:[%s1318_s1] ss:$12 sps:$4 sm:$0xff]  }
  0xad   : > { %935 = vmatpush3.bf16.msra.mxu0 %v536_v7  ;;  %v368_v8 = vpop.permute.xlu0 %367  ;;  %v378_v9 = vpop.permute.xlu1 %377  ;;  %v518_v11 = vld [vmem:[#allocation2 + $0xc8] sm:$0xff] }
  0xae   : > { %372 = vst.msk [vmem:[#allocation2 + $0xb0] sm:$0xf] %vm203_vm1, %v368_v8  ;;  %v543_v12 = vpack.c.bf16 %v518_v11, %v517_v10  ;;  %v919_v8 = vcombine.high %v554_v3, %v554_v3 }
  0xaf   : > { %383 = vst.msk [vmem:[#allocation2 + $0xb4] sm:$0xff] %vm201_vm0, %v378_v9 }
  0xb0   : > { %936 = vmatprep.subr.bf16.mxu0 %v543_v12 }
  0xb1   : > { %v380_v13 = vpop.permute.xlu0 %379  ;;  %v246_v14 = vpop.permute.xlu1 %245  ;;  %v501_v15 = vld [vmem:[#allocation2 + $0x40] sm:$0xff] }
  0xb2   : > { %v502_v16 = vld [vmem:[#allocation2 + $0x48] sm:$0xff]  ;;  %384 = vst.msk [vmem:[#allocation2 + $0xbc] sm:$0xf] %vm203_vm1, %v380_v13  ;;  %v918_v13 = vcombine.low %v554_v3, %v554_v3 }
  0xb3   : > { %251 = vst.msk [vmem:[#allocation2 + $0x30] sm:$0xff] %vm201_vm0, %v246_v14  ;;  %v535_v17 = vpack.c.bf16 %v502_v16, %v501_v15  ;;  %v1057_v14 = vld [vmem:[%s1318_s1 + $0x20] ss:$0 sps:$4 sm:$0xff]  }
  0xb5   : > { %937 = vmatpush3.bf16.msra.mxu0 %v535_v17  ;;  %v248_v18 = vpop.permute.xlu0 %247  ;;  %v354_v19 = vpop.permute.xlu1 %353 }
  0xb6   : > { %252 = vst.msk [vmem:[#allocation2 + $0x38] sm:$0xf] %vm203_vm1, %v248_v18  ;;  %v515_v22 = vld [vmem:[#allocation2 + $0xb0] sm:$0xff] }
  0xb7   : > { %359 = vst.msk [vmem:[#allocation2 + $0x9c] sm:$0xff] %vm201_vm0, %v354_v19 }
  0xb9   : > { %v356_v20 = vpop.permute.xlu0 %355  ;;  %v366_v21 = vpop.permute.xlu1 %365  ;;  %v516_v23 = vld [vmem:[#allocation2 + $0xb8] sm:$0xff] }
  0xba   : > { %360 = vst.msk [vmem:[#allocation2 + $0xa4] sm:$0xf] %vm203_vm1, %v356_v20  ;;  %v542_v24 = vpack.c.bf16 %v516_v23, %v515_v22  ;;  %v499_v27 = vld [vmem:[#allocation2 + $0x30] sm:$0xff] }
  0xbb   : > { %371 = vst.msk [vmem:[#allocation2 + $0xa8] sm:$0xff] %vm201_vm0, %v366_v21 }
  0xbc   : > { %938 = vmatprep.subr.bf16.mxu0 %v542_v24 }
  0xbd   : > { %v234_v25 = vpop.permute.xlu1 %233  ;;  %v224_v26 = vpop.permute.xlu0 %223  ;;  %v500_v28 = vld [vmem:[#allocation2 + $0x38] sm:$0xff] }
  0xbe   : > { %239 = vst.msk [vmem:[#allocation2 + $0x24] sm:$0xff] %vm201_vm0, %v234_v25  ;;  %v534_v29 = vpack.c.bf16 %v500_v28, %v499_v27 }
  0xbf   : > { %228 = vst.msk [vmem:[#allocation2 + $0x20] sm:$0xf] %vm203_vm1, %v224_v26 }
  0xc0   : > { %939 = vmatpush3.bf16.msra.mxu0 %v534_v29 }
  0xc1   : > { %v342_v30 = vpop.permute.xlu1 %341  ;;  %v236_v31 = vpop.permute.xlu0 %235  ;;  %v513_v32 = vld [vmem:[#allocation2 + $0xa0] sm:$0xff] }
  0xc2   : > { %v514_v33 = vld [vmem:[#allocation2 + $0xa8] sm:$0xff]  ;;  %347 = vst.msk [vmem:[#allocation2 + $0x90] sm:$0xff] %vm201_vm0, %v342_v30 }
  0xc3   : > { %240 = vst.msk [vmem:[#allocation2 + $0x2c] sm:$0xf] %vm203_vm1, %v236_v31  ;;  %v541_v34 = vpack.c.bf16 %v514_v33, %v513_v32 }
  0xc5   : > { %940 = vmatprep.subr.bf16.mxu0 %v541_v34  ;;  %v486_v35 = vpop.permute.xlu1 %485  ;;  %v344_v36 = vpop.permute.xlu0 %343 }
  0xc6   : > { %491 = vst.msk [vmem:[#allocation2 + $0x120] sm:$0xff] %vm201_vm0, %v486_v35  ;;  %v497_v39 = vld [vmem:[#allocation2 + $0x20] sm:$0xff] }
  0xc7   : > { %348 = vst.msk [vmem:[#allocation2 + $0x98] sm:$0xf] %vm203_vm1, %v344_v36 }
  0xc9   : > { %v488_v37 = vpop.permute.xlu0 %487  ;;  %v210_v38 = vpop.permute.xlu1 %209  ;;  %v511_v44 = vld [vmem:[#allocation2 + $0x90] sm:$0xff] }
  0xca   : > { %v498_v40 = vld [vmem:[#allocation2 + $0x28] sm:$0xff]  ;;  %492 = vst.msk [vmem:[#allocation2 + $0x128] sm:$0xf] %vm203_vm1, %v488_v37 }
  0xcb   : > { %215 = vst.msk [vmem:[#allocation2 + $0xc] sm:$0xff] %vm201_vm0, %v210_v38  ;;  %v533_v41 = vpack.c.bf16 %v498_v40, %v497_v39  ;;  %v753_v40 = vld [vmem:[%s1320_s3 + $0x40] sm:$0x1] }
  0xcd   : > { %941 = vmatpush3.bf16.msra.mxu0 %v533_v41  ;;  %v212_v42 = vpop.permute.xlu0 %211  ;;  %v222_v43 = vpop.permute.xlu1 %221  ;;  %v529_v49 = vld [vmem:[#allocation2 + $0x120] sm:$0xff] }
  0xce   : > { %v512_v45 = vld [vmem:[#allocation2 + $0x98] sm:$0xff]  ;;  %216 = vst.msk [vmem:[#allocation2 + $0x14] sm:$0xf] %vm203_vm1, %v212_v42 }
  0xcf   : > { %227 = vst.msk [vmem:[#allocation2 + $0x18] sm:$0xff] %vm201_vm0, %v222_v43  ;;  %v540_v46 = vpack.c.bf16 %v512_v45, %v511_v44  ;;  %v1091_v43 = vmov 0.0   ;;  %v752_v44 = vld [vmem:[%s1320_s3 + $0x38] sm:$0xff]  ;;  %v751_v45 = vld [vmem:[%s1320_s3 + $0x30] sm:$0xff] }
  0xd1   : > { %942 = vmatprep.subr.bf16.mxu0 %v540_v46  ;;  %v320_v47 = vpop.permute.xlu0 %319  ;;  %v330_v48 = vpop.permute.xlu1 %329  ;;  %v530_v50 = vld [vmem:[#allocation2 + $0x128] sm:$0xf] }
  0xd2   : > { %324 = vst.msk [vmem:[#allocation2 + $0x80] sm:$0xf] %vm203_vm1, %v320_v47  ;;  %v549_v51 = vpack.c.bf16 %v530_v50, %v529_v49  ;;  %v494_v61 = vld [vmem:[#allocation2 + $0x8] sm:$0xff] }
  0xd3   : > { %335 = vst.msk [vmem:[#allocation2 + $0x84] sm:$0xff] %vm201_vm0, %v330_v48  ;;  %v531_v4 = vpack.c.bf16 %v494_v61, %v493_v60  ;;  %v750_v46 = vld [vmem:[%s1320_s3 + $0x28] sm:$0xff]  ;;  %v749_v48 = vld [vmem:[%s1320_s3 + $0x20] sm:$0xff] }
  0xd4   : > { %1012 = vmatprep.subr.msk.bf16.mxu1 %vm606_vm3, %v549_v51  ;;  %v608_v52 = vsel %vm606_vm3, %v549_v51, 0  ;;  %v748_v51 = vld [vmem:[%s1320_s3 + $0x18] sm:$0xff] }
  0xd5   : > { %976 = vmatpush3.bf16.msra.mxu1 %v608_v52  ;;  %v332_v53 = vpop.permute.xlu0 %331  ;;  %v464_v54 = vpop.permute.xlu1 %463  ;;  %v495_v55 = vld [vmem:[#allocation2 + $0x10] sm:$0xff] }
  0xd6   : > { %v496_v56 = vld [vmem:[#allocation2 + $0x18] sm:$0xff]  ;;  %336 = vst.msk [vmem:[#allocation2 + $0x8c] sm:$0xf] %vm203_vm1, %v332_v53  ;;  %468 = vst.msk [vmem:[#allocation2 + $0x110] sm:$0xf] %vm203_vm1, %v464_v54  ;;  %v747_v52 = vld [vmem:[%s1320_s3 + $0x10] sm:$0xff] }
  0xd7   : > { %v532_v57 = vpack.c.bf16 %v496_v56, %v495_v55  ;;  %v746_v53 = vld [vmem:[%s1320_s3 + $0x8] sm:$0xff]  ;;  %v745_v54 = vld [vmem:[%s1320_s3] sm:$0xff] }
  0xd9   : > { %943 = vmatpush3.bf16.msra.mxu0 %v532_v57  ;;  %v474_v58 = vpop.permute.xlu0 %473  ;;  %v476_v59 = vpop.permute.xlu1 %475 }
  0xda   : > { %479 = vst.msk [vmem:[#allocation2 + $0x114] sm:$0xff] %vm201_vm0, %v474_v58  ;;  %v509_v0 = vld [vmem:[#allocation2 + $0x80] sm:$0xff] }
  0xdb   : > { %480 = vst.msk [vmem:[#allocation2 + $0x11c] sm:$0xf] %vm203_vm1, %v476_v59 }
  0xdd   : > { %v452_v62 = vpop.permute.xlu0 %451  ;;  %v462_v63 = vpop.permute.xlu1 %461  ;;  %v510_v1 = vld [vmem:[#allocation2 + $0x88] sm:$0xff] }
  0xde   : > { %456 = vst.msk [vmem:[#allocation2 + $0x104] sm:$0xf] %vm203_vm1, %v452_v62  ;;  %v539_v2 = vpack.c.bf16 %v510_v1, %v509_v0 }
  0xdf   : > { %467 = vst.msk [vmem:[#allocation2 + $0x108] sm:$0xff] %vm201_vm0, %v462_v63 }
  0xe0   : > { %944 = vmatprep.subr.bf16.mxu0 %v539_v2 }
  0xe1   : > { %945 = vmatpush3.bf16.msra.mxu0 %v531_v4  ;;  %v527_v6 = vld [vmem:[#allocation2 + $0x110] sm:$0xff] }
  0xe2   : > { %v528_v7 = vld [vmem:[#allocation2 + $0x118] sm:$0xff] }
  0xe3   : > { %v548_v9 = vpack.c.bf16 %v528_v7, %v527_v6 }
  0xe4   : > { %643 = vmatmul.mubr.bf16.vlgmr.msra.gmra.mxu0 %v1051_v5 }
  0xe5   : > { %977 = vmatprep.subr.bf16.mxu1 %v548_v9  ;;  %v525_v10 = vld [vmem:[#allocation2 + $0x100] sm:$0xff]  ;;  %650 = vmatprep.mubr.bf16.mxu0 %v919_v8 }
  0xe6   : > { %978 = vmatpush3.bf16.msra.mxu1 %v548_v9  ;;  %v526_v11 = vld [vmem:[#allocation2 + $0x108] sm:$0xff] }
  0xe7   : > { %v547_v12 = vpack.c.bf16 %v526_v11, %v525_v10 }
  0xe9   : > { %979 = vmatprep.subr.bf16.mxu1 %v547_v12 }
  0xea   : > { %980 = vmatpush3.bf16.msra.mxu1 %v547_v12  ;;  %v567_v17 = vpop.permute.xlu1 %566  ;;  %v562_v20 = vpop.permute.xlu0 %561 }
  0xeb   : > { %985 = vmatprep.subr.mxu1 %v1091_v43 }
  0xec   : > { %651 = vmatmul.mubr.bf16.gmra.mxu0 %v918_v13 }
  0xed   : > { %982 = vmatmul.mubr.msk.bf16.vlgmr.msra.gmra.mxu1 %vm599_vm2, %v1057_v14 }
  0xee   : > { %v572_v26 = vpop.permute.xlu1 %571  ;;  %986 = vmatpush3.msk.msra.mxu1 %vm764_vm4, %v753_v40  ;;  %1003 = vmatprep.mubr.msk.f32.mxu1 %vm1092_vm5, %v1091_v43 }
  0xef   : > { %987 = vmatprep.subr.mxu1 %v1091_v43 }
  0xf0   : > { %988 = vmatpush3.msra.mxu1 %v752_v44 }
  0xf1   : > { %989 = vmatprep.subr.mxu1 %v1091_v43 }
  0xf2   : > { %990 = vmatpush3.msra.mxu1 %v751_v45 }
  0xf3   : > { %991 = vmatprep.subr.mxu1 %v1091_v43 }
  0xf4   : > { %992 = vmatpush3.msra.mxu1 %v750_v46 }
  0xf5   : > { %993 = vmatprep.subr.mxu1 %v1091_v43 }
  0xf6   : > { %994 = vmatpush3.msra.mxu1 %v749_v48 }
  0xf7   : > { %995 = vmatprep.subr.mxu1 %v1091_v43 }
  0xf8   : > { %996 = vmatpush3.msra.mxu1 %v748_v51 }
  0xf9   : > { %997 = vmatprep.subr.mxu1 %v1091_v43 }
  0xfa   : > { %998 = vmatpush3.msra.mxu1 %v747_v52 }
  0xfb   : > { %999 = vmatprep.subr.mxu1 %v1091_v43 }
  0xfc   : > { %1000 = vmatpush3.msra.mxu1 %v746_v53 }
  0xfd   : > { %1001 = vmatprep.subr.mxu1 %v1091_v43 }
  0xfe   : > { %1002 = vmatpush3.msra.mxu1 %v745_v54 }
 0x1a4   : > { %v946_v15 = vpop.f32.mrf.mxu0 }
 0x1a6   : > { %v947_v16 = vpop.f32.mrf.mxu0 }
 0x1a7   : > { %v948_v19 = vadd.f32 %v947_v16, %v946_v15 }
 0x1a8   : > { %v949_v18 = vpop.f32.mrf.mxu0 }
 0x1a9   : > { %v645_v24 = vadd.f32 %v948_v19, %v562_v20 }
 0x1aa   : > { %v950_v21 = vpop.f32.mrf.mxu0 }
 0x1ab   : > { %v951_v25 = vadd.f32 %v950_v21, %v949_v18 }
 0x1ac   : > { %v952_v23 = vpop.f32.mrf.mxu0 }
 0x1ad   : > { %v983_v22 = vpop.f32.mrf.mxu1  ;;  %v648_v33 = vadd.f32 %v951_v25, %v567_v17 }
 0x1ae   : > { %v953_v27 = vpop.f32.mrf.mxu0 }
 0x1af   : > { %v692_v28 = vpop.f32.mrf.mxu1  ;;  %v954_v29 = vadd.f32 %v953_v27, %v952_v23 }
 0x1b0   : > { %v693_v30 = vadd.f32 %v692_v28, %v645_v24  ;;  %v955_v32 = vpop.f32.mrf.mxu0 }
 0x1b1   : > { %v984_v31 = vpop.f32.mrf.mxu1  ;;  %v653_v35 = vadd.f32 %v954_v29, %v572_v26 }
 0x1b2   : > { %v706_v34 = vmax.f32 %v693_v30, 0.0  ;;  %v956_v36 = vpop.f32.mrf.mxu0 }
 0x1b3   : > { %v695_v37 = vpop.f32.mrf.mxu1  ;;  %v701_v38 = vadd.f32 %v983_v22, %v653_v35 }
 0x1b4   : > { %709 = vst.msk [vmem:[#allocation3] sm:$0xff] %vm201_vm0, %v706_v34  ;;  %v696_v39 = vadd.f32 %v695_v37, %v648_v33 }
 0x1b5   : > { %v708_v41 = vmax.f32 %v701_v38, 0.0 }
 0x1b6   : > { %v707_v42 = vmax.f32 %v696_v39, 0.0 }
 0x1b7   : > { %711 = vst.msk [vmem:[#allocation3 + $0x10] sm:$0xff] %vm201_vm0, %v708_v41 }
 0x1b8   : > { %710 = vst.msk [vmem:[#allocation3 + $0x8] sm:$0xff] %vm201_vm0, %v707_v42 }
 0x1bb   : > { %v712_v47 = vld [vmem:[#allocation3] sm:$0xff] }
 0x1bc   : > { %718 = vrot.lane.b32.xlu0 %v712_v47, %s1086_s17 }
 0x1be   : > { %v714_v50 = vld [vmem:[#allocation3 + $0x10] sm:$0xff] }
 0x1bf   : > { %v713_v49 = vld [vmem:[#allocation3 + $0x8] sm:$0xff] }
 0x1c0   : > { %720 = vrot.lane.b32.xlu1 %v713_v49, %s1086_s17  ;;  %722 = vrot.lane.b32.xlu0 %v714_v50, %s1086_s17  ;;  %s1013_s17 = smul.u32 24, %s1323_s16 }
 0x1c2   : > { %s197_s10 = scalar_lea.vmem %s1321_s4, %s1013_s17 }
 0x22e   : > { %v719_v55 = vpop.permute.xlu0 %718 }
 0x22f   : > { %v727_v56 = vmax.f32 %v712_v47, %v719_v55 }
 0x231   : > { %733 = vrot.lane.b32.xlu1 %v727_v56, %s1077_s6 }
 0x232   : > { %v721_v57 = vpop.permute.xlu1 %720  ;;  %v723_v58 = vpop.permute.xlu0 %722 }
 0x233   : > { %v728_v59 = vmax.f32 %v713_v49, %v721_v57  ;;  %v729_v60 = vmax.f32 %v714_v50, %v723_v58 }
 0x235   : > { %735 = vrot.lane.b32.xlu0 %v728_v59, %s1077_s6  ;;  %737 = vrot.lane.b32.xlu1 %v729_v60, %s1077_s6 }
 0x2a3   : > { %v734_v61 = vpop.permute.xlu1 %733 }
 0x2a4   : > { %v742_v62 = vmax.f32 %v727_v56, %v734_v61 }
 0x2a6   : > { %1004 = vmatmul.mubr.msk.f32.vlgmr.msra.gmra.mxu1 %vm754_vm6, %v742_v62 }
 0x2a7   : > { %v736_v63 = vpop.permute.xlu0 %735  ;;  %1006 = vmatprep.mubr.msk.f32.mxu1 %vm1092_vm5, %v1091_v43  ;;  %v738_v1 = vpop.permute.xlu1 %737 }
 0x2a8   : > { %v743_v0 = vmax.f32 %v728_v59, %v736_v63  ;;  %v744_v2 = vmax.f32 %v729_v60, %v738_v1 }
 0x2aa   : > { %1007 = vmatmul.mubr.msk.f32.gmra.mxu1 %vm754_vm6, %v743_v0 }
 0x2ab   : > { %1009 = vmatprep.mubr.msk.f32.mxu1 %vm1092_vm5, %v1091_v43 }
 0x2ae   : > { %1010 = vmatmul.mubr.msk.f32.gmra.mxu1 %vm754_vm6, %v744_v2 }
 0x366   : > { %v834_v3 = vpop.f32.mrf.mxu1 }
 0x367   : > { %849 = vst.msk [vmem:[%s197_s10] sm:$0xff] %vm848_vm7, %v834_v3 }
 0x368   : > { %v1005_v4 = vpop.f32.mrf.mxu1 }
 0x36a   : > { %v839_v5 = vpop.f32.mrf.mxu1 }
 0x36b   : > { %850 = vst.msk [vmem:[%s197_s10 + $0x8] sm:$0xff] %vm848_vm7, %v839_v5 }
 0x36c   : > { %v1008_v6 = vpop.f32.mrf.mxu1 }
 0x36e   : > { %v844_v7 = vpop.f32.mrf.mxu1 }
 0x36f   : > { %851 = vst.msk [vmem:[%s197_s10 + $0x10] sm:$0xff] %vm848_vm7, %v844_v7 }
 0x370   : > { %v1011_v8 = vpop.f32.mrf.mxu1 }
 0x371 PF: > { %s14_s15 = sadd.s32 1, %s1064_s15  }
 0x372   : > { %p11_p4 = scmp.ge.s32.totalorder %s14_s15, 4  }
 0x374   :  { %13 = sbr.rel (!%p11_p4) target bundleno = 1 (0x1), region = 66 }

// kernel: lenet_forward.7
= control target key start
LH: loop header
LB: loop body
LE: loop exit
PB: predicated region body
PF: predicated region fallthrough
CT: control target
= control target key end

     0   :  { %v591_v1 = vmov 0   ;;  %v592_v3 = vmov 0.0   ;;  %v75_v5 = vlaneseq  ;;  %v593_v10 = vmov 1966171168   ;;  %s769_s0 = inlined_call_operand.vmem [shape: bf16[2,216], index: 0, kind: input, shape index: {}]   ;;  %s770_s1 = inlined_call_operand.vmem [shape: bf16[216,120], index: 1, kind: input, shape index: {}]   ;;  %s771_s2 = inlined_call_operand.vmem [shape: f32[1,120], index: 2, kind: input, shape index: {}]   ;;  %s772_s3 = inlined_call_operand.vmem [shape: bf16[120,84], index: 3, kind: input, shape index: {}]   ;;  %s773_s4 = inlined_call_operand.vmem [shape: f32[1,84], index: 4, kind: input, shape index: {}]   ;;  %s774_s5 = inlined_call_operand.vmem [shape: bf16[84,10], index: 5, kind: input, shape index: {}]   ;;  %s775_s6 = inlined_call_operand.vmem [shape: f32[1,10], index: 6, kind: input, shape index: {}]   ;;  %s776_s7 = inlined_call_operand.hbm [shape: f32[2,10], index: 7, kind: output, shape index: {}]  }
   0x1   :  { %v541_v0 = vld [vmem:[%s770_s1 + $0x38] sm:$0xff]   ;;  %176 = vmatprep.subr.bf16.mxu0 %v591_v1  ;;  %v542_v2 = vld [vmem:[%s770_s1 + $0x30] sm:$0xff]   ;;  %500 = vmatprep.subr.bf16.mxu1 %v592_v3  ;;  %v543_v4 = vld [vmem:[%s770_s1 + $0x28] sm:$0xff]   ;;  %v73_v11 = vunpack.c.l.s4 %v593_v10  ;;  %vm172_vm0 = vcmask 1043456   ;;  %vm168_vm1 = vcmask 719872  }
   0x2   :  { %177 = vmatpush1.bf16.msra.mxu0 %v541_v0  ;;  %v544_v6 = vld [vmem:[%s770_s1 + $0x20] sm:$0xff]   ;;  %v545_v7 = vld [vmem:[%s770_s1 + $0x18] sm:$0xff]   ;;  %v76_v8 = vshrl.u32 %v75_v5, 7  ;;  %v546_v16 = vld [vmem:[%s770_s1 + $0x10] sm:$0xff]  }
   0x3   :  { %178 = vmatprep.subr.bf16.mxu0 %v591_v1  ;;  %v450_v9 = vld.sshfl [vmem:[%s769_s0] sm:$0x11 pattern:$0x75316420]  ;;  %v555_v12 = vld [vmem:[%s772_s3 + $0x38] ss:$0 sps:$4 sm:$0xff]   ;;  %v74_v14 = vunpack.c.0.s8 %v73_v11 }
   0x4   :  { %v71_v13 = vcombine.high %v450_v9, %v450_v9  ;;  %v290_v15 = vsel %vm172_vm0, %v555_v12, 0  ;;  %v556_v18 = vld [vmem:[%s772_s3 + $0x30] sm:$0xff]   ;;  %v547_v19 = vld [vmem:[%s770_s1 + $0x8] sm:$0xff]  }
   0x5   :  { %v77_v17 = vsub.s32 %v74_v14, %v76_v8  ;;  %501 = vmatpush3.bf16.msra.mxu1 %v290_v15  ;;  %v557_v21 = vld [vmem:[%s772_s3 + $0x28] sm:$0xff]  }
   0x6   :  { %179 = vmatpush1.bf16.msra.mxu0 %v542_v2  ;;  %502 = vmatprep.subr.bf16.mxu1 %v592_v3 }
   0x7   :  { %180 = vmatprep.subr.bf16.mxu0 %v591_v1  ;;  %v85_v20 = vrot.slane %v71_v13, %v77_v17 }
   0x9   :  { %465 = vmatprep.mubr.msk.bf16.mxu0 %vm168_vm1, %v85_v20  ;;  %503 = vmatpush3.bf16.msra.mxu1 %v556_v18 }
   0xa   :  { %181 = vmatpush1.bf16.msra.mxu0 %v543_v4  ;;  %504 = vmatprep.subr.bf16.mxu1 %v592_v3 }
   0xb   :  { %182 = vmatprep.subr.bf16.mxu0 %v591_v1 }
   0xe   :  { %183 = vmatpush1.bf16.msra.mxu0 %v544_v6 }
   0xf   :  { %184 = vmatprep.subr.bf16.mxu0 %v591_v1 }
  0x12   :  { %185 = vmatpush1.bf16.msra.mxu0 %v545_v7 }
  0x13   :  { %186 = vmatprep.subr.bf16.mxu0 %v591_v1 }
  0x16   :  { %187 = vmatpush1.bf16.msra.mxu0 %v546_v16 }
  0x17   :  { %188 = vmatprep.subr.bf16.mxu0 %v591_v1 }
  0x18   :  { %12 = vsyncpa [#allocation3], 0  ;;  %v548_v22 = vld [vmem:[%s770_s1] sm:$0xff]   ;;  %v549_v23 = vld [vmem:[%s770_s1 + $0x68] ss:$0 sps:$4 sm:$0xff]   ;;  %505 = vmatpush3.bf16.msra.mxu1 %v557_v21  ;;  %v78_v33 = vrot.slane %v450_v9, %v77_v17  ;;  %vm594_vm2 = vmmov 0  }
  0x19   :  { %v558_v24 = vld [vmem:[%s772_s3 + $0x20] sm:$0xff]   ;;  %506 = vmatprep.subr.bf16.mxu1 %v592_v3  ;;  %v174_v25 = vsel %vm172_vm0, %v549_v23, 0  ;;  %v559_v26 = vld [vmem:[%s772_s3 + $0x18] sm:$0xff]   ;;  %v560_v28 = vld [vmem:[%s772_s3 + $0x10] sm:$0xff]   ;;  %516 = vmatprep.mubr.msk.bf16.mxu1 %vm594_vm2, %v592_v3  ;;  %vm389_vm3 = vcmask 1041408   ;;  %vm285_vm4 = vcmask 982016  }
  0x1a   :  { %189 = vmatpush1.bf16.msra.mxu0 %v547_v19  ;;  %v550_v27 = vld [vmem:[%s770_s1 + $0x60] sm:$0xff]   ;;  %v551_v29 = vld [vmem:[%s770_s1 + $0x58] sm:$0xff]   ;;  %v552_v30 = vld [vmem:[%s770_s1 + $0x50] sm:$0xff]   ;;  %vm385_vm5 = vcmask 687104   ;;  %s595_s14 = smov [#allocation2]   ;;  %vm433_vm6 = vcmask 74752  }
  0x1b   :  { %190 = vmatprep.subr.bf16.mxu0 %v591_v1  ;;  %v553_v31 = vld [vmem:[%s770_s1 + $0x48] sm:$0xff]   ;;  %v554_v32 = vld [vmem:[%s770_s1 + $0x40] sm:$0xff]   ;;  %v565_v47 = vld [vmem:[%s774_s5 + $0x18] sm:$0xff]  }
  0x1c   :  { %507 = vmatpush3.bf16.msra.mxu1 %v558_v24  ;;  %v561_v34 = vld [vmem:[%s772_s3 + $0x8] sm:$0xff]   ;;  %v562_v35 = vld [vmem:[%s772_s3] sm:$0xff]   ;;  %v566_v48 = vld [vmem:[%s774_s5 + $0x10] sm:$0xff]  }
  0x1d   :  { %508 = vmatprep.subr.bf16.mxu1 %v592_v3  ;;  %v449_v36 = vld [vmem:[%s771_s2] ss:$0 sm:$0xff]  ;;  %v563_v39 = vld [vmem:[%s774_s5 + $0x28] ss:$0 sps:$4 sm:$0x33]  }
  0x1e   :  { %191 = vmatpush1.bf16.msra.mxu0 %v548_v22  ;;  %v391_v44 = vsel %vm389_vm3, %v563_v39, 0  ;;  %v564_v46 = vld [vmem:[%s774_s5 + $0x20] sm:$0xff]   ;;  %v567_v49 = vld [vmem:[%s774_s5 + $0x8] sm:$0xff]  }
  0x1f   :  { %196 = vmatprep.subr.bf16.mxu0 %v591_v1  ;;  %v568_v50 = vld [vmem:[%s774_s5] sm:$0xff]   ;;  %s441_s5 = sshll.u32 %s595_s14, 4  ;;  %s442_s5 = int_to_ptr.vmem [resolvable:$true] %s441_s5 }
  0x20   :  { %509 = vmatpush3.bf16.msra.mxu1 %v559_v26  ;;  %v466_v51 = vld [vmem:[%s773_s4] ss:$0 sm:$0xff]  ;;  %s569_s4 = scalar_lea.vmem %s442_s5, 32  ;;  %p574_p1 = scmp.lt.s32.totalorder %s442_s5, %s442_s5 }
  0x21   :  { %510 = vmatprep.subr.bf16.mxu1 %v592_v3  ;;  %v476_v59 = vld [vmem:[%s775_s6] ss:$0 sm:$0xff]  ;;  %p570_p0 = scmp.ne.s32.totalorder %s442_s5, %s569_s4  ;;  %p575_p2 = scmp.lt.s32.totalorder %s569_s4, %s569_s4 }
  0x22   :  { %197 = vmatpush2.bf16.msra.mxu0 %v174_v25 }
  0x23   :  { %198 = vmatprep.subr.bf16.mxu0 %v591_v1  ;;  %p576_p3 = por %p575_p2, %p574_p1 }
  0x24   :  { %511 = vmatpush3.bf16.msra.mxu1 %v560_v28 }
  0x25   :  { %512 = vmatprep.subr.bf16.mxu1 %v592_v3  ;;  %p577_p4 = pnand %p576_p3, %p570_p0 }
  0x26   :  { %199 = vmatpush2.bf16.msra.mxu0 %v550_v27 }
  0x27   :  { %200 = vmatprep.subr.bf16.mxu0 %v591_v1 }
  0x28   :  { %513 = vmatpush3.bf16.msra.mxu1 %v561_v34 }
  0x29   :  { %514 = vmatprep.subr.bf16.mxu1 %v592_v3 }
  0x2a   :  { %201 = vmatpush2.bf16.msra.mxu0 %v551_v29 }
  0x2b   :  { %202 = vmatprep.subr.bf16.mxu0 %v591_v1 }
  0x2c   :  { %515 = vmatpush3.bf16.msra.mxu1 %v562_v35 }
  0x2d   :  { %520 = vmatprep.subr.bf16.mxu1 %v592_v3 }
  0x2e   :  { %203 = vmatpush2.bf16.msra.mxu0 %v552_v30 }
  0x2f   :  { %204 = vmatprep.subr.bf16.mxu0 %v591_v1 }
  0x32   :  { %205 = vmatpush2.bf16.msra.mxu0 %v553_v31 }
  0x33   :  { %206 = vmatprep.subr.bf16.mxu0 %v591_v1 }
  0x36   :  { %207 = vmatpush2.bf16.msra.mxu0 %v554_v32 }
  0x39   :  { %209 = vmatmul.mubr.bf16.vlgmr.msra.gmra.mxu0 %v78_v33 }
  0xf9   :  { %v210_v37 = vpop.f32.mrf.mxu0 }
  0xfa   :  { %v211_v38 = vadd.f32 %v449_v36, %v210_v37 }
  0xfb   :  { %v212_v40 = vpop.f32.mrf.mxu0 }
  0xfc   :  { %v216_v41 = vmax.f32 %v211_v38, 0.0 }
  0xfd   :  { %v213_v42 = vpop.f32.mrf.mxu0 }
  0xfe   :  { %v217_v43 = vpack.c.bf16 %v216_v41, %v216_v41 }
  0xff   :  { %v214_v45 = vpop.f32.mrf.mxu0 }
 0x100   :  { %517 = vmatmul.mubr.msk.bf16.vlgmr.msra.gmra.mxu1 %vm285_vm4, %v217_v43 }
 0x101   :  { %521 = vmatpush3.bf16.msra.mxu1 %v391_v44  ;;  %532 = vmatprep.mubr.msk.bf16.mxu1 %vm594_vm2, %v592_v3 }
 0x102   :  { %522 = vmatprep.subr.bf16.mxu1 %v592_v3 }
 0x105   :  { %523 = vmatpush3.bf16.msra.mxu1 %v564_v46 }
 0x106   :  { %524 = vmatprep.subr.bf16.mxu1 %v592_v3 }
 0x109   :  { %525 = vmatpush3.bf16.msra.mxu1 %v565_v47 }
 0x10a   :  { %526 = vmatprep.subr.bf16.mxu1 %v592_v3 }
 0x10d   :  { %527 = vmatpush3.bf16.msra.mxu1 %v566_v48 }
 0x10e   :  { %528 = vmatprep.subr.bf16.mxu1 %v592_v3 }
 0x111   :  { %529 = vmatpush3.bf16.msra.mxu1 %v567_v49 }
 0x112   :  { %530 = vmatprep.subr.bf16.mxu1 %v592_v3 }
 0x115   :  { %531 = vmatpush3.bf16.msra.mxu1 %v568_v50 }
 0x1c0   :  { %v326_v52 = vpop.f32.mrf.mxu1 }
 0x1c1   :  { %v327_v53 = vadd.f32 %v466_v51, %v326_v52 }
 0x1c2   :  { %v518_v54 = vpop.f32.mrf.mxu1 }
 0x1c3   :  { %v332_v55 = vmax.f32 %v327_v53, 0.0 }
 0x1c4   :  { %v329_v56 = vpop.f32.mrf.mxu1 }
 0x1c5   :  { %v333_v57 = vpack.c.bf16 %v332_v55, %v332_v55 }
 0x1c6   :  { %v519_v58 = vpop.f32.mrf.mxu1 }
 0x1c7   :  { %533 = vmatmul.mubr.msk.bf16.vlgmr.msra.gmra.mxu1 %vm385_vm5, %v333_v57 }
 0x287   :  { %v427_v60 = vpop.f32.mrf.mxu1 }
 0x288   :  { %v428_v61 = vadd.f32 %v476_v59, %v427_v60 }
 0x289   :  { %v534_v62 = vpop.f32.mrf.mxu1 }
 0x28a   :  { %434 = vst.msk [vmem:[#allocation2] sm:$0x3] %vm433_vm6, %v428_v61 }
 0x28b   :  { %v430_v63 = vpop.f32.mrf.mxu1 }
 0x28c   :  { %580 = shalt.err (!%p577_p4)
}
 0x28d   :  { %444 = dma.vmem_to_hbm [thread:$0]  %s442_s5, 32, %s776_s7, [#allocation3]   ;;  %v535_v0 = vpop.f32.mrf.mxu1 }
 0x28e   :  { %589 = dma.done.wait [#allocation3], 32  }
 0x28f   :  { %590 = vsyncadd [#allocation3], 4294967264 }
 0x290   :  { %448 = vsyncpa [#allocation3], 1 }

</bundles_post_ra>
